<compile_context>
chip_gen: v7x
topology: tpu7x:2x2x1
jax: 0.10.0
libtpu: 0.0.40
codegen_flags: <defaults>
</compile_context>

<pallas_src>
import math
from functools import partial

import jax
import jax.numpy as jnp
from jax import lax
from jax.experimental import pallas as pl
from jax.experimental.pallas import tpu as pltpu

# ---- model hyper-parameters (small, consistent with MixerModel.__init__) ----
D_MODEL = 32
N_LAYER = 2
VOCAB = 50
D_STATE = 16
D_CONV = 4
EXPAND = 2
D_INNER = EXPAND * D_MODEL                 # 64
DT_RANK = math.ceil(D_MODEL / 16)          # 2
EPS = 1e-5
LANE = 128                                  # fused x_proj output padded to lane width


def _softplus(x):
    return jnp.where(x > 20.0, x, jnp.log1p(jnp.exp(jnp.minimum(x, 20.0))))


def _silu(x):
    return x * jax.nn.sigmoid(x)


def _layernorm(x, w, b, eps):
    mean = jnp.mean(x, axis=-1, keepdims=True)
    cen = x - mean
    var = jnp.mean(cen * cen, axis=-1, keepdims=True)
    return cen * lax.rsqrt(var + eps) * w + b


# ------------------------------- Pallas kernel -------------------------------

def _mamba_layer_kernel(h_ref, r_ref, nw_ref, nb_ref, win_ref, cw_ref, cb_ref,
                        wx_ref, bdt_ref, at_ref, dd_ref, wo_ref, *rest,
                        nbatch, seqlen, eps, final_norm):
    """One full Mamba block (add + norm + mixer[, + final norm_f]) on (B*L) rows."""
    if final_norm:
        nfw_ref, nfb_ref, fo_ref, da_s, bu_s, h_s = rest
    else:
        ho_ref, ro_ref, da_s, bu_s, h_s = rest

    d_conv = cw_ref.shape[0]
    d_state, d_inner = at_ref.shape
    bl = nbatch * seqlen

    # ---- residual add + pre-norm LayerNorm ----
    resid = h_ref[...] + r_ref[...]                                      # (BL, Dm)
    hn = _layernorm(resid, nw_ref[...], nb_ref[...], eps)

    # ---- fused in_proj: one lane-dense (Dm, 2*Din) matmul, lane-slice x | z ----
    xz = jnp.dot(hn, win_ref[...], preferred_element_type=jnp.float32)   # (BL, 2Din)
    x_in = xz[:, :d_inner]
    z = xz[:, d_inner:]

    # ---- depthwise causal conv1d + SiLU: value-level shifted adds, no scratch ----
    # rows are batch-major (row = b*L + t); per-batch causal mask is t >= shift
    t_idx = lax.broadcasted_iota(jnp.int32, (nbatch, seqlen, d_inner), 1
                                 ).reshape(bl, d_inner)
    acc = cb_ref[...] + x_in * cw_ref[d_conv - 1:d_conv, :]              # zero-shift tap
    for k in range(d_conv - 1):
        s = d_conv - 1 - k                                               # temporal shift
        shifted = jnp.concatenate(
            [jnp.zeros((s, d_inner), jnp.float32), x_in[:bl - s, :]], axis=0)
        shifted = jnp.where(t_idx >= s, shifted, 0.0)                    # causal mask
        acc = acc + cw_ref[k:k + 1, :] * shifted
    u = _silu(acc)                                                       # (BL, Din)

    # ---- fused x_proj (dt | B | C, padded to 128 lanes) + softplus(dt + bias) ----
    dbc = jnp.dot(u, wx_ref[...], preferred_element_type=jnp.float32)    # (BL, 128)
    dt = _softplus(dbc[:, :d_inner] + bdt_ref[...])                      # (BL, Din)
    bmat = dbc[:, d_inner:d_inner + d_state]                             # (BL, N)
    cmat = dbc[:, d_inner + d_state:d_inner + 2 * d_state]               # (BL, N)

    # ---- hoisted scan coefficients, batch lane-packed: (L, N, nbatch*Din) ----
    a_t = at_ref[...]                                                    # (N, Din)
    for b in range(nbatch):
        rows = slice(b * seqlen, (b + 1) * seqlen)
        lanes = slice(b * d_inner, (b + 1) * d_inner)
        dt_b = dt[rows, :]                                               # (L, Din)
        da_s[:, :, lanes] = jnp.exp(dt_b[:, None, :] * a_t[None, :, :])  # (L, N, Din)
        dtu_b = dt_b * u[rows, :]
        bu_s[:, :, lanes] = bmat[rows, :][:, :, None] * dtu_b[:, None, :]

    # ---- selective scan: one lane-dense FMA + one aligned store per step ----
    def scan_body(t, h):
        h = da_s[t] * h + bu_s[t]
        h_s[t] = h
        return h

    lax.fori_loop(0, seqlen, scan_body,
                  jnp.zeros((d_state, nbatch * d_inner), jnp.float32),
                  unroll=True)

    # ---- batched C readout (off the serial path): sublane reduce over N ----
    ys = []
    for b in range(nbatch):
        rows = slice(b * seqlen, (b + 1) * seqlen)
        lanes = slice(b * d_inner, (b + 1) * d_inner)
        ys.append(jnp.sum(cmat[rows, :][:, :, None] * h_s[:, :, lanes], axis=1))
    y = jnp.concatenate(ys, axis=0)                                      # (BL, Din)

    # ---- D skip + SiLU(z) gate + out_proj ----
    y = (y + u * dd_ref[...]) * _silu(z)
    out = jnp.dot(y, wo_ref[...], preferred_element_type=jnp.float32)    # (BL, Dm)

    if final_norm:
        # fused final add + norm_f epilogue (last layer only)
        fo_ref[...] = _layernorm(out + resid, nfw_ref[...], nfb_ref[...],
                                 eps).astype(fo_ref.dtype)
    else:
        ho_ref[...] = out.astype(ho_ref.dtype)
        ro_ref[...] = resid.astype(ro_ref.dtype)


# ------------------------------- wrappers -------------------------------

def mamba_layer(hidden, residual, lp, nbatch, seqlen, final_norm=False, norm_f=None):
    """Fused Mamba block on (B*L, D_MODEL) rows.

    Returns (new_hidden, new_residual), or the final normed output when
    final_norm=True (the norm_f epilogue is fused into the last block).
    """
    bl, d_model = hidden.shape
    d_state, d_inner = lp['A_T'].shape

    inputs = [hidden, residual,
              lp['norm_w'].reshape(1, d_model), lp['norm_b'].reshape(1, d_model),
              lp['in_proj_w_t'],
              lp['conv_w_t'], lp['conv_b'].reshape(1, d_inner),
              lp['x_all_w_t'], lp['dt_proj_b'].reshape(1, d_inner),
              lp['A_T'], lp['D'].reshape(1, d_inner),
              lp['out_proj_w_t']]
    if final_norm:
        inputs += [norm_f[0].reshape(1, d_model), norm_f[1].reshape(1, d_model)]
        out_shape = jax.ShapeDtypeStruct((bl, d_model), jnp.float32)
        aliases = {0: 0}                      # final output reuses hidden's buffer
    else:
        out_shape = (jax.ShapeDtypeStruct((bl, d_model), jnp.float32),
                     jax.ShapeDtypeStruct((bl, d_model), jnp.float32))
        aliases = {0: 0, 1: 1}                # reuse hidden + residual buffers

    scratch = [pltpu.VMEM((seqlen, d_state, nbatch * d_inner), jnp.float32)
               for _ in range(3)]             # dA, B*dt*u, h history (lane-packed)

    return pl.pallas_call(
        partial(_mamba_layer_kernel, nbatch=nbatch, seqlen=seqlen, eps=EPS,
                final_norm=final_norm),
        out_shape=out_shape,
        scratch_shapes=scratch,
        input_output_aliases=aliases,
    )(*inputs)


def mixer_model_forward(input_ids, params):
    nbatch, seqlen = input_ids.shape
    hidden = jnp.take(params['embedding'], input_ids, axis=0)            # glue gather
    hidden = hidden.reshape(nbatch * seqlen, D_MODEL)
    residual = jnp.zeros_like(hidden)         # layer 0: residual=None -> hidden + 0
    n = len(params['layers'])
    out = None
    for i, lp in enumerate(params['layers']):
        if i == n - 1:
            out = mamba_layer(hidden, residual, lp, nbatch, seqlen,
                              final_norm=True,
                              norm_f=(params['norm_f_w'], params['norm_f_b']))
        else:
            hidden, residual = mamba_layer(hidden, residual, lp, nbatch, seqlen)
    return out.reshape(nbatch, seqlen, D_MODEL)


# -------------------- pure-JAX reference (validation only) --------------------

def mixer_model_reference(input_ids, params):
    nb, sl = input_ids.shape
    hidden = jnp.take(params['embedding'], input_ids, axis=0)            # (B, L, Dm)
    residual = None
    for lp in params['layers']:
        residual = hidden + residual if residual is not None else hidden
        hn = _layernorm(residual, lp['norm_w'], lp['norm_b'], EPS)
        xz = hn @ lp['in_proj_w_t']
        x, z = xz[..., :D_INNER], xz[..., D_INNER:]
        xp = jnp.pad(x, ((0, 0), (D_CONV - 1, 0), (0, 0)))
        conv = lp['conv_b'] + sum(lp['conv_w_t'][kk] * xp[:, kk:kk + sl, :]
                                  for kk in range(D_CONV))
        u = _silu(conv)
        dbc = u @ lp['x_all_w_t']
        dt = _softplus(dbc[..., :D_INNER] + lp['dt_proj_b'])
        Bm = dbc[..., D_INNER:D_INNER + D_STATE]
        Cm = dbc[..., D_INNER + D_STATE:D_INNER + 2 * D_STATE]
        A = lp['A_T'].T                                                  # (Din, N)

        def step(h, xs):
            dt_t, u_t, b_t, c_t = xs
            h = jnp.exp(dt_t[..., None] * A) * h \
                + (dt_t * u_t)[..., None] * b_t[:, None, :]
            return h, jnp.einsum('bdn,bn->bd', h, c_t)

        h0 = jnp.zeros((nb, D_INNER, D_STATE), jnp.float32)
        _, ys = lax.scan(step, h0, (dt.transpose(1, 0, 2), u.transpose(1, 0, 2),
                                    Bm.transpose(1, 0, 2), Cm.transpose(1, 0, 2)))
        y = ys.transpose(1, 0, 2)
        y = (y + u * lp['D']) * _silu(z)
        hidden = y @ lp['out_proj_w_t']
    residual = hidden + residual
    return _layernorm(residual, params['norm_f_w'], params['norm_f_b'], EPS)


# -------------------------- deterministic parameter init --------------------------

def init_params(key):
    keys = jax.random.split(key, 1 + N_LAYER)
    params = {'embedding': 0.02 * jax.random.normal(keys[0], (VOCAB, D_MODEL),
                                                    jnp.float32)}
    layers = []
    for i in range(N_LAYER):
        k = jax.random.split(keys[1 + i], 8)
        lp = {}
        lp['norm_w'] = jnp.ones((D_MODEL,), jnp.float32)
        lp['norm_b'] = jnp.zeros((D_MODEL,), jnp.float32)
        # weights stored pre-transposed as (in_features, out_features)
        lp['in_proj_w_t'] = (jax.random.normal(k[0], (D_MODEL, 2 * D_INNER)) /
                             math.sqrt(D_MODEL))
        lp['conv_w_t'] = jax.random.normal(k[1], (D_CONV, D_INNER)) / math.sqrt(D_CONV)
        lp['conv_b'] = 0.1 * jax.random.normal(k[2], (D_INNER,))
        x_proj = (jax.random.normal(k[3], (D_INNER, DT_RANK + 2 * D_STATE)) /
                  math.sqrt(D_INNER))
        dt_proj_w_t = jax.random.normal(k[4], (DT_RANK, D_INNER)) * (DT_RANK ** -0.5)
        # fuse x_proj's dt slice with dt_proj (bias-free in between) -> (Din, Din);
        # pack [dt | B | C | zero-pad] into one lane-dense (Din, 128) weight
        dt_w_full = x_proj[:, :DT_RANK] @ dt_proj_w_t
        pad = (-(D_INNER + 2 * D_STATE)) % LANE
        lp['x_all_w_t'] = jnp.concatenate(
            [dt_w_full, x_proj[:, DT_RANK:], jnp.zeros((D_INNER, pad))], axis=1)
        # dt bias = inverse-softplus of dt ~ exp(U(log 1e-3, log 1e-1)), floored 1e-4
        dt = jnp.exp(jax.random.uniform(k[5], (D_INNER,)) *
                     (math.log(0.1) - math.log(0.001)) + math.log(0.001))
        dt = jnp.maximum(dt, 1e-4)
        lp['dt_proj_b'] = dt + jnp.log(-jnp.expm1(-dt))
        # A = -exp(A_log), A_log = log(arange(1..d_state)); stored transposed (N, Din)
        A = jnp.tile(jnp.arange(1, D_STATE + 1, dtype=jnp.float32)[None, :],
                     (D_INNER, 1))
        lp['A_T'] = (-A).T
        lp['D'] = jnp.ones((D_INNER,), jnp.float32)
        # out_proj rescaled by 1/sqrt(n_layer) (rescale_prenorm_residual)
        lp['out_proj_w_t'] = (jax.random.normal(k[6], (D_INNER, D_MODEL)) /
                              math.sqrt(D_INNER) / math.sqrt(N_LAYER))
        layers.append(jax.tree.map(lambda a: jnp.asarray(a, jnp.float32), lp))
    params['layers'] = layers
    params['norm_f_w'] = jnp.ones((D_MODEL,), jnp.float32)
    params['norm_f_b'] = jnp.zeros((D_MODEL,), jnp.float32)
    return params


if __name__ == "__main__":
    key = jax.random.PRNGKey(0)
    pkey, ikey = jax.random.split(key)
    params = init_params(pkey)
    input_ids = jax.random.randint(ikey, (2, 8), 0, VOCAB, dtype=jnp.int32)  # (B, L)

    out = jax.jit(mixer_model_forward)(input_ids, params)
    jax.block_until_ready(out)
    assert out.shape == (2, 8, D_MODEL) and out.dtype == jnp.float32
    assert bool(jnp.all(jnp.isfinite(out)))

    # sanity check against a pure-JAX reference (loose tol: default matmul precision)
    ref = jax.jit(mixer_model_reference)(input_ids, params)
    err = float(jnp.max(jnp.abs(out - ref)))
    assert err < 1e-1, f"mismatch vs reference: {err}"

    print("KERNEL_OK")
</pallas_src>

<mosaic_0001>
module attributes {stable_mosaic.version = 11 : i64} {
  func.func @_mamba_layer_kernel(%arg0: memref<16x32xf32, #tpu.memory_space<vmem>>, %arg1: memref<16x32xf32, #tpu.memory_space<vmem>>, %arg2: memref<1x32xf32, #tpu.memory_space<vmem>>, %arg3: memref<1x32xf32, #tpu.memory_space<vmem>>, %arg4: memref<32x128xf32, #tpu.memory_space<vmem>>, %arg5: memref<4x64xf32, #tpu.memory_space<vmem>>, %arg6: memref<1x64xf32, #tpu.memory_space<vmem>>, %arg7: memref<64x128xf32, #tpu.memory_space<vmem>>, %arg8: memref<1x64xf32, #tpu.memory_space<vmem>>, %arg9: memref<16x64xf32, #tpu.memory_space<vmem>>, %arg10: memref<1x64xf32, #tpu.memory_space<vmem>>, %arg11: memref<64x32xf32, #tpu.memory_space<vmem>>, %arg12: memref<16x32xf32, #tpu.memory_space<vmem>>, %arg13: memref<16x32xf32, #tpu.memory_space<vmem>>, %arg14: memref<8x16x128xf32, #tpu.memory_space<vmem>>, %arg15: memref<8x16x128xf32, #tpu.memory_space<vmem>>, %arg16: memref<8x16x128xf32, #tpu.memory_space<vmem>>) attributes {dimension_semantics = [], scalar_prefetch = 0 : i64, scratch_operands = 3 : i64, tpu.core_type = #tpu.core_type<tc>} {
    %c0 = arith.constant 0 : index
    %c0_0 = arith.constant 0 : index
    %0 = vector.load %arg0[%c0, %c0_0] : memref<16x32xf32, #tpu.memory_space<vmem>>, vector<16x32xf32>
    %c0_1 = arith.constant 0 : index
    %c0_2 = arith.constant 0 : index
    %1 = vector.load %arg1[%c0_1, %c0_2] : memref<16x32xf32, #tpu.memory_space<vmem>>, vector<16x32xf32>
    %2 = arith.addf %0, %1 : vector<16x32xf32>
    %c0_3 = arith.constant 0 : index
    %c0_4 = arith.constant 0 : index
    %3 = vector.load %arg2[%c0_3, %c0_4] : memref<1x32xf32, #tpu.memory_space<vmem>>, vector<1x32xf32>
    %c0_5 = arith.constant 0 : index
    %c0_6 = arith.constant 0 : index
    %4 = vector.load %arg3[%c0_5, %c0_6] : memref<1x32xf32, #tpu.memory_space<vmem>>, vector<1x32xf32>
    %cst = arith.constant dense<0.000000e+00> : vector<16xf32>
    %5 = vector.multi_reduction <add>, %2, %cst [1] : vector<16x32xf32> to vector<16xf32>
    %6 = vector.shape_cast %5 : vector<16xf32> to vector<16x1xf32>
    %cst_7 = arith.constant 3.200000e+01 : f32
    %7 = vector.broadcast %cst_7 : f32 to vector<16x1xf32>
    %8 = arith.divf %6, %7 : vector<16x1xf32>
    %9 = vector.broadcast %8 : vector<16x1xf32> to vector<16x32xf32>
    %10 = arith.subf %2, %9 : vector<16x32xf32>
    %11 = arith.mulf %10, %10 : vector<16x32xf32>
    %cst_8 = arith.constant dense<0.000000e+00> : vector<16xf32>
    %12 = vector.multi_reduction <add>, %11, %cst_8 [1] : vector<16x32xf32> to vector<16xf32>
    %13 = vector.shape_cast %12 : vector<16xf32> to vector<16x1xf32>
    %cst_9 = arith.constant 3.200000e+01 : f32
    %14 = vector.broadcast %cst_9 : f32 to vector<16x1xf32>
    %15 = arith.divf %13, %14 : vector<16x1xf32>
    %cst_10 = arith.constant 9.99999974E-6 : f32
    %16 = vector.broadcast %cst_10 : f32 to vector<16x1xf32>
    %17 = arith.addf %15, %16 : vector<16x1xf32>
    %18 = math.rsqrt %17 : vector<16x1xf32>
    %19 = vector.broadcast %18 : vector<16x1xf32> to vector<16x32xf32>
    %20 = arith.mulf %10, %19 : vector<16x32xf32>
    %21 = vector.broadcast %3 : vector<1x32xf32> to vector<16x32xf32>
    %22 = arith.mulf %20, %21 : vector<16x32xf32>
    %23 = vector.broadcast %4 : vector<1x32xf32> to vector<16x32xf32>
    %24 = arith.addf %22, %23 : vector<16x32xf32>
    %c0_11 = arith.constant 0 : index
    %c0_12 = arith.constant 0 : index
    %25 = vector.load %arg4[%c0_11, %c0_12] : memref<32x128xf32, #tpu.memory_space<vmem>>, vector<32x128xf32>
    %cst_13 = arith.constant dense<0.000000e+00> : vector<16x128xf32>
    %26 = tpu.matmul %24, %25, %cst_13 {dimension_numbers = #tpu.dot_dimension_numbers<[1], [0], [0], [1], [0, 0, 1, 1], [], []>} : vector<16x32xf32>, vector<32x128xf32>, vector<16x128xf32> -> vector<16x128xf32>
    %27 = vector.extract_strided_slice %26 {offsets = [0, 0], sizes = [16, 64], strides = [1, 1]} : vector<16x128xf32> to vector<16x64xf32>
    %28 = vector.extract_strided_slice %26 {offsets = [0, 64], sizes = [16, 64], strides = [1, 1]} : vector<16x128xf32> to vector<16x64xf32>
    %29 = tpu.iota {dimensions = array<i32: 1>} : vector<2x8x64xi32>
    %30 = vector.shape_cast %29 : vector<2x8x64xi32> to vector<16x64xi32>
    %c0_14 = arith.constant 0 : index
    %c0_15 = arith.constant 0 : index
    %31 = vector.load %arg6[%c0_14, %c0_15] : memref<1x64xf32, #tpu.memory_space<vmem>>, vector<1x64xf32>
    %c3 = arith.constant 3 : index
    %c0_16 = arith.constant 0 : index
    %32 = vector.load %arg5[%c3, %c0_16] : memref<4x64xf32, #tpu.memory_space<vmem>>, vector<1x64xf32>
    %33 = vector.broadcast %32 : vector<1x64xf32> to vector<16x64xf32>
    %34 = arith.mulf %27, %33 : vector<16x64xf32>
    %35 = vector.broadcast %31 : vector<1x64xf32> to vector<16x64xf32>
    %36 = arith.addf %35, %34 : vector<16x64xf32>
    %cst_17 = arith.constant 0.000000e+00 : f32
    %37 = vector.broadcast %cst_17 : f32 to vector<3x64xf32>
    %38 = vector.extract_strided_slice %27 {offsets = [0, 0], sizes = [13, 64], strides = [1, 1]} : vector<16x64xf32> to vector<13x64xf32>
    %39 = tpu.concatenate %37, %38 in 0 : vector<3x64xf32>, vector<13x64xf32> -> vector<16x64xf32>
    %c3_i32 = arith.constant 3 : i32
    %40 = vector.broadcast %c3_i32 : i32 to vector<16x64xi32>
    %41 = arith.cmpi sge, %30, %40 : vector<16x64xi32>
    %cst_18 = arith.constant 0.000000e+00 : f32
    %42 = vector.broadcast %cst_18 : f32 to vector<16x64xf32>
    %43 = arith.select %41, %39, %42 : vector<16x64xi1>, vector<16x64xf32>
    %c0_19 = arith.constant 0 : index
    %c0_20 = arith.constant 0 : index
    %44 = vector.load %arg5[%c0_19, %c0_20] : memref<4x64xf32, #tpu.memory_space<vmem>>, vector<1x64xf32>
    %45 = vector.broadcast %44 : vector<1x64xf32> to vector<16x64xf32>
    %46 = arith.mulf %45, %43 : vector<16x64xf32>
    %47 = arith.addf %36, %46 : vector<16x64xf32>
    %cst_21 = arith.constant 0.000000e+00 : f32
    %48 = vector.broadcast %cst_21 : f32 to vector<2x64xf32>
    %49 = vector.extract_strided_slice %27 {offsets = [0, 0], sizes = [14, 64], strides = [1, 1]} : vector<16x64xf32> to vector<14x64xf32>
    %50 = tpu.concatenate %48, %49 in 0 : vector<2x64xf32>, vector<14x64xf32> -> vector<16x64xf32>
    %c2_i32 = arith.constant 2 : i32
    %51 = vector.broadcast %c2_i32 : i32 to vector<16x64xi32>
    %52 = arith.cmpi sge, %30, %51 : vector<16x64xi32>
    %cst_22 = arith.constant 0.000000e+00 : f32
    %53 = vector.broadcast %cst_22 : f32 to vector<16x64xf32>
    %54 = arith.select %52, %50, %53 : vector<16x64xi1>, vector<16x64xf32>
    %c1 = arith.constant 1 : index
    %c0_23 = arith.constant 0 : index
    %55 = vector.load %arg5[%c1, %c0_23] : memref<4x64xf32, #tpu.memory_space<vmem>>, vector<1x64xf32>
    %56 = vector.broadcast %55 : vector<1x64xf32> to vector<16x64xf32>
    %57 = arith.mulf %56, %54 : vector<16x64xf32>
    %58 = arith.addf %47, %57 : vector<16x64xf32>
    %cst_24 = arith.constant 0.000000e+00 : f32
    %59 = vector.broadcast %cst_24 : f32 to vector<1x64xf32>
    %60 = vector.extract_strided_slice %27 {offsets = [0, 0], sizes = [15, 64], strides = [1, 1]} : vector<16x64xf32> to vector<15x64xf32>
    %61 = tpu.concatenate %59, %60 in 0 : vector<1x64xf32>, vector<15x64xf32> -> vector<16x64xf32>
    %c1_i32 = arith.constant 1 : i32
    %62 = vector.broadcast %c1_i32 : i32 to vector<16x64xi32>
    %63 = arith.cmpi sge, %30, %62 : vector<16x64xi32>
    %cst_25 = arith.constant 0.000000e+00 : f32
    %64 = vector.broadcast %cst_25 : f32 to vector<16x64xf32>
    %65 = arith.select %63, %61, %64 : vector<16x64xi1>, vector<16x64xf32>
    %c2 = arith.constant 2 : index
    %c0_26 = arith.constant 0 : index
    %66 = vector.load %arg5[%c2, %c0_26] : memref<4x64xf32, #tpu.memory_space<vmem>>, vector<1x64xf32>
    %67 = vector.broadcast %66 : vector<1x64xf32> to vector<16x64xf32>
    %68 = arith.mulf %67, %65 : vector<16x64xf32>
    %69 = arith.addf %58, %68 : vector<16x64xf32>
    %70 = arith.negf %69 : vector<16x64xf32>
    %71 = math.exp %70 : vector<16x64xf32>
    %cst_27 = arith.constant 1.000000e+00 : f32
    %72 = vector.broadcast %cst_27 : f32 to vector<16x64xf32>
    %73 = arith.addf %72, %71 : vector<16x64xf32>
    %74 = arith.divf %72, %73 : vector<16x64xf32>
    %75 = arith.mulf %69, %74 : vector<16x64xf32>
    %c0_28 = arith.constant 0 : index
    %c0_29 = arith.constant 0 : index
    %76 = vector.load %arg7[%c0_28, %c0_29] : memref<64x128xf32, #tpu.memory_space<vmem>>, vector<64x128xf32>
    %cst_30 = arith.constant dense<0.000000e+00> : vector<16x128xf32>
    %77 = tpu.matmul %75, %76, %cst_30 {dimension_numbers = #tpu.dot_dimension_numbers<[1], [0], [0], [1], [0, 0, 1, 1], [], []>} : vector<16x64xf32>, vector<64x128xf32>, vector<16x128xf32> -> vector<16x128xf32>
    %78 = vector.extract_strided_slice %77 {offsets = [0, 0], sizes = [16, 64], strides = [1, 1]} : vector<16x128xf32> to vector<16x64xf32>
    %c0_31 = arith.constant 0 : index
    %c0_32 = arith.constant 0 : index
    %79 = vector.load %arg8[%c0_31, %c0_32] : memref<1x64xf32, #tpu.memory_space<vmem>>, vector<1x64xf32>
    %80 = vector.broadcast %79 : vector<1x64xf32> to vector<16x64xf32>
    %81 = arith.addf %78, %80 : vector<16x64xf32>
    %cst_33 = arith.constant 2.000000e+01 : f32
    %82 = vector.broadcast %cst_33 : f32 to vector<16x64xf32>
    %83 = arith.cmpf ogt, %81, %82 : vector<16x64xf32>
    %cst_34 = arith.constant 2.000000e+01 : f32
    %84 = vector.broadcast %cst_34 : f32 to vector<16x64xf32>
    %85 = arith.minimumf %81, %84 : vector<16x64xf32>
    %86 = math.exp %85 : vector<16x64xf32>
    %87 = math.log1p %86 : vector<16x64xf32>
    %88 = arith.select %83, %81, %87 : vector<16x64xi1>, vector<16x64xf32>
    %89 = vector.extract_strided_slice %77 {offsets = [0, 64], sizes = [16, 16], strides = [1, 1]} : vector<16x128xf32> to vector<16x16xf32>
    %90 = vector.extract_strided_slice %77 {offsets = [0, 80], sizes = [16, 16], strides = [1, 1]} : vector<16x128xf32> to vector<16x16xf32>
    %c0_35 = arith.constant 0 : index
    %c0_36 = arith.constant 0 : index
    %91 = vector.load %arg9[%c0_35, %c0_36] : memref<16x64xf32, #tpu.memory_space<vmem>>, vector<16x64xf32>
    %92 = vector.extract_strided_slice %88 {offsets = [0, 0], sizes = [8, 64], strides = [1, 1]} : vector<16x64xf32> to vector<8x64xf32>
    %93 = vector.shape_cast %92 : vector<8x64xf32> to vector<8x1x64xf32>
    %94 = vector.shape_cast %91 : vector<16x64xf32> to vector<1x16x64xf32>
    %95 = vector.broadcast %93 : vector<8x1x64xf32> to vector<8x16x64xf32>
    %96 = vector.broadcast %94 : vector<1x16x64xf32> to vector<8x16x64xf32>
    %97 = arith.mulf %95, %96 : vector<8x16x64xf32>
    %98 = math.exp %97 : vector<8x16x64xf32>
    %c0_37 = arith.constant 0 : index
    %c0_38 = arith.constant 0 : index
    %c0_39 = arith.constant 0 : index
    %99 = vector.load %arg14[%c0_37, %c0_38, %c0_39] : memref<8x16x128xf32, #tpu.memory_space<vmem>>, vector<8x16x64xf32>
    tpu.vector_store %arg14[%c0_37, %c0_38, %c0_39], %98 {strides = array<i32>} : memref<8x16x128xf32, #tpu.memory_space<vmem>>, vector<8x16x64xf32>,
    %100 = vector.extract_strided_slice %75 {offsets = [0, 0], sizes = [8, 64], strides = [1, 1]} : vector<16x64xf32> to vector<8x64xf32>
    %101 = arith.mulf %92, %100 : vector<8x64xf32>
    %102 = vector.extract_strided_slice %89 {offsets = [0, 0], sizes = [8, 16], strides = [1, 1]} : vector<16x16xf32> to vector<8x16xf32>
    %103 = vector.shape_cast %102 : vector<8x16xf32> to vector<8x16x1xf32>
    %104 = vector.shape_cast %101 : vector<8x64xf32> to vector<8x1x64xf32>
    %105 = vector.broadcast %103 : vector<8x16x1xf32> to vector<8x16x64xf32>
    %106 = vector.broadcast %104 : vector<8x1x64xf32> to vector<8x16x64xf32>
    %107 = arith.mulf %105, %106 : vector<8x16x64xf32>
    %c0_40 = arith.constant 0 : index
    %c0_41 = arith.constant 0 : index
    %c0_42 = arith.constant 0 : index
    %108 = vector.load %arg15[%c0_40, %c0_41, %c0_42] : memref<8x16x128xf32, #tpu.memory_space<vmem>>, vector<8x16x64xf32>
    tpu.vector_store %arg15[%c0_40, %c0_41, %c0_42], %107 {strides = array<i32>} : memref<8x16x128xf32, #tpu.memory_space<vmem>>, vector<8x16x64xf32>,
    %109 = vector.extract_strided_slice %88 {offsets = [8, 0], sizes = [8, 64], strides = [1, 1]} : vector<16x64xf32> to vector<8x64xf32>
    %110 = vector.shape_cast %109 : vector<8x64xf32> to vector<8x1x64xf32>
    %111 = vector.shape_cast %91 : vector<16x64xf32> to vector<1x16x64xf32>
    %112 = vector.broadcast %110 : vector<8x1x64xf32> to vector<8x16x64xf32>
    %113 = vector.broadcast %111 : vector<1x16x64xf32> to vector<8x16x64xf32>
    %114 = arith.mulf %112, %113 : vector<8x16x64xf32>
    %115 = math.exp %114 : vector<8x16x64xf32>
    %c0_43 = arith.constant 0 : index
    %c0_44 = arith.constant 0 : index
    %c64 = arith.constant 64 : index
    %116 = vector.load %arg14[%c0_43, %c0_44, %c64] : memref<8x16x128xf32, #tpu.memory_space<vmem>>, vector<8x16x64xf32>
    tpu.vector_store %arg14[%c0_43, %c0_44, %c64], %115 {strides = array<i32>} : memref<8x16x128xf32, #tpu.memory_space<vmem>>, vector<8x16x64xf32>,
    %117 = vector.extract_strided_slice %75 {offsets = [8, 0], sizes = [8, 64], strides = [1, 1]} : vector<16x64xf32> to vector<8x64xf32>
    %118 = arith.mulf %109, %117 : vector<8x64xf32>
    %119 = vector.extract_strided_slice %89 {offsets = [8, 0], sizes = [8, 16], strides = [1, 1]} : vector<16x16xf32> to vector<8x16xf32>
    %120 = vector.shape_cast %119 : vector<8x16xf32> to vector<8x16x1xf32>
    %121 = vector.shape_cast %118 : vector<8x64xf32> to vector<8x1x64xf32>
    %122 = vector.broadcast %120 : vector<8x16x1xf32> to vector<8x16x64xf32>
    %123 = vector.broadcast %121 : vector<8x1x64xf32> to vector<8x16x64xf32>
    %124 = arith.mulf %122, %123 : vector<8x16x64xf32>
    %c0_45 = arith.constant 0 : index
    %c0_46 = arith.constant 0 : index
    %c64_47 = arith.constant 64 : index
    %125 = vector.load %arg15[%c0_45, %c0_46, %c64_47] : memref<8x16x128xf32, #tpu.memory_space<vmem>>, vector<8x16x64xf32>
    tpu.vector_store %arg15[%c0_45, %c0_46, %c64_47], %124 {strides = array<i32>} : memref<8x16x128xf32, #tpu.memory_space<vmem>>, vector<8x16x64xf32>,
    %cst_48 = arith.constant 0.000000e+00 : f32
    %126 = vector.broadcast %cst_48 : f32 to vector<16x128xf32>
    %c0_i32 = arith.constant 0 : i32
    %127 = arith.index_cast %c0_i32 : i32 to index
    %c0_49 = arith.constant 0 : index
    %c0_50 = arith.constant 0 : index
    %128 = vector.load %arg14[%127, %c0_49, %c0_50] : memref<8x16x128xf32, #tpu.memory_space<vmem>>, vector<1x16x128xf32>
    %129 = vector.shape_cast %128 : vector<1x16x128xf32> to vector<16x128xf32>
    %130 = arith.mulf %129, %126 : vector<16x128xf32>
    %131 = arith.index_cast %c0_i32 : i32 to index
    %c0_51 = arith.constant 0 : index
    %c0_52 = arith.constant 0 : index
    %132 = vector.load %arg15[%131, %c0_51, %c0_52] : memref<8x16x128xf32, #tpu.memory_space<vmem>>, vector<1x16x128xf32>
    %133 = vector.shape_cast %132 : vector<1x16x128xf32> to vector<16x128xf32>
    %134 = arith.addf %130, %133 : vector<16x128xf32>
    %135 = arith.index_cast %c0_i32 : i32 to index
    %c0_53 = arith.constant 0 : index
    %c0_54 = arith.constant 0 : index
    %136 = vector.load %arg16[%135, %c0_53, %c0_54] : memref<8x16x128xf32, #tpu.memory_space<vmem>>, vector<1x16x128xf32>
    %137 = vector.shape_cast %136 : vector<1x16x128xf32> to vector<16x128xf32>
    %138 = vector.shape_cast %134 : vector<16x128xf32> to vector<1x16x128xf32>
    tpu.vector_store %arg16[%135, %c0_53, %c0_54], %138 {strides = array<i32>} : memref<8x16x128xf32, #tpu.memory_space<vmem>>, vector<1x16x128xf32>,
    %c1_i32_55 = arith.constant 1 : i32
    %139 = arith.index_cast %c1_i32_55 : i32 to index
    %c0_56 = arith.constant 0 : index
    %c0_57 = arith.constant 0 : index
    %140 = vector.load %arg14[%139, %c0_56, %c0_57] : memref<8x16x128xf32, #tpu.memory_space<vmem>>, vector<1x16x128xf32>
    %141 = vector.shape_cast %140 : vector<1x16x128xf32> to vector<16x128xf32>
    %142 = arith.mulf %141, %134 : vector<16x128xf32>
    %143 = arith.index_cast %c1_i32_55 : i32 to index
    %c0_58 = arith.constant 0 : index
    %c0_59 = arith.constant 0 : index
    %144 = vector.load %arg15[%143, %c0_58, %c0_59] : memref<8x16x128xf32, #tpu.memory_space<vmem>>, vector<1x16x128xf32>
    %145 = vector.shape_cast %144 : vector<1x16x128xf32> to vector<16x128xf32>
    %146 = arith.addf %142, %145 : vector<16x128xf32>
    %147 = arith.index_cast %c1_i32_55 : i32 to index
    %c0_60 = arith.constant 0 : index
    %c0_61 = arith.constant 0 : index
    %148 = vector.load %arg16[%147, %c0_60, %c0_61] : memref<8x16x128xf32, #tpu.memory_space<vmem>>, vector<1x16x128xf32>
    %149 = vector.shape_cast %148 : vector<1x16x128xf32> to vector<16x128xf32>
    %150 = vector.shape_cast %146 : vector<16x128xf32> to vector<1x16x128xf32>
    tpu.vector_store %arg16[%147, %c0_60, %c0_61], %150 {strides = array<i32>} : memref<8x16x128xf32, #tpu.memory_space<vmem>>, vector<1x16x128xf32>,
    %c2_i32_62 = arith.constant 2 : i32
    %151 = arith.index_cast %c2_i32_62 : i32 to index
    %c0_63 = arith.constant 0 : index
    %c0_64 = arith.constant 0 : index
    %152 = vector.load %arg14[%151, %c0_63, %c0_64] : memref<8x16x128xf32, #tpu.memory_space<vmem>>, vector<1x16x128xf32>
    %153 = vector.shape_cast %152 : vector<1x16x128xf32> to vector<16x128xf32>
    %154 = arith.mulf %153, %146 : vector<16x128xf32>
    %155 = arith.index_cast %c2_i32_62 : i32 to index
    %c0_65 = arith.constant 0 : index
    %c0_66 = arith.constant 0 : index
    %156 = vector.load %arg15[%155, %c0_65, %c0_66] : memref<8x16x128xf32, #tpu.memory_space<vmem>>, vector<1x16x128xf32>
    %157 = vector.shape_cast %156 : vector<1x16x128xf32> to vector<16x128xf32>
    %158 = arith.addf %154, %157 : vector<16x128xf32>
    %159 = arith.index_cast %c2_i32_62 : i32 to index
    %c0_67 = arith.constant 0 : index
    %c0_68 = arith.constant 0 : index
    %160 = vector.load %arg16[%159, %c0_67, %c0_68] : memref<8x16x128xf32, #tpu.memory_space<vmem>>, vector<1x16x128xf32>
    %161 = vector.shape_cast %160 : vector<1x16x128xf32> to vector<16x128xf32>
    %162 = vector.shape_cast %158 : vector<16x128xf32> to vector<1x16x128xf32>
    tpu.vector_store %arg16[%159, %c0_67, %c0_68], %162 {strides = array<i32>} : memref<8x16x128xf32, #tpu.memory_space<vmem>>, vector<1x16x128xf32>,
    %c3_i32_69 = arith.constant 3 : i32
    %163 = arith.index_cast %c3_i32_69 : i32 to index
    %c0_70 = arith.constant 0 : index
    %c0_71 = arith.constant 0 : index
    %164 = vector.load %arg14[%163, %c0_70, %c0_71] : memref<8x16x128xf32, #tpu.memory_space<vmem>>, vector<1x16x128xf32>
    %165 = vector.shape_cast %164 : vector<1x16x128xf32> to vector<16x128xf32>
    %166 = arith.mulf %165, %158 : vector<16x128xf32>
    %167 = arith.index_cast %c3_i32_69 : i32 to index
    %c0_72 = arith.constant 0 : index
    %c0_73 = arith.constant 0 : index
    %168 = vector.load %arg15[%167, %c0_72, %c0_73] : memref<8x16x128xf32, #tpu.memory_space<vmem>>, vector<1x16x128xf32>
    %169 = vector.shape_cast %168 : vector<1x16x128xf32> to vector<16x128xf32>
    %170 = arith.addf %166, %169 : vector<16x128xf32>
    %171 = arith.index_cast %c3_i32_69 : i32 to index
    %c0_74 = arith.constant 0 : index
    %c0_75 = arith.constant 0 : index
    %172 = vector.load %arg16[%171, %c0_74, %c0_75] : memref<8x16x128xf32, #tpu.memory_space<vmem>>, vector<1x16x128xf32>
    %173 = vector.shape_cast %172 : vector<1x16x128xf32> to vector<16x128xf32>
    %174 = vector.shape_cast %170 : vector<16x128xf32> to vector<1x16x128xf32>
    tpu.vector_store %arg16[%171, %c0_74, %c0_75], %174 {strides = array<i32>} : memref<8x16x128xf32, #tpu.memory_space<vmem>>, vector<1x16x128xf32>,
    %c4_i32 = arith.constant 4 : i32
    %175 = arith.index_cast %c4_i32 : i32 to index
    %c0_76 = arith.constant 0 : index
    %c0_77 = arith.constant 0 : index
    %176 = vector.load %arg14[%175, %c0_76, %c0_77] : memref<8x16x128xf32, #tpu.memory_space<vmem>>, vector<1x16x128xf32>
    %177 = vector.shape_cast %176 : vector<1x16x128xf32> to vector<16x128xf32>
    %178 = arith.mulf %177, %170 : vector<16x128xf32>
    %179 = arith.index_cast %c4_i32 : i32 to index
    %c0_78 = arith.constant 0 : index
    %c0_79 = arith.constant 0 : index
    %180 = vector.load %arg15[%179, %c0_78, %c0_79] : memref<8x16x128xf32, #tpu.memory_space<vmem>>, vector<1x16x128xf32>
    %181 = vector.shape_cast %180 : vector<1x16x128xf32> to vector<16x128xf32>
    %182 = arith.addf %178, %181 : vector<16x128xf32>
    %183 = arith.index_cast %c4_i32 : i32 to index
    %c0_80 = arith.constant 0 : index
    %c0_81 = arith.constant 0 : index
    %184 = vector.load %arg16[%183, %c0_80, %c0_81] : memref<8x16x128xf32, #tpu.memory_space<vmem>>, vector<1x16x128xf32>
    %185 = vector.shape_cast %184 : vector<1x16x128xf32> to vector<16x128xf32>
    %186 = vector.shape_cast %182 : vector<16x128xf32> to vector<1x16x128xf32>
    tpu.vector_store %arg16[%183, %c0_80, %c0_81], %186 {strides = array<i32>} : memref<8x16x128xf32, #tpu.memory_space<vmem>>, vector<1x16x128xf32>,
    %c5_i32 = arith.constant 5 : i32
    %187 = arith.index_cast %c5_i32 : i32 to index
    %c0_82 = arith.constant 0 : index
    %c0_83 = arith.constant 0 : index
    %188 = vector.load %arg14[%187, %c0_82, %c0_83] : memref<8x16x128xf32, #tpu.memory_space<vmem>>, vector<1x16x128xf32>
    %189 = vector.shape_cast %188 : vector<1x16x128xf32> to vector<16x128xf32>
    %190 = arith.mulf %189, %182 : vector<16x128xf32>
    %191 = arith.index_cast %c5_i32 : i32 to index
    %c0_84 = arith.constant 0 : index
    %c0_85 = arith.constant 0 : index
    %192 = vector.load %arg15[%191, %c0_84, %c0_85] : memref<8x16x128xf32, #tpu.memory_space<vmem>>, vector<1x16x128xf32>
    %193 = vector.shape_cast %192 : vector<1x16x128xf32> to vector<16x128xf32>
    %194 = arith.addf %190, %193 : vector<16x128xf32>
    %195 = arith.index_cast %c5_i32 : i32 to index
    %c0_86 = arith.constant 0 : index
    %c0_87 = arith.constant 0 : index
    %196 = vector.load %arg16[%195, %c0_86, %c0_87] : memref<8x16x128xf32, #tpu.memory_space<vmem>>, vector<1x16x128xf32>
    %197 = vector.shape_cast %196 : vector<1x16x128xf32> to vector<16x128xf32>
    %198 = vector.shape_cast %194 : vector<16x128xf32> to vector<1x16x128xf32>
    tpu.vector_store %arg16[%195, %c0_86, %c0_87], %198 {strides = array<i32>} : memref<8x16x128xf32, #tpu.memory_space<vmem>>, vector<1x16x128xf32>,
    %c6_i32 = arith.constant 6 : i32
    %199 = arith.index_cast %c6_i32 : i32 to index
    %c0_88 = arith.constant 0 : index
    %c0_89 = arith.constant 0 : index
    %200 = vector.load %arg14[%199, %c0_88, %c0_89] : memref<8x16x128xf32, #tpu.memory_space<vmem>>, vector<1x16x128xf32>
    %201 = vector.shape_cast %200 : vector<1x16x128xf32> to vector<16x128xf32>
    %202 = arith.mulf %201, %194 : vector<16x128xf32>
    %203 = arith.index_cast %c6_i32 : i32 to index
    %c0_90 = arith.constant 0 : index
    %c0_91 = arith.constant 0 : index
    %204 = vector.load %arg15[%203, %c0_90, %c0_91] : memref<8x16x128xf32, #tpu.memory_space<vmem>>, vector<1x16x128xf32>
    %205 = vector.shape_cast %204 : vector<1x16x128xf32> to vector<16x128xf32>
    %206 = arith.addf %202, %205 : vector<16x128xf32>
    %207 = arith.index_cast %c6_i32 : i32 to index
    %c0_92 = arith.constant 0 : index
    %c0_93 = arith.constant 0 : index
    %208 = vector.load %arg16[%207, %c0_92, %c0_93] : memref<8x16x128xf32, #tpu.memory_space<vmem>>, vector<1x16x128xf32>
    %209 = vector.shape_cast %208 : vector<1x16x128xf32> to vector<16x128xf32>
    %210 = vector.shape_cast %206 : vector<16x128xf32> to vector<1x16x128xf32>
    tpu.vector_store %arg16[%207, %c0_92, %c0_93], %210 {strides = array<i32>} : memref<8x16x128xf32, #tpu.memory_space<vmem>>, vector<1x16x128xf32>,
    %c7_i32 = arith.constant 7 : i32
    %211 = arith.index_cast %c7_i32 : i32 to index
    %c0_94 = arith.constant 0 : index
    %c0_95 = arith.constant 0 : index
    %212 = vector.load %arg14[%211, %c0_94, %c0_95] : memref<8x16x128xf32, #tpu.memory_space<vmem>>, vector<1x16x128xf32>
    %213 = vector.shape_cast %212 : vector<1x16x128xf32> to vector<16x128xf32>
    %214 = arith.mulf %213, %206 : vector<16x128xf32>
    %215 = arith.index_cast %c7_i32 : i32 to index
    %c0_96 = arith.constant 0 : index
    %c0_97 = arith.constant 0 : index
    %216 = vector.load %arg15[%215, %c0_96, %c0_97] : memref<8x16x128xf32, #tpu.memory_space<vmem>>, vector<1x16x128xf32>
    %217 = vector.shape_cast %216 : vector<1x16x128xf32> to vector<16x128xf32>
    %218 = arith.addf %214, %217 : vector<16x128xf32>
    %219 = arith.index_cast %c7_i32 : i32 to index
    %c0_98 = arith.constant 0 : index
    %c0_99 = arith.constant 0 : index
    %220 = vector.load %arg16[%219, %c0_98, %c0_99] : memref<8x16x128xf32, #tpu.memory_space<vmem>>, vector<1x16x128xf32>
    %221 = vector.shape_cast %220 : vector<1x16x128xf32> to vector<16x128xf32>
    %222 = vector.shape_cast %218 : vector<16x128xf32> to vector<1x16x128xf32>
    tpu.vector_store %arg16[%219, %c0_98, %c0_99], %222 {strides = array<i32>} : memref<8x16x128xf32, #tpu.memory_space<vmem>>, vector<1x16x128xf32>,
    %c8_i32 = arith.constant 8 : i32
    %223 = vector.extract_strided_slice %90 {offsets = [0, 0], sizes = [8, 16], strides = [1, 1]} : vector<16x16xf32> to vector<8x16xf32>
    %224 = vector.shape_cast %223 : vector<8x16xf32> to vector<8x16x1xf32>
    %c0_100 = arith.constant 0 : index
    %c0_101 = arith.constant 0 : index
    %c0_102 = arith.constant 0 : index
    %225 = vector.load %arg16[%c0_100, %c0_101, %c0_102] : memref<8x16x128xf32, #tpu.memory_space<vmem>>, vector<8x16x64xf32>
    %226 = vector.broadcast %224 : vector<8x16x1xf32> to vector<8x16x64xf32>
    %227 = arith.mulf %226, %225 : vector<8x16x64xf32>
    %cst_103 = arith.constant dense<0.000000e+00> : vector<8x64xf32>
    %228 = vector.multi_reduction <add>, %227, %cst_103 [1] : vector<8x16x64xf32> to vector<8x64xf32>
    %229 = vector.extract_strided_slice %90 {offsets = [8, 0], sizes = [8, 16], strides = [1, 1]} : vector<16x16xf32> to vector<8x16xf32>
    %230 = vector.shape_cast %229 : vector<8x16xf32> to vector<8x16x1xf32>
    %c0_104 = arith.constant 0 : index
    %c0_105 = arith.constant 0 : index
    %c64_106 = arith.constant 64 : index
    %231 = vector.load %arg16[%c0_104, %c0_105, %c64_106] : memref<8x16x128xf32, #tpu.memory_space<vmem>>, vector<8x16x64xf32>
    %232 = vector.broadcast %230 : vector<8x16x1xf32> to vector<8x16x64xf32>
    %233 = arith.mulf %232, %231 : vector<8x16x64xf32>
    %cst_107 = arith.constant dense<0.000000e+00> : vector<8x64xf32>
    %234 = vector.multi_reduction <add>, %233, %cst_107 [1] : vector<8x16x64xf32> to vector<8x64xf32>
    %235 = tpu.concatenate %228, %234 in 0 : vector<8x64xf32>, vector<8x64xf32> -> vector<16x64xf32>
    %c0_108 = arith.constant 0 : index
    %c0_109 = arith.constant 0 : index
    %236 = vector.load %arg10[%c0_108, %c0_109] : memref<1x64xf32, #tpu.memory_space<vmem>>, vector<1x64xf32>
    %237 = vector.broadcast %236 : vector<1x64xf32> to vector<16x64xf32>
    %238 = arith.mulf %75, %237 : vector<16x64xf32>
    %239 = arith.addf %235, %238 : vector<16x64xf32>
    %240 = arith.negf %28 : vector<16x64xf32>
    %241 = math.exp %240 : vector<16x64xf32>
    %cst_110 = arith.constant 1.000000e+00 : f32
    %242 = vector.broadcast %cst_110 : f32 to vector<16x64xf32>
    %243 = arith.addf %242, %241 : vector<16x64xf32>
    %244 = arith.divf %242, %243 : vector<16x64xf32>
    %245 = arith.mulf %28, %244 : vector<16x64xf32>
    %246 = arith.mulf %239, %245 : vector<16x64xf32>
    %c0_111 = arith.constant 0 : index
    %c0_112 = arith.constant 0 : index
    %247 = vector.load %arg11[%c0_111, %c0_112] : memref<64x32xf32, #tpu.memory_space<vmem>>, vector<64x32xf32>
    %cst_113 = arith.constant dense<0.000000e+00> : vector<16x32xf32>
    %248 = tpu.matmul %246, %247, %cst_113 {dimension_numbers = #tpu.dot_dimension_numbers<[1], [0], [0], [1], [0, 0, 1, 1], [], []>} : vector<16x64xf32>, vector<64x32xf32>, vector<16x32xf32> -> vector<16x32xf32>
    %c0_114 = arith.constant 0 : index
    %c0_115 = arith.constant 0 : index
    %249 = vector.load %arg12[%c0_114, %c0_115] : memref<16x32xf32, #tpu.memory_space<vmem>>, vector<16x32xf32>
    tpu.vector_store %arg12[%c0_114, %c0_115], %248 {strides = array<i32>} : memref<16x32xf32, #tpu.memory_space<vmem>>, vector<16x32xf32>,
    %c0_116 = arith.constant 0 : index
    %c0_117 = arith.constant 0 : index
    %250 = vector.load %arg13[%c0_116, %c0_117] : memref<16x32xf32, #tpu.memory_space<vmem>>, vector<16x32xf32>
    tpu.vector_store %arg13[%c0_116, %c0_117], %2 {strides = array<i32>} : memref<16x32xf32, #tpu.memory_space<vmem>>, vector<16x32xf32>,
    return
  }
}

module attributes {stable_mosaic.version = 11 : i64} {
  func.func @_mamba_layer_kernel(%arg0: memref<16x32xf32, #tpu.memory_space<vmem>>, %arg1: memref<16x32xf32, #tpu.memory_space<vmem>>, %arg2: memref<1x32xf32, #tpu.memory_space<vmem>>, %arg3: memref<1x32xf32, #tpu.memory_space<vmem>>, %arg4: memref<32x128xf32, #tpu.memory_space<vmem>>, %arg5: memref<4x64xf32, #tpu.memory_space<vmem>>, %arg6: memref<1x64xf32, #tpu.memory_space<vmem>>, %arg7: memref<64x128xf32, #tpu.memory_space<vmem>>, %arg8: memref<1x64xf32, #tpu.memory_space<vmem>>, %arg9: memref<16x64xf32, #tpu.memory_space<vmem>>, %arg10: memref<1x64xf32, #tpu.memory_space<vmem>>, %arg11: memref<64x32xf32, #tpu.memory_space<vmem>>, %arg12: memref<1x32xf32, #tpu.memory_space<vmem>>, %arg13: memref<1x32xf32, #tpu.memory_space<vmem>>, %arg14: memref<16x32xf32, #tpu.memory_space<vmem>>, %arg15: memref<8x16x128xf32, #tpu.memory_space<vmem>>, %arg16: memref<8x16x128xf32, #tpu.memory_space<vmem>>, %arg17: memref<8x16x128xf32, #tpu.memory_space<vmem>>) attributes {dimension_semantics = [], scalar_prefetch = 0 : i64, scratch_operands = 3 : i64, tpu.core_type = #tpu.core_type<tc>} {
    %c0 = arith.constant 0 : index
    %c0_0 = arith.constant 0 : index
    %0 = vector.load %arg0[%c0, %c0_0] : memref<16x32xf32, #tpu.memory_space<vmem>>, vector<16x32xf32>
    %c0_1 = arith.constant 0 : index
    %c0_2 = arith.constant 0 : index
    %1 = vector.load %arg1[%c0_1, %c0_2] : memref<16x32xf32, #tpu.memory_space<vmem>>, vector<16x32xf32>
    %2 = arith.addf %0, %1 : vector<16x32xf32>
    %c0_3 = arith.constant 0 : index
    %c0_4 = arith.constant 0 : index
    %3 = vector.load %arg2[%c0_3, %c0_4] : memref<1x32xf32, #tpu.memory_space<vmem>>, vector<1x32xf32>
    %c0_5 = arith.constant 0 : index
    %c0_6 = arith.constant 0 : index
    %4 = vector.load %arg3[%c0_5, %c0_6] : memref<1x32xf32, #tpu.memory_space<vmem>>, vector<1x32xf32>
    %cst = arith.constant dense<0.000000e+00> : vector<16xf32>
    %5 = vector.multi_reduction <add>, %2, %cst [1] : vector<16x32xf32> to vector<16xf32>
    %6 = vector.shape_cast %5 : vector<16xf32> to vector<16x1xf32>
    %cst_7 = arith.constant 3.200000e+01 : f32
    %7 = vector.broadcast %cst_7 : f32 to vector<16x1xf32>
    %8 = arith.divf %6, %7 : vector<16x1xf32>
    %9 = vector.broadcast %8 : vector<16x1xf32> to vector<16x32xf32>
    %10 = arith.subf %2, %9 : vector<16x32xf32>
    %11 = arith.mulf %10, %10 : vector<16x32xf32>
    %cst_8 = arith.constant dense<0.000000e+00> : vector<16xf32>
    %12 = vector.multi_reduction <add>, %11, %cst_8 [1] : vector<16x32xf32> to vector<16xf32>
    %13 = vector.shape_cast %12 : vector<16xf32> to vector<16x1xf32>
    %cst_9 = arith.constant 3.200000e+01 : f32
    %14 = vector.broadcast %cst_9 : f32 to vector<16x1xf32>
    %15 = arith.divf %13, %14 : vector<16x1xf32>
    %cst_10 = arith.constant 9.99999974E-6 : f32
    %16 = vector.broadcast %cst_10 : f32 to vector<16x1xf32>
    %17 = arith.addf %15, %16 : vector<16x1xf32>
    %18 = math.rsqrt %17 : vector<16x1xf32>
    %19 = vector.broadcast %18 : vector<16x1xf32> to vector<16x32xf32>
    %20 = arith.mulf %10, %19 : vector<16x32xf32>
    %21 = vector.broadcast %3 : vector<1x32xf32> to vector<16x32xf32>
    %22 = arith.mulf %20, %21 : vector<16x32xf32>
    %23 = vector.broadcast %4 : vector<1x32xf32> to vector<16x32xf32>
    %24 = arith.addf %22, %23 : vector<16x32xf32>
    %c0_11 = arith.constant 0 : index
    %c0_12 = arith.constant 0 : index
    %25 = vector.load %arg4[%c0_11, %c0_12] : memref<32x128xf32, #tpu.memory_space<vmem>>, vector<32x128xf32>
    %cst_13 = arith.constant dense<0.000000e+00> : vector<16x128xf32>
    %26 = tpu.matmul %24, %25, %cst_13 {dimension_numbers = #tpu.dot_dimension_numbers<[1], [0], [0], [1], [0, 0, 1, 1], [], []>} : vector<16x32xf32>, vector<32x128xf32>, vector<16x128xf32> -> vector<16x128xf32>
    %27 = vector.extract_strided_slice %26 {offsets = [0, 0], sizes = [16, 64], strides = [1, 1]} : vector<16x128xf32> to vector<16x64xf32>
    %28 = vector.extract_strided_slice %26 {offsets = [0, 64], sizes = [16, 64], strides = [1, 1]} : vector<16x128xf32> to vector<16x64xf32>
    %29 = tpu.iota {dimensions = array<i32: 1>} : vector<2x8x64xi32>
    %30 = vector.shape_cast %29 : vector<2x8x64xi32> to vector<16x64xi32>
    %c0_14 = arith.constant 0 : index
    %c0_15 = arith.constant 0 : index
    %31 = vector.load %arg6[%c0_14, %c0_15] : memref<1x64xf32, #tpu.memory_space<vmem>>, vector<1x64xf32>
    %c3 = arith.constant 3 : index
    %c0_16 = arith.constant 0 : index
    %32 = vector.load %arg5[%c3, %c0_16] : memref<4x64xf32, #tpu.memory_space<vmem>>, vector<1x64xf32>
    %33 = vector.broadcast %32 : vector<1x64xf32> to vector<16x64xf32>
    %34 = arith.mulf %27, %33 : vector<16x64xf32>
    %35 = vector.broadcast %31 : vector<1x64xf32> to vector<16x64xf32>
    %36 = arith.addf %35, %34 : vector<16x64xf32>
    %cst_17 = arith.constant 0.000000e+00 : f32
    %37 = vector.broadcast %cst_17 : f32 to vector<3x64xf32>
    %38 = vector.extract_strided_slice %27 {offsets = [0, 0], sizes = [13, 64], strides = [1, 1]} : vector<16x64xf32> to vector<13x64xf32>
    %39 = tpu.concatenate %37, %38 in 0 : vector<3x64xf32>, vector<13x64xf32> -> vector<16x64xf32>
    %c3_i32 = arith.constant 3 : i32
    %40 = vector.broadcast %c3_i32 : i32 to vector<16x64xi32>
    %41 = arith.cmpi sge, %30, %40 : vector<16x64xi32>
    %cst_18 = arith.constant 0.000000e+00 : f32
    %42 = vector.broadcast %cst_18 : f32 to vector<16x64xf32>
    %43 = arith.select %41, %39, %42 : vector<16x64xi1>, vector<16x64xf32>
    %c0_19 = arith.constant 0 : index
    %c0_20 = arith.constant 0 : index
    %44 = vector.load %arg5[%c0_19, %c0_20] : memref<4x64xf32, #tpu.memory_space<vmem>>, vector<1x64xf32>
    %45 = vector.broadcast %44 : vector<1x64xf32> to vector<16x64xf32>
    %46 = arith.mulf %45, %43 : vector<16x64xf32>
    %47 = arith.addf %36, %46 : vector<16x64xf32>
    %cst_21 = arith.constant 0.000000e+00 : f32
    %48 = vector.broadcast %cst_21 : f32 to vector<2x64xf32>
    %49 = vector.extract_strided_slice %27 {offsets = [0, 0], sizes = [14, 64], strides = [1, 1]} : vector<16x64xf32> to vector<14x64xf32>
    %50 = tpu.concatenate %48, %49 in 0 : vector<2x64xf32>, vector<14x64xf32> -> vector<16x64xf32>
    %c2_i32 = arith.constant 2 : i32
    %51 = vector.broadcast %c2_i32 : i32 to vector<16x64xi32>
    %52 = arith.cmpi sge, %30, %51 : vector<16x64xi32>
    %cst_22 = arith.constant 0.000000e+00 : f32
    %53 = vector.broadcast %cst_22 : f32 to vector<16x64xf32>
    %54 = arith.select %52, %50, %53 : vector<16x64xi1>, vector<16x64xf32>
    %c1 = arith.constant 1 : index
    %c0_23 = arith.constant 0 : index
    %55 = vector.load %arg5[%c1, %c0_23] : memref<4x64xf32, #tpu.memory_space<vmem>>, vector<1x64xf32>
    %56 = vector.broadcast %55 : vector<1x64xf32> to vector<16x64xf32>
    %57 = arith.mulf %56, %54 : vector<16x64xf32>
    %58 = arith.addf %47, %57 : vector<16x64xf32>
    %cst_24 = arith.constant 0.000000e+00 : f32
    %59 = vector.broadcast %cst_24 : f32 to vector<1x64xf32>
    %60 = vector.extract_strided_slice %27 {offsets = [0, 0], sizes = [15, 64], strides = [1, 1]} : vector<16x64xf32> to vector<15x64xf32>
    %61 = tpu.concatenate %59, %60 in 0 : vector<1x64xf32>, vector<15x64xf32> -> vector<16x64xf32>
    %c1_i32 = arith.constant 1 : i32
    %62 = vector.broadcast %c1_i32 : i32 to vector<16x64xi32>
    %63 = arith.cmpi sge, %30, %62 : vector<16x64xi32>
    %cst_25 = arith.constant 0.000000e+00 : f32
    %64 = vector.broadcast %cst_25 : f32 to vector<16x64xf32>
    %65 = arith.select %63, %61, %64 : vector<16x64xi1>, vector<16x64xf32>
    %c2 = arith.constant 2 : index
    %c0_26 = arith.constant 0 : index
    %66 = vector.load %arg5[%c2, %c0_26] : memref<4x64xf32, #tpu.memory_space<vmem>>, vector<1x64xf32>
    %67 = vector.broadcast %66 : vector<1x64xf32> to vector<16x64xf32>
    %68 = arith.mulf %67, %65 : vector<16x64xf32>
    %69 = arith.addf %58, %68 : vector<16x64xf32>
    %70 = arith.negf %69 : vector<16x64xf32>
    %71 = math.exp %70 : vector<16x64xf32>
    %cst_27 = arith.constant 1.000000e+00 : f32
    %72 = vector.broadcast %cst_27 : f32 to vector<16x64xf32>
    %73 = arith.addf %72, %71 : vector<16x64xf32>
    %74 = arith.divf %72, %73 : vector<16x64xf32>
    %75 = arith.mulf %69, %74 : vector<16x64xf32>
    %c0_28 = arith.constant 0 : index
    %c0_29 = arith.constant 0 : index
    %76 = vector.load %arg7[%c0_28, %c0_29] : memref<64x128xf32, #tpu.memory_space<vmem>>, vector<64x128xf32>
    %cst_30 = arith.constant dense<0.000000e+00> : vector<16x128xf32>
    %77 = tpu.matmul %75, %76, %cst_30 {dimension_numbers = #tpu.dot_dimension_numbers<[1], [0], [0], [1], [0, 0, 1, 1], [], []>} : vector<16x64xf32>, vector<64x128xf32>, vector<16x128xf32> -> vector<16x128xf32>
    %78 = vector.extract_strided_slice %77 {offsets = [0, 0], sizes = [16, 64], strides = [1, 1]} : vector<16x128xf32> to vector<16x64xf32>
    %c0_31 = arith.constant 0 : index
    %c0_32 = arith.constant 0 : index
    %79 = vector.load %arg8[%c0_31, %c0_32] : memref<1x64xf32, #tpu.memory_space<vmem>>, vector<1x64xf32>
    %80 = vector.broadcast %79 : vector<1x64xf32> to vector<16x64xf32>
    %81 = arith.addf %78, %80 : vector<16x64xf32>
    %cst_33 = arith.constant 2.000000e+01 : f32
    %82 = vector.broadcast %cst_33 : f32 to vector<16x64xf32>
    %83 = arith.cmpf ogt, %81, %82 : vector<16x64xf32>
    %cst_34 = arith.constant 2.000000e+01 : f32
    %84 = vector.broadcast %cst_34 : f32 to vector<16x64xf32>
    %85 = arith.minimumf %81, %84 : vector<16x64xf32>
    %86 = math.exp %85 : vector<16x64xf32>
    %87 = math.log1p %86 : vector<16x64xf32>
    %88 = arith.select %83, %81, %87 : vector<16x64xi1>, vector<16x64xf32>
    %89 = vector.extract_strided_slice %77 {offsets = [0, 64], sizes = [16, 16], strides = [1, 1]} : vector<16x128xf32> to vector<16x16xf32>
    %90 = vector.extract_strided_slice %77 {offsets = [0, 80], sizes = [16, 16], strides = [1, 1]} : vector<16x128xf32> to vector<16x16xf32>
    %c0_35 = arith.constant 0 : index
    %c0_36 = arith.constant 0 : index
    %91 = vector.load %arg9[%c0_35, %c0_36] : memref<16x64xf32, #tpu.memory_space<vmem>>, vector<16x64xf32>
    %92 = vector.extract_strided_slice %88 {offsets = [0, 0], sizes = [8, 64], strides = [1, 1]} : vector<16x64xf32> to vector<8x64xf32>
    %93 = vector.shape_cast %92 : vector<8x64xf32> to vector<8x1x64xf32>
    %94 = vector.shape_cast %91 : vector<16x64xf32> to vector<1x16x64xf32>
    %95 = vector.broadcast %93 : vector<8x1x64xf32> to vector<8x16x64xf32>
    %96 = vector.broadcast %94 : vector<1x16x64xf32> to vector<8x16x64xf32>
    %97 = arith.mulf %95, %96 : vector<8x16x64xf32>
    %98 = math.exp %97 : vector<8x16x64xf32>
    %c0_37 = arith.constant 0 : index
    %c0_38 = arith.constant 0 : index
    %c0_39 = arith.constant 0 : index
    %99 = vector.load %arg15[%c0_37, %c0_38, %c0_39] : memref<8x16x128xf32, #tpu.memory_space<vmem>>, vector<8x16x64xf32>
    tpu.vector_store %arg15[%c0_37, %c0_38, %c0_39], %98 {strides = array<i32>} : memref<8x16x128xf32, #tpu.memory_space<vmem>>, vector<8x16x64xf32>,
    %100 = vector.extract_strided_slice %75 {offsets = [0, 0], sizes = [8, 64], strides = [1, 1]} : vector<16x64xf32> to vector<8x64xf32>
    %101 = arith.mulf %92, %100 : vector<8x64xf32>
    %102 = vector.extract_strided_slice %89 {offsets = [0, 0], sizes = [8, 16], strides = [1, 1]} : vector<16x16xf32> to vector<8x16xf32>
    %103 = vector.shape_cast %102 : vector<8x16xf32> to vector<8x16x1xf32>
    %104 = vector.shape_cast %101 : vector<8x64xf32> to vector<8x1x64xf32>
    %105 = vector.broadcast %103 : vector<8x16x1xf32> to vector<8x16x64xf32>
    %106 = vector.broadcast %104 : vector<8x1x64xf32> to vector<8x16x64xf32>
    %107 = arith.mulf %105, %106 : vector<8x16x64xf32>
    %c0_40 = arith.constant 0 : index
    %c0_41 = arith.constant 0 : index
    %c0_42 = arith.constant 0 : index
    %108 = vector.load %arg16[%c0_40, %c0_41, %c0_42] : memref<8x16x128xf32, #tpu.memory_space<vmem>>, vector<8x16x64xf32>
    tpu.vector_store %arg16[%c0_40, %c0_41, %c0_42], %107 {strides = array<i32>} : memref<8x16x128xf32, #tpu.memory_space<vmem>>, vector<8x16x64xf32>,
    %109 = vector.extract_strided_slice %88 {offsets = [8, 0], sizes = [8, 64], strides = [1, 1]} : vector<16x64xf32> to vector<8x64xf32>
    %110 = vector.shape_cast %109 : vector<8x64xf32> to vector<8x1x64xf32>
    %111 = vector.shape_cast %91 : vector<16x64xf32> to vector<1x16x64xf32>
    %112 = vector.broadcast %110 : vector<8x1x64xf32> to vector<8x16x64xf32>
    %113 = vector.broadcast %111 : vector<1x16x64xf32> to vector<8x16x64xf32>
    %114 = arith.mulf %112, %113 : vector<8x16x64xf32>
    %115 = math.exp %114 : vector<8x16x64xf32>
    %c0_43 = arith.constant 0 : index
    %c0_44 = arith.constant 0 : index
    %c64 = arith.constant 64 : index
    %116 = vector.load %arg15[%c0_43, %c0_44, %c64] : memref<8x16x128xf32, #tpu.memory_space<vmem>>, vector<8x16x64xf32>
    tpu.vector_store %arg15[%c0_43, %c0_44, %c64], %115 {strides = array<i32>} : memref<8x16x128xf32, #tpu.memory_space<vmem>>, vector<8x16x64xf32>,
    %117 = vector.extract_strided_slice %75 {offsets = [8, 0], sizes = [8, 64], strides = [1, 1]} : vector<16x64xf32> to vector<8x64xf32>
    %118 = arith.mulf %109, %117 : vector<8x64xf32>
    %119 = vector.extract_strided_slice %89 {offsets = [8, 0], sizes = [8, 16], strides = [1, 1]} : vector<16x16xf32> to vector<8x16xf32>
    %120 = vector.shape_cast %119 : vector<8x16xf32> to vector<8x16x1xf32>
    %121 = vector.shape_cast %118 : vector<8x64xf32> to vector<8x1x64xf32>
    %122 = vector.broadcast %120 : vector<8x16x1xf32> to vector<8x16x64xf32>
    %123 = vector.broadcast %121 : vector<8x1x64xf32> to vector<8x16x64xf32>
    %124 = arith.mulf %122, %123 : vector<8x16x64xf32>
    %c0_45 = arith.constant 0 : index
    %c0_46 = arith.constant 0 : index
    %c64_47 = arith.constant 64 : index
    %125 = vector.load %arg16[%c0_45, %c0_46, %c64_47] : memref<8x16x128xf32, #tpu.memory_space<vmem>>, vector<8x16x64xf32>
    tpu.vector_store %arg16[%c0_45, %c0_46, %c64_47], %124 {strides = array<i32>} : memref<8x16x128xf32, #tpu.memory_space<vmem>>, vector<8x16x64xf32>,
    %cst_48 = arith.constant 0.000000e+00 : f32
    %126 = vector.broadcast %cst_48 : f32 to vector<16x128xf32>
    %c0_i32 = arith.constant 0 : i32
    %127 = arith.index_cast %c0_i32 : i32 to index
    %c0_49 = arith.constant 0 : index
    %c0_50 = arith.constant 0 : index
    %128 = vector.load %arg15[%127, %c0_49, %c0_50] : memref<8x16x128xf32, #tpu.memory_space<vmem>>, vector<1x16x128xf32>
    %129 = vector.shape_cast %128 : vector<1x16x128xf32> to vector<16x128xf32>
    %130 = arith.mulf %129, %126 : vector<16x128xf32>
    %131 = arith.index_cast %c0_i32 : i32 to index
    %c0_51 = arith.constant 0 : index
    %c0_52 = arith.constant 0 : index
    %132 = vector.load %arg16[%131, %c0_51, %c0_52] : memref<8x16x128xf32, #tpu.memory_space<vmem>>, vector<1x16x128xf32>
    %133 = vector.shape_cast %132 : vector<1x16x128xf32> to vector<16x128xf32>
    %134 = arith.addf %130, %133 : vector<16x128xf32>
    %135 = arith.index_cast %c0_i32 : i32 to index
    %c0_53 = arith.constant 0 : index
    %c0_54 = arith.constant 0 : index
    %136 = vector.load %arg17[%135, %c0_53, %c0_54] : memref<8x16x128xf32, #tpu.memory_space<vmem>>, vector<1x16x128xf32>
    %137 = vector.shape_cast %136 : vector<1x16x128xf32> to vector<16x128xf32>
    %138 = vector.shape_cast %134 : vector<16x128xf32> to vector<1x16x128xf32>
    tpu.vector_store %arg17[%135, %c0_53, %c0_54], %138 {strides = array<i32>} : memref<8x16x128xf32, #tpu.memory_space<vmem>>, vector<1x16x128xf32>,
    %c1_i32_55 = arith.constant 1 : i32
    %139 = arith.index_cast %c1_i32_55 : i32 to index
    %c0_56 = arith.constant 0 : index
    %c0_57 = arith.constant 0 : index
    %140 = vector.load %arg15[%139, %c0_56, %c0_57] : memref<8x16x128xf32, #tpu.memory_space<vmem>>, vector<1x16x128xf32>
    %141 = vector.shape_cast %140 : vector<1x16x128xf32> to vector<16x128xf32>
    %142 = arith.mulf %141, %134 : vector<16x128xf32>
    %143 = arith.index_cast %c1_i32_55 : i32 to index
    %c0_58 = arith.constant 0 : index
    %c0_59 = arith.constant 0 : index
    %144 = vector.load %arg16[%143, %c0_58, %c0_59] : memref<8x16x128xf32, #tpu.memory_space<vmem>>, vector<1x16x128xf32>
    %145 = vector.shape_cast %144 : vector<1x16x128xf32> to vector<16x128xf32>
    %146 = arith.addf %142, %145 : vector<16x128xf32>
    %147 = arith.index_cast %c1_i32_55 : i32 to index
    %c0_60 = arith.constant 0 : index
    %c0_61 = arith.constant 0 : index
    %148 = vector.load %arg17[%147, %c0_60, %c0_61] : memref<8x16x128xf32, #tpu.memory_space<vmem>>, vector<1x16x128xf32>
    %149 = vector.shape_cast %148 : vector<1x16x128xf32> to vector<16x128xf32>
    %150 = vector.shape_cast %146 : vector<16x128xf32> to vector<1x16x128xf32>
    tpu.vector_store %arg17[%147, %c0_60, %c0_61], %150 {strides = array<i32>} : memref<8x16x128xf32, #tpu.memory_space<vmem>>, vector<1x16x128xf32>,
    %c2_i32_62 = arith.constant 2 : i32
    %151 = arith.index_cast %c2_i32_62 : i32 to index
    %c0_63 = arith.constant 0 : index
    %c0_64 = arith.constant 0 : index
    %152 = vector.load %arg15[%151, %c0_63, %c0_64] : memref<8x16x128xf32, #tpu.memory_space<vmem>>, vector<1x16x128xf32>
    %153 = vector.shape_cast %152 : vector<1x16x128xf32> to vector<16x128xf32>
    %154 = arith.mulf %153, %146 : vector<16x128xf32>
    %155 = arith.index_cast %c2_i32_62 : i32 to index
    %c0_65 = arith.constant 0 : index
    %c0_66 = arith.constant 0 : index
    %156 = vector.load %arg16[%155, %c0_65, %c0_66] : memref<8x16x128xf32, #tpu.memory_space<vmem>>, vector<1x16x128xf32>
    %157 = vector.shape_cast %156 : vector<1x16x128xf32> to vector<16x128xf32>
    %158 = arith.addf %154, %157 : vector<16x128xf32>
    %159 = arith.index_cast %c2_i32_62 : i32 to index
    %c0_67 = arith.constant 0 : index
    %c0_68 = arith.constant 0 : index
    %160 = vector.load %arg17[%159, %c0_67, %c0_68] : memref<8x16x128xf32, #tpu.memory_space<vmem>>, vector<1x16x128xf32>
    %161 = vector.shape_cast %160 : vector<1x16x128xf32> to vector<16x128xf32>
    %162 = vector.shape_cast %158 : vector<16x128xf32> to vector<1x16x128xf32>
    tpu.vector_store %arg17[%159, %c0_67, %c0_68], %162 {strides = array<i32>} : memref<8x16x128xf32, #tpu.memory_space<vmem>>, vector<1x16x128xf32>,
    %c3_i32_69 = arith.constant 3 : i32
    %163 = arith.index_cast %c3_i32_69 : i32 to index
    %c0_70 = arith.constant 0 : index
    %c0_71 = arith.constant 0 : index
    %164 = vector.load %arg15[%163, %c0_70, %c0_71] : memref<8x16x128xf32, #tpu.memory_space<vmem>>, vector<1x16x128xf32>
    %165 = vector.shape_cast %164 : vector<1x16x128xf32> to vector<16x128xf32>
    %166 = arith.mulf %165, %158 : vector<16x128xf32>
    %167 = arith.index_cast %c3_i32_69 : i32 to index
    %c0_72 = arith.constant 0 : index
    %c0_73 = arith.constant 0 : index
    %168 = vector.load %arg16[%167, %c0_72, %c0_73] : memref<8x16x128xf32, #tpu.memory_space<vmem>>, vector<1x16x128xf32>
    %169 = vector.shape_cast %168 : vector<1x16x128xf32> to vector<16x128xf32>
    %170 = arith.addf %166, %169 : vector<16x128xf32>
    %171 = arith.index_cast %c3_i32_69 : i32 to index
    %c0_74 = arith.constant 0 : index
    %c0_75 = arith.constant 0 : index
    %172 = vector.load %arg17[%171, %c0_74, %c0_75] : memref<8x16x128xf32, #tpu.memory_space<vmem>>, vector<1x16x128xf32>
    %173 = vector.shape_cast %172 : vector<1x16x128xf32> to vector<16x128xf32>
    %174 = vector.shape_cast %170 : vector<16x128xf32> to vector<1x16x128xf32>
    tpu.vector_store %arg17[%171, %c0_74, %c0_75], %174 {strides = array<i32>} : memref<8x16x128xf32, #tpu.memory_space<vmem>>, vector<1x16x128xf32>,
    %c4_i32 = arith.constant 4 : i32
    %175 = arith.index_cast %c4_i32 : i32 to index
    %c0_76 = arith.constant 0 : index
    %c0_77 = arith.constant 0 : index
    %176 = vector.load %arg15[%175, %c0_76, %c0_77] : memref<8x16x128xf32, #tpu.memory_space<vmem>>, vector<1x16x128xf32>
    %177 = vector.shape_cast %176 : vector<1x16x128xf32> to vector<16x128xf32>
    %178 = arith.mulf %177, %170 : vector<16x128xf32>
    %179 = arith.index_cast %c4_i32 : i32 to index
    %c0_78 = arith.constant 0 : index
    %c0_79 = arith.constant 0 : index
    %180 = vector.load %arg16[%179, %c0_78, %c0_79] : memref<8x16x128xf32, #tpu.memory_space<vmem>>, vector<1x16x128xf32>
    %181 = vector.shape_cast %180 : vector<1x16x128xf32> to vector<16x128xf32>
    %182 = arith.addf %178, %181 : vector<16x128xf32>
    %183 = arith.index_cast %c4_i32 : i32 to index
    %c0_80 = arith.constant 0 : index
    %c0_81 = arith.constant 0 : index
    %184 = vector.load %arg17[%183, %c0_80, %c0_81] : memref<8x16x128xf32, #tpu.memory_space<vmem>>, vector<1x16x128xf32>
    %185 = vector.shape_cast %184 : vector<1x16x128xf32> to vector<16x128xf32>
    %186 = vector.shape_cast %182 : vector<16x128xf32> to vector<1x16x128xf32>
    tpu.vector_store %arg17[%183, %c0_80, %c0_81], %186 {strides = array<i32>} : memref<8x16x128xf32, #tpu.memory_space<vmem>>, vector<1x16x128xf32>,
    %c5_i32 = arith.constant 5 : i32
    %187 = arith.index_cast %c5_i32 : i32 to index
    %c0_82 = arith.constant 0 : index
    %c0_83 = arith.constant 0 : index
    %188 = vector.load %arg15[%187, %c0_82, %c0_83] : memref<8x16x128xf32, #tpu.memory_space<vmem>>, vector<1x16x128xf32>
    %189 = vector.shape_cast %188 : vector<1x16x128xf32> to vector<16x128xf32>
    %190 = arith.mulf %189, %182 : vector<16x128xf32>
    %191 = arith.index_cast %c5_i32 : i32 to index
    %c0_84 = arith.constant 0 : index
    %c0_85 = arith.constant 0 : index
    %192 = vector.load %arg16[%191, %c0_84, %c0_85] : memref<8x16x128xf32, #tpu.memory_space<vmem>>, vector<1x16x128xf32>
    %193 = vector.shape_cast %192 : vector<1x16x128xf32> to vector<16x128xf32>
    %194 = arith.addf %190, %193 : vector<16x128xf32>
    %195 = arith.index_cast %c5_i32 : i32 to index
    %c0_86 = arith.constant 0 : index
    %c0_87 = arith.constant 0 : index
    %196 = vector.load %arg17[%195, %c0_86, %c0_87] : memref<8x16x128xf32, #tpu.memory_space<vmem>>, vector<1x16x128xf32>
    %197 = vector.shape_cast %196 : vector<1x16x128xf32> to vector<16x128xf32>
    %198 = vector.shape_cast %194 : vector<16x128xf32> to vector<1x16x128xf32>
    tpu.vector_store %arg17[%195, %c0_86, %c0_87], %198 {strides = array<i32>} : memref<8x16x128xf32, #tpu.memory_space<vmem>>, vector<1x16x128xf32>,
    %c6_i32 = arith.constant 6 : i32
    %199 = arith.index_cast %c6_i32 : i32 to index
    %c0_88 = arith.constant 0 : index
    %c0_89 = arith.constant 0 : index
    %200 = vector.load %arg15[%199, %c0_88, %c0_89] : memref<8x16x128xf32, #tpu.memory_space<vmem>>, vector<1x16x128xf32>
    %201 = vector.shape_cast %200 : vector<1x16x128xf32> to vector<16x128xf32>
    %202 = arith.mulf %201, %194 : vector<16x128xf32>
    %203 = arith.index_cast %c6_i32 : i32 to index
    %c0_90 = arith.constant 0 : index
    %c0_91 = arith.constant 0 : index
    %204 = vector.load %arg16[%203, %c0_90, %c0_91] : memref<8x16x128xf32, #tpu.memory_space<vmem>>, vector<1x16x128xf32>
    %205 = vector.shape_cast %204 : vector<1x16x128xf32> to vector<16x128xf32>
    %206 = arith.addf %202, %205 : vector<16x128xf32>
    %207 = arith.index_cast %c6_i32 : i32 to index
    %c0_92 = arith.constant 0 : index
    %c0_93 = arith.constant 0 : index
    %208 = vector.load %arg17[%207, %c0_92, %c0_93] : memref<8x16x128xf32, #tpu.memory_space<vmem>>, vector<1x16x128xf32>
    %209 = vector.shape_cast %208 : vector<1x16x128xf32> to vector<16x128xf32>
    %210 = vector.shape_cast %206 : vector<16x128xf32> to vector<1x16x128xf32>
    tpu.vector_store %arg17[%207, %c0_92, %c0_93], %210 {strides = array<i32>} : memref<8x16x128xf32, #tpu.memory_space<vmem>>, vector<1x16x128xf32>,
    %c7_i32 = arith.constant 7 : i32
    %211 = arith.index_cast %c7_i32 : i32 to index
    %c0_94 = arith.constant 0 : index
    %c0_95 = arith.constant 0 : index
    %212 = vector.load %arg15[%211, %c0_94, %c0_95] : memref<8x16x128xf32, #tpu.memory_space<vmem>>, vector<1x16x128xf32>
    %213 = vector.shape_cast %212 : vector<1x16x128xf32> to vector<16x128xf32>
    %214 = arith.mulf %213, %206 : vector<16x128xf32>
    %215 = arith.index_cast %c7_i32 : i32 to index
    %c0_96 = arith.constant 0 : index
    %c0_97 = arith.constant 0 : index
    %216 = vector.load %arg16[%215, %c0_96, %c0_97] : memref<8x16x128xf32, #tpu.memory_space<vmem>>, vector<1x16x128xf32>
    %217 = vector.shape_cast %216 : vector<1x16x128xf32> to vector<16x128xf32>
    %218 = arith.addf %214, %217 : vector<16x128xf32>
    %219 = arith.index_cast %c7_i32 : i32 to index
    %c0_98 = arith.constant 0 : index
    %c0_99 = arith.constant 0 : index
    %220 = vector.load %arg17[%219, %c0_98, %c0_99] : memref<8x16x128xf32, #tpu.memory_space<vmem>>, vector<1x16x128xf32>
    %221 = vector.shape_cast %220 : vector<1x16x128xf32> to vector<16x128xf32>
    %222 = vector.shape_cast %218 : vector<16x128xf32> to vector<1x16x128xf32>
    tpu.vector_store %arg17[%219, %c0_98, %c0_99], %222 {strides = array<i32>} : memref<8x16x128xf32, #tpu.memory_space<vmem>>, vector<1x16x128xf32>,
    %c8_i32 = arith.constant 8 : i32
    %223 = vector.extract_strided_slice %90 {offsets = [0, 0], sizes = [8, 16], strides = [1, 1]} : vector<16x16xf32> to vector<8x16xf32>
    %224 = vector.shape_cast %223 : vector<8x16xf32> to vector<8x16x1xf32>
    %c0_100 = arith.constant 0 : index
    %c0_101 = arith.constant 0 : index
    %c0_102 = arith.constant 0 : index
    %225 = vector.load %arg17[%c0_100, %c0_101, %c0_102] : memref<8x16x128xf32, #tpu.memory_space<vmem>>, vector<8x16x64xf32>
    %226 = vector.broadcast %224 : vector<8x16x1xf32> to vector<8x16x64xf32>
    %227 = arith.mulf %226, %225 : vector<8x16x64xf32>
    %cst_103 = arith.constant dense<0.000000e+00> : vector<8x64xf32>
    %228 = vector.multi_reduction <add>, %227, %cst_103 [1] : vector<8x16x64xf32> to vector<8x64xf32>
    %229 = vector.extract_strided_slice %90 {offsets = [8, 0], sizes = [8, 16], strides = [1, 1]} : vector<16x16xf32> to vector<8x16xf32>
    %230 = vector.shape_cast %229 : vector<8x16xf32> to vector<8x16x1xf32>
    %c0_104 = arith.constant 0 : index
    %c0_105 = arith.constant 0 : index
    %c64_106 = arith.constant 64 : index
    %231 = vector.load %arg17[%c0_104, %c0_105, %c64_106] : memref<8x16x128xf32, #tpu.memory_space<vmem>>, vector<8x16x64xf32>
    %232 = vector.broadcast %230 : vector<8x16x1xf32> to vector<8x16x64xf32>
    %233 = arith.mulf %232, %231 : vector<8x16x64xf32>
    %cst_107 = arith.constant dense<0.000000e+00> : vector<8x64xf32>
    %234 = vector.multi_reduction <add>, %233, %cst_107 [1] : vector<8x16x64xf32> to vector<8x64xf32>
    %235 = tpu.concatenate %228, %234 in 0 : vector<8x64xf32>, vector<8x64xf32> -> vector<16x64xf32>
    %c0_108 = arith.constant 0 : index
    %c0_109 = arith.constant 0 : index
    %236 = vector.load %arg10[%c0_108, %c0_109] : memref<1x64xf32, #tpu.memory_space<vmem>>, vector<1x64xf32>
    %237 = vector.broadcast %236 : vector<1x64xf32> to vector<16x64xf32>
    %238 = arith.mulf %75, %237 : vector<16x64xf32>
    %239 = arith.addf %235, %238 : vector<16x64xf32>
    %240 = arith.negf %28 : vector<16x64xf32>
    %241 = math.exp %240 : vector<16x64xf32>
    %cst_110 = arith.constant 1.000000e+00 : f32
    %242 = vector.broadcast %cst_110 : f32 to vector<16x64xf32>
    %243 = arith.addf %242, %241 : vector<16x64xf32>
    %244 = arith.divf %242, %243 : vector<16x64xf32>
    %245 = arith.mulf %28, %244 : vector<16x64xf32>
    %246 = arith.mulf %239, %245 : vector<16x64xf32>
    %c0_111 = arith.constant 0 : index
    %c0_112 = arith.constant 0 : index
    %247 = vector.load %arg11[%c0_111, %c0_112] : memref<64x32xf32, #tpu.memory_space<vmem>>, vector<64x32xf32>
    %cst_113 = arith.constant dense<0.000000e+00> : vector<16x32xf32>
    %248 = tpu.matmul %246, %247, %cst_113 {dimension_numbers = #tpu.dot_dimension_numbers<[1], [0], [0], [1], [0, 0, 1, 1], [], []>} : vector<16x64xf32>, vector<64x32xf32>, vector<16x32xf32> -> vector<16x32xf32>
    %249 = arith.addf %248, %2 : vector<16x32xf32>
    %c0_114 = arith.constant 0 : index
    %c0_115 = arith.constant 0 : index
    %250 = vector.load %arg12[%c0_114, %c0_115] : memref<1x32xf32, #tpu.memory_space<vmem>>, vector<1x32xf32>
    %c0_116 = arith.constant 0 : index
    %c0_117 = arith.constant 0 : index
    %251 = vector.load %arg13[%c0_116, %c0_117] : memref<1x32xf32, #tpu.memory_space<vmem>>, vector<1x32xf32>
    %cst_118 = arith.constant dense<0.000000e+00> : vector<16xf32>
    %252 = vector.multi_reduction <add>, %249, %cst_118 [1] : vector<16x32xf32> to vector<16xf32>
    %253 = vector.shape_cast %252 : vector<16xf32> to vector<16x1xf32>
    %cst_119 = arith.constant 3.200000e+01 : f32
    %254 = vector.broadcast %cst_119 : f32 to vector<16x1xf32>
    %255 = arith.divf %253, %254 : vector<16x1xf32>
    %256 = vector.broadcast %255 : vector<16x1xf32> to vector<16x32xf32>
    %257 = arith.subf %249, %256 : vector<16x32xf32>
    %258 = arith.mulf %257, %257 : vector<16x32xf32>
    %cst_120 = arith.constant dense<0.000000e+00> : vector<16xf32>
    %259 = vector.multi_reduction <add>, %258, %cst_120 [1] : vector<16x32xf32> to vector<16xf32>
    %260 = vector.shape_cast %259 : vector<16xf32> to vector<16x1xf32>
    %cst_121 = arith.constant 3.200000e+01 : f32
    %261 = vector.broadcast %cst_121 : f32 to vector<16x1xf32>
    %262 = arith.divf %260, %261 : vector<16x1xf32>
    %cst_122 = arith.constant 9.99999974E-6 : f32
    %263 = vector.broadcast %cst_122 : f32 to vector<16x1xf32>
    %264 = arith.addf %262, %263 : vector<16x1xf32>
    %265 = math.rsqrt %264 : vector<16x1xf32>
    %266 = vector.broadcast %265 : vector<16x1xf32> to vector<16x32xf32>
    %267 = arith.mulf %257, %266 : vector<16x32xf32>
    %268 = vector.broadcast %250 : vector<1x32xf32> to vector<16x32xf32>
    %269 = arith.mulf %267, %268 : vector<16x32xf32>
    %270 = vector.broadcast %251 : vector<1x32xf32> to vector<16x32xf32>
    %271 = arith.addf %269, %270 : vector<16x32xf32>
    %c0_123 = arith.constant 0 : index
    %c0_124 = arith.constant 0 : index
    %272 = vector.load %arg14[%c0_123, %c0_124] : memref<16x32xf32, #tpu.memory_space<vmem>>, vector<16x32xf32>
    tpu.vector_store %arg14[%c0_123, %c0_124], %271 {strides = array<i32>} : memref<16x32xf32, #tpu.memory_space<vmem>>, vector<16x32xf32>,
    return
  }
}

</mosaic_0001>

<bundles_post_ra>
// kernel: mixer_model_forward.2
= control target key start
LH: loop header
LB: loop body
LE: loop exit
PB: predicated region body
PF: predicated region fallthrough
CT: control target
= control target key end

     0   :  { %vm51_vm0 = vcmask 261120   ;;  %v180_v52 = vlaneseq  ;;  %vm200_vm1 = vcmask 1042432   ;;  %vm219_vm2 = vcmask 1041408   ;;  %s2908_s0 = inlined_call_operand.vmem [shape: f32[16,32], index: 0, kind: input, shape index: {}, may-alias: {0,12}]   ;;  %s2909_s1 = inlined_call_operand.vmem [shape: f32[16,32], index: 1, kind: input, shape index: {}, may-alias: {1,13}]   ;;  %s2910_s13 = inlined_call_operand.vmem [shape: f32[16,32], index: 13, kind: output, shape index: {1}, may-alias: {1,13}]   ;;  %s2911_s4 = inlined_call_operand.vmem [shape: f32[32,128], index: 4, kind: input, shape index: {}]   ;;  %s2912_s2 = inlined_call_operand.vmem [shape: f32[1,32], index: 2, kind: input, shape index: {}]   ;;  %s2913_s3 = inlined_call_operand.vmem [shape: f32[1,32], index: 3, kind: input, shape index: {}]   ;;  %s2914_s7 = inlined_call_operand.vmem [shape: f32[64,128], index: 7, kind: input, shape index: {}]   ;;  %s2915_s5 = inlined_call_operand.vmem [shape: f32[4,64], index: 5, kind: input, shape index: {}]   ;;  %s2916_s6 = inlined_call_operand.vmem [shape: f32[1,64], index: 6, kind: input, shape index: {}]   ;;  %s2917_s8 = inlined_call_operand.vmem [shape: f32[1,64], index: 8, kind: input, shape index: {}]   ;;  %s2918_s9 = inlined_call_operand.vmem [shape: f32[16,64], index: 9, kind: input, shape index: {}]   ;;  %s2919_s11 = inlined_call_operand.vmem [shape: f32[64,32], index: 11, kind: input, shape index: {}]   ;;  %s2920_s10 = inlined_call_operand.vmem [shape: f32[1,64], index: 10, kind: input, shape index: {}]   ;;  %s2921_s12 = inlined_call_operand.vmem [shape: f32[16,32], index: 12, kind: output, shape index: {0}, may-alias: {0,12}]  }
   0x1   :  { %v43_v0 = vld [vmem:[%s2908_s0] sm:$0xff]  ;;  %v44_v2 = vld [vmem:[%s2908_s0 + $0x8] sm:$0xff]  ;;  %v97_v20 = vld [vmem:[%s2911_s4 + $0x10] sm:$0xff]  ;;  %vm238_vm5 = vcmask 1040384   ;;  %vm279_vm7 = vcmask 523264   ;;  %vm975_vm12 = vcmask 1048064  }
   0x2   :  { %v45_v1 = vld [vmem:[%s2909_s1] sm:$0xff]  ;;  %v46_v4 = vld [vmem:[%s2909_s1 + $0x8] sm:$0xff]  ;;  %v98_v22 = vld [vmem:[%s2911_s4 + $0x18] sm:$0xff]  ;;  %v2241_v53 = vshrl.u32 %v180_v52, 7  ;;  %vm1704_vm13 = vcmask 1041409   ;;  %vm1706_vm14 = vcmask 1042434  }
   0x3   :  { %v47_v3 = vadd.f32 %v45_v1, %v43_v0  ;;  %v48_v5 = vadd.f32 %v46_v4, %v44_v2  ;;  %v95_v18 = vld [vmem:[%s2911_s4] sm:$0xff]  ;;  %v96_v19 = vld [vmem:[%s2911_s4 + $0x8] sm:$0xff]  ;;  %v1971_v23 = vpack.c.bf16 %v98_v22, %v97_v20  ;;  %v273_v42 = vld [vmem:[%s2914_s7 + $0x10] sm:$0xff]  ;;  %vm1708_vm15 = vcmask 1043459  }
   0x4   :  { %v1967_v21 = vpack.c.bf16 %v96_v19, %v95_v18  ;;  %v1873_v31 = vld [vmem:[%s2912_s2] ss:$0 sm:$0xff]  ;;  %v272_v41 = vld [vmem:[%s2914_s7 + $0x8] sm:$0xff]  ;;  %v274_v44 = vld [vmem:[%s2914_s7 + $0x18] sm:$0xff]  ;;  %vm207_vm3 = vcmp.ge.s32.totalorder %v2241_v53, 3  ;;  %vm226_vm4 = vcmp.ge.s32.totalorder %v2241_v53, 2 }
   0x5   :  { %v52_v6 = vsel %vm51_vm0, %v47_v3, 0.0  ;;  %1863 = vst.msk [vmem:[%s2910_s13] sm:$0xff] %vm51_vm0, %v47_v3  ;;  %1864 = vst.msk [vmem:[%s2910_s13 + $0x8] sm:$0xff] %vm51_vm0, %v48_v5  ;;  %v55_v7 = vsel %vm51_vm0, %v48_v5, 0.0  ;;  %v1874_v33 = vld [vmem:[%s2913_s3] ss:$0 sm:$0xff]  ;;  %v1979_v45 = vpack.c.bf16 %v274_v44, %v273_v42 }
   0x6   :  { %53 = vadd.xlane.f32.xlu0 %v52_v6  ;;  %1968 = vmatprep.subr.bf16.mxu0 %v1967_v21  ;;  %v271_v40 = vld [vmem:[%s2914_s7] sm:$0xff]  ;;  %v276_v47 = vld [vmem:[%s2914_s7 + $0x28] sm:$0xff]  ;;  %v277_v49 = vld [vmem:[%s2914_s7 + $0x30] sm:$0xff]  ;;  %vm245_vm6 = vcmp.ge.s32.totalorder %v2241_v53, 1 }
   0x7   :  { %1970 = vmatpush3.bf16.msra.mxu0 %v1967_v21  ;;  %v1975_v43 = vpack.c.bf16 %v272_v41, %v271_v40  ;;  %v275_v46 = vld [vmem:[%s2914_s7 + $0x20] sm:$0xff]  ;;  %v278_v50 = vld [vmem:[%s2914_s7 + $0x38] sm:$0xff]  ;;  %v2288_v41 = vsub.s32 0, %v2241_v53 }
   0x8   :  { %1972 = vmatprep.subr.bf16.mxu0 %v1971_v23  ;;  %v1983_v48 = vpack.c.bf16 %v276_v47, %v275_v46  ;;  %v1987_v51 = vpack.c.bf16 %v278_v50, %v277_v49  ;;  %v1877_v54 = vld [vmem:[%s2915_s5 + $0x3] ss:$0 sm:$0xff]  ;;  %v1878_v62 = vld [vmem:[%s2916_s6] ss:$0 sm:$0xff]  ;;  %v1881_v18 = vld [vmem:[%s2915_s5 + $0x2] ss:$0 sm:$0xff] }
   0x9   :  { %1976 = vmatprep.subr.bf16.mxu1 %v1975_v43  ;;  %v1879_v2 = vld [vmem:[%s2915_s5] ss:$0 sm:$0xff]  ;;  %v569_v47 = vsub.s32 1, %v2241_v53 }
   0xa   :  { %56 = vadd.xlane.f32.xlu0 %v55_v7  ;;  %1978 = vmatpush3.bf16.msra.mxu1 %v1975_v43  ;;  %v1886_v42 = vld [vmem:[%s2917_s8] ss:$0 sm:$0xff] }
   0xb   :  { %1974 = vmatpush3.bf16.msra.mxu0 %v1971_v23  ;;  %1980 = vmatprep.subr.bf16.mxu1 %v1979_v45 }
   0xe   :  { %1982 = vmatpush3.bf16.msra.mxu1 %v1979_v45 }
   0xf   :  { %1984 = vmatprep.subr.bf16.mxu1 %v1983_v48 }
  0x12   :  { %1986 = vmatpush3.bf16.msra.mxu1 %v1983_v48  ;;  %v581_v48 = vsub.s32 2, %v2241_v53 }
  0x13   :  { %1988 = vmatprep.subr.bf16.mxu1 %v1987_v51 }
  0x16   :  { %1990 = vmatpush3.bf16.msra.mxu1 %v1987_v51  ;;  %v593_v51 = vsub.s32 3, %v2241_v53 }
  0x93   :  { %v54_v8 = vpop.xlane.xlu0 %53 }
  0x94   :  { %v59_v9 = vmul.f32 0.03125, %v54_v8 }
  0x96   :  { %v61_v10 = vsub.f32 %v47_v3, %v59_v9  ;;  %v1880_v9 = vld [vmem:[%s2915_s5 + $0x1] ss:$0 sm:$0xff] }
  0x97   :  { %v57_v11 = vpop.xlane.xlu0 %56 }
  0x98   :  { %v60_v12 = vmul.f32 0.03125, %v57_v11  ;;  %v63_v13 = vmul.f32 %v61_v10, %v61_v10 }
  0x9a   :  { %v62_v14 = vsub.f32 %v48_v5, %v60_v12  ;;  %v65_v15 = vsel %vm51_vm0, %v63_v13, 0.0 }
  0x9b   :  { %66 = vadd.xlane.f32.xlu1 %v65_v15 }
  0x9c   :  { %v64_v16 = vmul.f32 %v62_v14, %v62_v14 }
  0x9e   :  { %v68_v17 = vsel %vm51_vm0, %v64_v16, 0.0 }
  0x9f   :  { %69 = vadd.xlane.f32.xlu1 %v68_v17 }
 0x128   :  { %v67_v24 = vpop.xlane.xlu1 %66 }
 0x129   :  { %v71_v25 = vmul.f32 0.03125, %v67_v24 }
 0x12b   :  { %v73_v26 = vadd.f32 1e-05, %v71_v25 }
 0x12c   :  { %v70_v27 = vpop.xlane.xlu1 %69 }
 0x12d   :  { %2009 = vrsqrt.f32 %v73_v26  ;;  %v72_v28 = vmul.f32 0.03125, %v70_v27 }
 0x12f   :  { %v74_v29 = vadd.f32 1e-05, %v72_v28 }
 0x131   :  { %2011 = vrsqrt.f32 %v74_v29 }
 0x137   :  { %v2010_v30 = vpop.eup %2009 }
 0x138   :  { %v77_v32 = vmul.f32 %v2010_v30, %v61_v10 }
 0x13a   :  { %v85_v34 = vmul.f32 %v1873_v31, %v77_v32 }
 0x13b   :  { %v2012_v35 = vpop.eup %2011 }
 0x13c   :  { %v78_v36 = vmul.f32 %v2012_v35, %v62_v14  ;;  %v93_v37 = vadd.f32 %v1874_v33, %v85_v34 }
 0x13e   :  { %v86_v38 = vmul.f32 %v1873_v31, %v78_v36  ;;  %1926 = vmatprep.mubr.msk.f32.mxu0 %vm51_vm0, %v93_v37 }
 0x140   :  { %v94_v39 = vadd.f32 %v1874_v33, %v86_v38 }
 0x142   :  { %1927 = vmatmul.mubr.msk.f32.vlgmr.msra.gmra.mrb[0].mxu0 %vm51_vm0, %v94_v39 }
 0x215   :  { %v2246_v55 = vpop.f32.mrb[0].mxu0 }
 0x216   :  { %v202_v56 = vrot.slane %v2246_v55, 5  ;;  %v221_v57 = vrot.slane %v2246_v55, 6  ;;  %v2250_v58 = vpop.f32.mrb[1].mxu0  ;;  %v189_v63 = vmul.f32 %v2246_v55, %v1877_v54  ;;  %v240_v0 = vrot.slane %v2246_v55, 7 }
 0x217   :  { %v188_v59 = vmul.f32 %v1877_v54, %v2250_v58  ;;  %v201_v60 = vrot.slane %v2250_v58, 5  ;;  %v220_v61 = vrot.slane %v2250_v58, 6  ;;  %v239_v1 = vrot.slane %v2250_v58, 7 }
 0x218   :  { %v197_v14 = vadd.f32 %v1878_v62, %v189_v63  ;;  %v617_v63 = vsub.s32 5, %v2241_v53 }
 0x219   :  { %v206_v3 = vsel %vm200_vm1, 0.0, %v201_v60  ;;  %v203_v4 = vsel %vm200_vm1, %v201_v60, %v202_v56  ;;  %v196_v5 = vadd.f32 %v1878_v62, %v188_v59  ;;  %v222_v8 = vsel %vm219_vm2, %v220_v61, %v221_v57 }
 0x21a   :  { %v208_v6 = vsel %vm207_vm3, %v206_v3, 0.0  ;;  %v209_v7 = vsel %vm207_vm3, %v203_v4, 0.0  ;;  %v225_v12 = vsel %vm219_vm2, 0.0, %v220_v61  ;;  %v228_v13 = vsel %vm226_vm4, %v222_v8, 0.0 }
 0x21b   :  { %v215_v10 = vmul.f32 %v1879_v2, %v208_v6  ;;  %v216_v11 = vmul.f32 %v1879_v2, %v209_v7  ;;  %v227_v15 = vsel %vm226_vm4, %v225_v12, 0.0  ;;  %v241_v16 = vsel %vm238_vm5, %v239_v1, %v240_v0 }
 0x21c   :  { %v244_v17 = vsel %vm238_vm5, 0.0, %v239_v1  ;;  %v234_v20 = vmul.f32 %v1880_v9, %v227_v15  ;;  %v247_v22 = vsel %vm245_vm6, %v241_v16, 0.0  ;;  %v235_v23 = vmul.f32 %v1880_v9, %v228_v13 }
 0x21d   :  { %v217_v19 = vadd.f32 %v215_v10, %v196_v5  ;;  %v246_v21 = vsel %vm245_vm6, %v244_v17, 0.0  ;;  %v218_v24 = vadd.f32 %v216_v11, %v197_v14  ;;  %v254_v27 = vmul.f32 %v1881_v18, %v247_v22 }
 0x21e   :  { %v253_v26 = vmul.f32 %v1881_v18, %v246_v21  ;;  %v605_v61 = vsub.s32 4, %v2241_v53  ;;  %v629_v2 = vsub.s32 6, %v2241_v53  ;;  %v641_v5 = vsub.s32 7, %v2241_v53 }
 0x21f   :  { %v236_v25 = vadd.f32 %v234_v20, %v217_v19  ;;  %v237_v28 = vadd.f32 %v235_v23, %v218_v24  ;;  %v2101_v11 = vmov 1966171168   ;;  %vm1710_vm1 = vcmask 1044484  }
 0x220   :  { %v403_v12 = vunpack.c.l.s4 %v2101_v11  ;;  %vm1712_vm2 = vcmask 1045509   ;;  %vm1714_vm3 = vcmask 1046534   ;;  %vm1716_vm4 = vcmask 1047559  }
 0x221   :  { %v255_v29 = vadd.f32 %v253_v26, %v236_v25  ;;  %v256_v30 = vadd.f32 %v254_v27, %v237_v28 }
 0x222   :  { %v404_v16 = vunpack.c.0.s8 %v403_v12 }
 0x223   :  { %v1882_v31 = vmul.f32 -1.442695, %v255_v29  ;;  %v1883_v32 = vmul.f32 -1.442695, %v256_v30 }
 0x224   :  { %v2349_v20 = vsub.s32 %v404_v16, %v2241_v53 }
 0x225   :  { %2013 = vpow2.f32 %v1882_v31 }
 0x226   :  { %2015 = vpow2.f32 %v1883_v32 }
 0x22f   :  { %v2014_v33 = vpop.eup %2013 }
 0x230   :  { %v263_v34 = vadd.f32 1.0, %v2014_v33  ;;  %v2016_v35 = vpop.eup %2015 }
 0x231   :  { %v264_v36 = vadd.f32 1.0, %v2016_v35 }
 0x232   :  { %2017 = vrcp.f32 %v263_v34 }
 0x233   :  { %2019 = vrcp.f32 %v264_v36 }
 0x23c   :  { %v2018_v37 = vpop.eup %2017 }
 0x23d   :  { %v2279_v38 = vmul.f32 %v2018_v37, %v255_v29  ;;  %v2020_v39 = vpop.eup %2019 }
 0x23e   :  { %v2283_v40 = vmul.f32 %v2020_v39, %v256_v30 }
 0x23f   :  { %1945 = vmatprep.mubr.msk.f32.mxu1 %vm279_vm7, %v2279_v38 }
 0x240   :  { %1946 = vmatmul.mubr.msk.f32.vlgmr.msra.gmra.mrb[0].mxu1 %vm279_vm7, %v2283_v40 }
 0x313   :  { %v1947_v43 = vpop.f32.mrb[0].mxu1 }
 0x314   :  { %v2293_v44 = vadd.f32 %v1947_v43, %v1886_v42  ;;  %v2295_v45 = vpop.f32.mrb[1].mxu1  ;;  %v996_v46 = vrot.slane %v1947_v43, %v2288_v41  ;;  %v1008_v56 = vrot.slane %v1947_v43, %v569_v47  ;;  %v2310_v57 = vrot.slane %v1947_v43, %v581_v48 }
 0x315   :  { %v2301_v49 = vadd.f32 %v1886_v42, %v2295_v45  ;;  %v2315_v60 = vrot.slane %v1947_v43, %v593_v51  ;;  %v2321_v62 = vrot.slane %v1947_v43, %v605_v61  ;;  %v2328_v1 = vrot.slane %v1947_v43, %v617_v63 }
 0x316   :  { %v373_v50 = vmin.f32 %v2293_v44, 20.0  ;;  %1003 = vbcast.lane.b32.xlu1 %v996_v46, 328  ;;  %999 = vbcast.lane.b32.xlu0 %v996_v46, 320  ;;  %v2335_v4 = vrot.slane %v1947_v43, %v629_v2  ;;  %v2342_v7 = vrot.slane %v1947_v43, %v641_v5  ;;  %vm371_vm9 = vcmp.gt.f32.partialorder %v2293_v44, 20.0 }
 0x317   :  { %v372_v54 = vmin.f32 %v2301_v49, 20.0  ;;  %v2364_v33 = vrot.slane %v2295_v45, %v2288_v41  ;;  %vm370_vm11 = vcmp.gt.f32.partialorder %v2301_v49, 20.0  ;;  %v2380_v43 = vrot.slane %v2295_v45, %v569_v47 }
 0x318   :  { %v376_v52 = vmul.f32 1.442695, %v373_v50  ;;  %v2399_v47 = vrot.slane %v2295_v45, %v593_v51  ;;  %v2417_v51 = vrot.slane %v2295_v45, %v605_v61 }
 0x319   :  { %v374_v59 = vmul.f32 1.442695, %v372_v54 }
 0x31a   :  { %2021 = vpow2.f32 %v376_v52  ;;  %1011 = vbcast.lane.b32.xlu1 %v1008_v56, 320  ;;  %1023 = vbcast.lane.b32.xlu0 %v2310_v57, 320 }
 0x31b   :  { %2023 = vpow2.f32 %v374_v59  ;;  %v2427_v59 = vrot.slane %v2295_v45, %v629_v2 }
 0x31e   :  { %1015 = vbcast.lane.b32.xlu1 %v1008_v56, 328  ;;  %1035 = vbcast.lane.b32.xlu0 %v2315_v60, 320 }
 0x322   :  { %1027 = vbcast.lane.b32.xlu1 %v2310_v57, 328  ;;  %1047 = vbcast.lane.b32.xlu0 %v2321_v62, 320 }
 0x324   :  { %v2022_v0 = vpop.eup %2021 }
 0x325   :  { %v387_v3 = vadd.f32 1.0, %v2022_v0  ;;  %v2024_v6 = vpop.eup %2023  ;;  %v390_v8 = vmul.f32 -0.5, %v2022_v0  ;;  %v393_v14 = vand.u32 2147483647, %v2022_v0 }
 0x326   :  { %1039 = vbcast.lane.b32.xlu1 %v2315_v60, 328  ;;  %1059 = vbcast.lane.b32.xlu0 %v2328_v1, 320  ;;  %v378_v9 = vadd.f32 1.0, %v2024_v6  ;;  %v381_v19 = vmul.f32 -0.5, %v2024_v6  ;;  %v384_v25 = vand.u32 2147483647, %v2024_v6 }
 0x327   :  { %2025 = vlog2.f32 %v387_v3  ;;  %v391_v13 = vadd.f32 1.0, %v390_v8  ;;  %vm394_vm8 = vcmp.lt.f32.partialorder %v393_v14, 0.0004427343 }
 0x328   :  { %2027 = vlog2.f32 %v378_v9  ;;  %v382_v23 = vadd.f32 1.0, %v381_v19  ;;  %vm385_vm10 = vcmp.lt.f32.partialorder %v384_v25, 0.0004427343 }
 0x329   :  { %v392_v17 = vmul.f32 %v2022_v0, %v391_v13 }
 0x32a   :  { %1051 = vbcast.lane.b32.xlu1 %v2321_v62, 328  ;;  %1071 = vbcast.lane.b32.xlu0 %v2335_v4, 320  ;;  %v383_v28 = vmul.f32 %v2024_v6, %v382_v23 }
 0x32e   :  { %1063 = vbcast.lane.b32.xlu1 %v2328_v1, 328  ;;  %1083 = vbcast.lane.b32.xlu0 %v2342_v7, 320 }
 0x331   :  { %v2026_v10 = vpop.eup %2025 }
 0x332   :  { %1075 = vbcast.lane.b32.xlu1 %v2335_v4, 328  ;;  %1546 = vbcast.lane.b32.xlu0 %v996_v46, 336  ;;  %v389_v15 = vmul.f32 0.6931472, %v2026_v10  ;;  %v2028_v22 = vpop.eup %2027 }
 0x333   :  { %v380_v26 = vmul.f32 0.6931472, %v2028_v22 }
 0x334   :  { %v395_v18 = vsel %vm394_vm8, %v392_v17, %v389_v15 }
 0x335   :  { %v397_v21 = vsel %vm371_vm9, %v2293_v44, %v395_v18  ;;  %v386_v32 = vsel %vm385_vm10, %v383_v28, %v380_v26  ;;  %v2385_v44 = vrot.slane %v2295_v45, %v581_v48  ;;  %v2406_v48 = vld [vmem:[%s2918_s9 + $0x8] sm:$0xff]  ;;  %v2469_v28 = vrot.slane %v2295_v45, %v641_v5 }
 0x336   :  { %1087 = vbcast.lane.b32.xlu1 %v2342_v7, 328  ;;  %1554 = vbcast.lane.b32.xlu0 %v1008_v56, 336  ;;  %v781_v24 = vrot.slane %v397_v21, %v2349_v20  ;;  %v774_v27 = vcombine.high %v397_v21, %v397_v21  ;;  %v2358_v31 = vmul.f32 %v397_v21, %v2283_v40 }
 0x337   :  { %v396_v39 = vsel %vm370_vm11, %v2301_v49, %v386_v32 }
 0x338   :  { %v797_v29 = vrot.slane %v781_v24, %v2349_v20  ;;  %v789_v30 = vcombine.high %v781_v24, %v781_v24  ;;  %v788_v34 = vrot.slane %v774_v27, %v2349_v20  ;;  %v1090_v37 = vcombine.high %v2358_v31, %v2358_v31 }
 0x339   :  { %v554_v50 = vmul.f32 %v396_v39, %v2279_v38  ;;  %v408_v3 = vrot.slane %v396_v39, %v2349_v20  ;;  %v401_v18 = vcombine.high %v396_v39, %v396_v39 }
 0x33a   :  { %1550 = vbcast.lane.b32.xlu1 %v996_v46, 344  ;;  %1562 = vbcast.lane.b32.xlu0 %v2310_v57, 336  ;;  %v2369_v35 = vrot.slane %v789_v30, %v2349_v20  ;;  %v819_v36 = vcombine.high %v797_v29, %v797_v29  ;;  %v826_v42 = vrot.slane %v797_v29, %v2288_v41  ;;  %v2390_v46 = vld [vmem:[%s2918_s9] sm:$0xff]  ;;  %s2102_s9 = smov 64  }
 0x33b   :  { %v2393_v49 = vrot.slane %v788_v34, %v2349_v20  ;;  %v652_v8 = vcombine.high %v554_v50, %v554_v50  ;;  %v790_v10 = vcombine.high %v788_v34, %v788_v34  ;;  %v424_v26 = vrot.slane %v408_v3, %v2349_v20 }
 0x33c   :  { %v830_v52 = vrot.slane %v2369_v35, %v2288_v41  ;;  %v2409_v54 = vrot.slane %v819_v36, %v2288_v41  ;;  %v864_v61 = vmul.f32 %v826_v42, %v2406_v48  ;;  %v821_v17 = vcombine.high %v2369_v35, %v2369_v35 }
 0x33d   :  { %v2437_v6 = vrot.slane %v2393_v49, %v2288_v41  ;;  %v666_v14 = vrot.slane %v652_v8, %v2349_v20  ;;  %v416_v27 = vcombine.high %v408_v3, %v408_v3  ;;  %v2472_v30 = vrot.slane %v790_v10, %v2349_v20 }
 0x33e   :  { %1558 = vbcast.lane.b32.xlu1 %v1008_v56, 344  ;;  %1570 = vbcast.lane.b32.xlu0 %v2315_v60, 336  ;;  %v1104_v56 = vrot.slane %v1090_v37, %v2349_v20  ;;  %v865_v2 = vmul.f32 %v830_v52, %v2390_v46  ;;  %v867_v9 = vmul.f32 %v2409_v54, %v2390_v46  ;;  %v881_v19 = vmul.f32 1.442695, %v864_v61 }
 0x33f   :  { %v866_v16 = vmul.f32 %v830_v52, %v2406_v48  ;;  %v871_v21 = vmul.f32 %v2437_v6, %v2390_v46  ;;  %v2461_v23 = vrot.slane %v666_v14, %v2349_v20  ;;  %v668_v25 = vcombine.high %v666_v14, %v666_v14 }
 0x340   :  { %v1106_v0 = vcombine.high %v1104_v56, %v1104_v56  ;;  %v883_v24 = vmul.f32 1.442695, %v865_v2  ;;  %v887_v29 = vmul.f32 1.442695, %v867_v9  ;;  %v820_v32 = vcombine.high %v2393_v49, %v2393_v49 }
 0x341   :  { %v885_v34 = vmul.f32 1.442695, %v866_v16  ;;  %v2477_v35 = vrot.slane %v668_v25, %v2349_v20  ;;  %v453_v36 = vrot.slane %v424_v26, %v2288_v41  ;;  %v438_v53 = vrot.slane %v416_v27, %v2349_v20 }
 0x342   :  { %1566 = vbcast.lane.b32.xlu1 %v2310_v57, 344  ;;  %1578 = vbcast.lane.b32.xlu0 %v2321_v62, 336  ;;  %v2422_v57 = vrot.slane %v2295_v45, %v617_v63  ;;  %v659_v63 = vrot.slane %v554_v50, %v2349_v20  ;;  %v2444_v11 = vrot.slane %v1106_v0, %v2349_v20  ;;  %v895_v5 = vmul.f32 1.442695, %v871_v21 }
 0x343   :  { %v446_v37 = vcombine.high %v424_v26, %v424_v26  ;;  %v415_v45 = vrot.slane %v401_v18, %v2349_v20  ;;  %v2483_v39 = vrot.slane %v821_v17, %v2288_v41  ;;  %v457_v50 = vrot.slane %v438_v53, %v2288_v41 }
 0x344   :  { %v2449_v12 = vrot.slane %v659_v63, %v2349_v20  ;;  %v667_v13 = vcombine.high %v659_v63, %v659_v63  ;;  %v491_v52 = vmul.f32 %v453_v36, %v2406_v48  ;;  %v448_v3 = vcombine.high %v438_v53, %v438_v53 }
 0x345   :  { %v431_v0 = vrot.slane %v415_v45, %v2349_v20  ;;  %v492_v61 = vmul.f32 %v457_v50, %v2390_v46  ;;  %v493_v2 = vmul.f32 %v457_v50, %v2406_v48  ;;  %v417_v16 = vcombine.high %v415_v45, %v415_v45 }
 0x346   :  { %1574 = vbcast.lane.b32.xlu1 %v2315_v60, 344  ;;  %561 = vbcast.lane.b32.xlu0 %v2364_v33, 320  ;;  %v863_v60 = vmul.f32 %v826_v42, %v2390_v46  ;;  %v2458_v22 = vrot.slane %v667_v13, %v2349_v20  ;;  %v490_v42 = vmul.f32 %v453_v36, %v2390_v46  ;;  %v508_v63 = vmul.f32 1.442695, %v491_v52 }
 0x347   :  { %v469_v9 = vrot.slane %v431_v0, %v2288_v41  ;;  %v465_v13 = vrot.slane %v448_v3, %v2288_v41  ;;  %v510_v14 = vmul.f32 1.442695, %v492_v61  ;;  %v512_v17 = vmul.f32 1.442695, %v493_v2 }
 0x348   :  { %v879_v15 = vmul.f32 1.442695, %v863_v60  ;;  %v506_v60 = vmul.f32 1.442695, %v490_v42  ;;  %v445_v25 = vrot.slane %v417_v16, %v2349_v20 }
 0x349   :  { %v498_v18 = vmul.f32 %v469_v9, %v2390_v46  ;;  %v496_v21 = vmul.f32 %v465_v13, %v2390_v46 }
 0x34a   :  { %1582 = vbcast.lane.b32.xlu1 %v2321_v62, 344  ;;  %573 = vbcast.lane.b32.xlu0 %v2380_v43, 320  ;;  %v2431_v62 = vrot.slane %v1104_v56, %v2349_v20  ;;  %2029 = vpow2.f32 %v879_v15  ;;  %v461_v56 = vrot.slane %v446_v37, %v2288_v41  ;;  %v473_v45 = vrot.slane %v445_v25, %v2288_v41 }
 0x34b   :  { %2031 = vpow2.f32 %v881_v19  ;;  %v522_v27 = vmul.f32 1.442695, %v498_v18  ;;  %v518_v53 = vmul.f32 1.442695, %v496_v21  ;;  %v449_v52 = vcombine.high %v445_v25, %v445_v25 }
 0x34c   :  { %2033 = vpow2.f32 %v883_v24  ;;  %v494_v8 = vmul.f32 %v461_v56, %v2390_v46  ;;  %v495_v10 = vmul.f32 %v461_v56, %v2406_v48  ;;  %v499_v24 = vmul.f32 %v469_v9, %v2406_v48 }
 0x34d   :  { %2035 = vpow2.f32 %v887_v29  ;;  %v497_v29 = vmul.f32 %v465_v13, %v2406_v48  ;;  %v501_v3 = vmul.f32 %v473_v45, %v2406_v48 }
 0x34e   :  { %565 = vbcast.lane.b32.xlu1 %v2364_v33, 328  ;;  %585 = vbcast.lane.b32.xlu0 %v2385_v44, 320  ;;  %2037 = vpow2.f32 %v885_v34  ;;  %v514_v15 = vmul.f32 1.442695, %v494_v8  ;;  %v516_v19 = vmul.f32 1.442695, %v495_v10  ;;  %v447_v34 = vcombine.high %v431_v0, %v431_v0 }
 0x34f   :  { %2039 = vpow2.f32 %v506_v60  ;;  %v524_v37 = vmul.f32 1.442695, %v499_v24  ;;  %v520_v42 = vmul.f32 1.442695, %v497_v29  ;;  %v868_v60 = vmul.f32 %v2409_v54, %v2406_v48 }
 0x350   :  { %2041 = vpow2.f32 %v508_v63  ;;  %v477_v50 = vrot.slane %v447_v34, %v2288_v41  ;;  %v500_v0 = vmul.f32 %v473_v45, %v2390_v46  ;;  %v481_v8 = vrot.slane %v449_v52, %v2288_v41 }
 0x351   :  { %2043 = vpow2.f32 %v895_v5  ;;  %v869_v54 = vmul.f32 %v2483_v39, %v2390_v46  ;;  %v528_v10 = vmul.f32 1.442695, %v501_v3  ;;  %v872_v24 = vmul.f32 %v2437_v6, %v2406_v48 }
 0x352   :  { %577 = vbcast.lane.b32.xlu1 %v2380_v43, 328  ;;  %597 = vbcast.lane.b32.xlu0 %v2399_v47, 320  ;;  %2045 = vpow2.f32 %v510_v14  ;;  %v502_v63 = vmul.f32 %v477_v50, %v2390_v46  ;;  %v503_v2 = vmul.f32 %v477_v50, %v2406_v48  ;;  %v526_v9 = vmul.f32 1.442695, %v500_v0 }
 0x353   :  { %2047 = vpow2.f32 %v514_v15  ;;  %v846_v14 = vrot.slane %v2472_v30, %v2288_v41  ;;  %v504_v16 = vmul.f32 %v481_v8, %v2390_v46  ;;  %v889_v29 = vmul.f32 1.442695, %v868_v60 }
 0x354   :  { %v2030_v26 = vpop.eup %2029  ;;  %2049 = vpow2.f32 %v512_v17  ;;  %v530_v15 = vmul.f32 1.442695, %v502_v63  ;;  %v532_v18 = vmul.f32 1.442695, %v503_v2  ;;  %v850_v34 = vrot.slane %v820_v32, %v2288_v41 }
 0x355   :  { %v2505_v36 = vpop.eup %2031  ;;  %2051 = vpow2.f32 %v522_v27  ;;  %v534_v25 = vmul.f32 1.442695, %v504_v16  ;;  %v891_v6 = vmul.f32 1.442695, %v869_v54  ;;  %v873_v45 = vmul.f32 %v846_v14, %v2390_v46 }
 0x356   :  { %589 = vbcast.lane.b32.xlu1 %v2385_v44, 328  ;;  %609 = vbcast.lane.b32.xlu0 %v2417_v51, 320  ;;  %v2034_v5 = vpop.eup %2033  ;;  %2053 = vpow2.f32 %v516_v19  ;;  %v505_v19 = vmul.f32 %v481_v8, %v2406_v48  ;;  %v897_v32 = vmul.f32 1.442695, %v872_v24  ;;  %v875_v0 = vmul.f32 %v850_v34, %v2390_v46 }
 0x357   :  { %v2511_v56 = vpop.eup %2035  ;;  %2055 = vpow2.f32 %v518_v53  ;;  %v899_v60 = vmul.f32 1.442695, %v873_v45  ;;  %v874_v2 = vmul.f32 %v846_v14, %v2406_v48  ;;  %v876_v16 = vmul.f32 %v850_v34, %v2406_v48 }
 0x358   :  { %v2517_v61 = vpop.eup %2037  ;;  %2057 = vpow2.f32 %v524_v37  ;;  %v536_v53 = vmul.f32 1.442695, %v505_v19  ;;  %v1097_v34 = vrot.slane %v2358_v31, %v2349_v20 }
 0x359   :  { %v2040_v13 = vpop.eup %2039  ;;  %2059 = vpow2.f32 %v520_v42  ;;  %v822_v42 = vcombine.high %v2472_v30, %v2472_v30  ;;  %v870_v30 = vmul.f32 %v2483_v39, %v2406_v48  ;;  %v901_v14 = vmul.f32 1.442695, %v874_v2 }
 0x35a   :  { %601 = vbcast.lane.b32.xlu1 %v2399_v47, 328  ;;  %621 = vbcast.lane.b32.xlu0 %v2422_v57, 320  ;;  %v2042_v17 = vpop.eup %2041  ;;  %538 = vst.msk [vmem:[#allocation2] sm:$0xff] %vm279_vm7, %v2040_v13  ;;  %2061 = vpow2.f32 %v526_v9  ;;  %v903_v9 = vmul.f32 1.442695, %v875_v0 }
 0x35b   :  { %v2044_v21 = vpop.eup %2043  ;;  %539 = vst.msk [vmem:[#allocation2 + $0x8] sm:$0xff] %vm279_vm7, %v2042_v17  ;;  %2063 = vpow2.f32 %v530_v15  ;;  %v854_v3 = vrot.slane %v822_v42, %v2288_v41  ;;  %v893_v39 = vmul.f32 1.442695, %v870_v30 }
 0x35c   :  { %v2046_v27 = vpop.eup %2045  ;;  %2065 = vpow2.f32 %v528_v10 }
 0x35d   :  { %v2048_v37 = vpop.eup %2047  ;;  %540 = vst.msk [vmem:[#allocation2 + $0x10] sm:$0xff] %vm279_vm7, %v2046_v27  ;;  %2067 = vpow2.f32 %v534_v25  ;;  %v877_v10 = vmul.f32 %v854_v3, %v2390_v46  ;;  %v878_v19 = vmul.f32 %v854_v3, %v2406_v48 }
 0x35e   :  { %613 = vbcast.lane.b32.xlu1 %v2417_v51, 328  ;;  %633 = vbcast.lane.b32.xlu0 %v2427_v59, 320  ;;  %v2050_v50 = vpop.eup %2049  ;;  %542 = vst.msk [vmem:[#allocation2 + $0x20] sm:$0xff] %vm279_vm7, %v2048_v37  ;;  %2069 = vpow2.f32 %v532_v18  ;;  %v1113_v37 = vrot.slane %v1097_v34, %v2349_v20 }
 0x35f   :  { %541 = vst.msk [vmem:[#allocation2 + $0x18] sm:$0xff] %vm279_vm7, %v2050_v50  ;;  %2071 = vpow2.f32 %v536_v53  ;;  %v907_v46 = vmul.f32 1.442695, %v877_v10  ;;  %v909_v25 = vmul.f32 1.442695, %v878_v19 }
 0x360   :  { %2073 = vpow2.f32 %v889_v29  ;;  %v1142_v42 = vrot.slane %v1113_v37, %v2288_v41 }
 0x361   :  { %2075 = vpow2.f32 %v891_v6  ;;  %v1105_v6 = vcombine.high %v1097_v34, %v1097_v34 }
 0x362   :  { %625 = vbcast.lane.b32.xlu1 %v2422_v57, 328  ;;  %645 = vbcast.lane.b32.xlu0 %v2469_v28, 320  ;;  %2077 = vpow2.f32 %v897_v32 }
 0x363   :  { %2079 = vpow2.f32 %v899_v60  ;;  %v1127_v50 = vrot.slane %v1105_v6, %v2349_v20 }
 0x364   :  { %2081 = vpow2.f32 %v893_v39 }
 0x365   :  { %v1146_v30 = vrot.slane %v1127_v50, %v2288_v41  ;;  %v1137_v20 = vcombine.high %v1127_v50, %v1127_v50 }
 0x366   :  { %637 = vbcast.lane.b32.xlu1 %v2427_v59, 328  ;;  %927 = vrot.lane.b32.xlu0 %v2030_v26, %s2102_s9  ;;  %v2052_v26 = vpop.eup %2051  ;;  %2083 = vpow2.f32 %v903_v9 }
 0x367   :  { %v2054_v49 = vpop.eup %2053  ;;  %546 = vst.msk [vmem:[#allocation2 + $0x40] sm:$0xff] %vm279_vm7, %v2052_v26  ;;  %2085 = vpow2.f32 %v901_v14  ;;  %v1154_v9 = vrot.slane %v1137_v20, %v2288_v41  ;;  %v1158_v14 = vrot.slane %v2431_v62, %v2288_v41 }
 0x368   :  { %v2056_v52 = vpop.eup %2055  ;;  %543 = vst.msk [vmem:[#allocation2 + $0x28] sm:$0xff] %vm279_vm7, %v2054_v49  ;;  %2087 = vpow2.f32 %v907_v46 }
 0x369   :  { %v2058_v63 = vpop.eup %2057  ;;  %544 = vst.msk [vmem:[#allocation2 + $0x30] sm:$0xff] %vm279_vm7, %v2056_v52  ;;  %v1135_v52 = vcombine.high %v1113_v37, %v1113_v37 }
 0x36a   :  { %649 = vbcast.lane.b32.xlu1 %v2469_v28, 328  ;;  %931 = vrot.lane.b32.xlu0 %v2034_v5, %s2102_s9  ;;  %v2060_v5 = vpop.eup %2059  ;;  %547 = vst.msk [vmem:[#allocation2 + $0x48] sm:$0xff] %vm279_vm7, %v2058_v63 }
 0x36b   :  { %v2062_v8 = vpop.eup %2061  ;;  %545 = vst.msk [vmem:[#allocation2 + $0x38] sm:$0xff] %vm279_vm7, %v2060_v5  ;;  %v1150_v5 = vrot.slane %v1135_v52, %v2288_v41 }
 0x36c   :  { %v2064_v54 = vpop.eup %2063  ;;  %548 = vst.msk [vmem:[#allocation2 + $0x50] sm:$0xff] %vm279_vm7, %v2062_v8 }
 0x36d   :  { %v2066_v13 = vpop.eup %2065  ;;  %550 = vst.msk [vmem:[#allocation2 + $0x60] sm:$0xff] %vm279_vm7, %v2064_v54 }
 0x36e   :  { %929 = vrot.lane.b32.xlu1 %v2505_v36, %s2102_s9  ;;  %935 = vrot.lane.b32.xlu0 %v2511_v56, %s2102_s9  ;;  %v2068_v36 = vpop.eup %2067  ;;  %549 = vst.msk [vmem:[#allocation2 + $0x58] sm:$0xff] %vm279_vm7, %v2066_v13 }
 0x36f   :  { %v2070_v56 = vpop.eup %2069  ;;  %552 = vst.msk [vmem:[#allocation2 + $0x70] sm:$0xff] %vm279_vm7, %v2068_v36 }
 0x370   :  { %v2072_v15 = vpop.eup %2071  ;;  %551 = vst.msk [vmem:[#allocation2 + $0x68] sm:$0xff] %vm279_vm7, %v2070_v56 }
 0x371   :  { %v2074_v17 = vpop.eup %2073  ;;  %553 = vst.msk [vmem:[#allocation2 + $0x78] sm:$0xff] %vm279_vm7, %v2072_v15 }
 0x372   :  { %933 = vrot.lane.b32.xlu1 %v2517_v61, %s2102_s9  ;;  %943 = vrot.lane.b32.xlu0 %v2044_v21, %s2102_s9  ;;  %v2076_v18 = vpop.eup %2075  ;;  %v905_v61 = vmul.f32 1.442695, %v876_v16 }
 0x373   :  { %v2078_v21 = vpop.eup %2077 }
 0x374   :  { %v2080_v24 = vpop.eup %2079  ;;  %2089 = vpow2.f32 %v905_v61  ;;  %v1136_v61 = vcombine.high %v2431_v62, %v2431_v62 }
 0x375   :  { %v2082_v27 = vpop.eup %2081  ;;  %2091 = vpow2.f32 %v909_v25 }
 0x376   :  { %937 = vrot.lane.b32.xlu1 %v2074_v17, %s2102_s9  ;;  %939 = vrot.lane.b32.xlu0 %v2076_v18, %s2102_s9  ;;  %v2084_v29 = vpop.eup %2083  ;;  %v1162_v18 = vrot.slane %v2444_v11, %v2288_v41 }
 0x377   :  { %v2086_v53 = vpop.eup %2085 }
 0x378   :  { %v2088_v48 = vpop.eup %2087 }
 0x37a   :  { %945 = vrot.lane.b32.xlu1 %v2078_v21, %s2102_s9  ;;  %947 = vrot.lane.b32.xlu0 %v2080_v24, %s2102_s9 }
 0x37e   :  { %941 = vrot.lane.b32.xlu1 %v2082_v27, %s2102_s9  ;;  %951 = vrot.lane.b32.xlu0 %v2084_v29, %s2102_s9  ;;  %v2090_v45 = vpop.eup %2089  ;;  %v1166_v27 = vrot.slane %v1136_v61, %v2288_v41  ;;  %v1138_v29 = vcombine.high %v2444_v11, %v2444_v11 }
 0x37f   :  { %v2092_v31 = vpop.eup %2091 }
 0x380   :  { %v1170_v6 = vrot.slane %v1138_v29, %v2288_v41  ;;  %v700_v29 = vcombine.high %v2477_v35, %v2477_v35 }
 0x382   :  { %949 = vrot.lane.b32.xlu1 %v2086_v53, %s2102_s9  ;;  %955 = vrot.lane.b32.xlu0 %v2088_v48, %s2102_s9 }
 0x386   :  { %953 = vrot.lane.b32.xlu1 %v2090_v45, %s2102_s9 }
 0x388   :  { %v1004_v26 = vpop.permute.xlu1 %1003  ;;  %v1000_v49 = vpop.permute.xlu0 %999 }
 0x389   :  { %v1179_v32 = vmul.f32 %v1142_v42, %v1000_v49  ;;  %v1180_v60 = vmul.f32 %v1142_v42, %v1004_v26 }
 0x38a   :  { %957 = vrot.lane.b32.xlu1 %v2092_v31, %s2102_s9 }
 0x38b   :  { %1211 = vrot.lane.b32.xlu0 %v1179_v32, %s2102_s9 }
 0x38c   :  { %v1012_v0 = vpop.permute.xlu1 %1011  ;;  %v1024_v3 = vpop.permute.xlu0 %1023 }
 0x38d   :  { %v1181_v63 = vmul.f32 %v1146_v30, %v1012_v0  ;;  %v1183_v2 = vmul.f32 %v1150_v5, %v1024_v3  ;;  %v1888_v3 = vmul.f32 -1.442695, %v2250_v58 }
 0x38e   :  { %1213 = vrot.lane.b32.xlu1 %v1180_v60, %s2102_s9 }
 0x38f   :  { %1215 = vrot.lane.b32.xlu0 %v1181_v63, %s2102_s9  ;;  %2093 = vpow2.f32 %v1888_v3 }
 0x390   :  { %v1016_v8 = vpop.permute.xlu1 %1015  ;;  %v1036_v39 = vpop.permute.xlu0 %1035 }
 0x391   :  { %v1182_v54 = vmul.f32 %v1146_v30, %v1016_v8  ;;  %v1185_v36 = vmul.f32 %v1154_v9, %v1036_v39 }
 0x393   :  { %1217 = vrot.lane.b32.xlu1 %v1182_v54, %s2102_s9  ;;  %1219 = vrot.lane.b32.xlu0 %v1183_v2, %s2102_s9  ;;  %v699_v54 = vcombine.high %v2458_v22, %v2458_v22 }
 0x394   :  { %v1028_v10 = vpop.permute.xlu1 %1027  ;;  %v1048_v13 = vpop.permute.xlu0 %1047 }
 0x395   :  { %v1184_v56 = vmul.f32 %v1150_v5, %v1028_v10  ;;  %v1187_v16 = vmul.f32 %v1158_v14, %v1048_v13 }
 0x397   :  { %1221 = vrot.lane.b32.xlu1 %v1184_v56, %s2102_s9  ;;  %1223 = vrot.lane.b32.xlu0 %v1185_v36, %s2102_s9 }
 0x398   :  { %v1040_v15 = vpop.permute.xlu1 %1039  ;;  %v1060_v46 = vpop.permute.xlu0 %1059 }
 0x399   :  { %v1186_v17 = vmul.f32 %v1154_v9, %v1040_v15  ;;  %v1189_v24 = vmul.f32 %v1162_v18, %v1060_v46 }
 0x39b   :  { %1225 = vrot.lane.b32.xlu1 %v1186_v17, %s2102_s9  ;;  %1227 = vrot.lane.b32.xlu0 %v1187_v16, %s2102_s9 }
 0x39c   :  { %v1052_v19 = vpop.permute.xlu1 %1051  ;;  %v1072_v21 = vpop.permute.xlu0 %1071 }
 0x39d   :  { %v1188_v25 = vmul.f32 %v1158_v14, %v1052_v19  ;;  %v1191_v48 = vmul.f32 %v1166_v27, %v1072_v21  ;;  %v2094_v14 = vpop.eup %2093  ;;  %v698_v19 = vcombine.high %v2461_v23, %v2461_v23 }
 0x39f   :  { %1229 = vrot.lane.b32.xlu1 %v1188_v25, %s2102_s9  ;;  %1231 = vrot.lane.b32.xlu0 %v1189_v24, %s2102_s9 }
 0x3a0   :  { %v1064_v34 = vpop.permute.xlu1 %1063  ;;  %v1084_v53 = vpop.permute.xlu0 %1083 }
 0x3a1   :  { %v1190_v37 = vmul.f32 %v1162_v18, %v1064_v34  ;;  %v1193_v42 = vmul.f32 %v1170_v6, %v1084_v53 }
 0x3a3   :  { %1233 = vrot.lane.b32.xlu1 %v1190_v37, %s2102_s9  ;;  %1235 = vrot.lane.b32.xlu0 %v1191_v48, %s2102_s9 }
 0x3a4   :  { %v1076_v62 = vpop.permute.xlu1 %1075  ;;  %v2615_v45 = vpop.permute.xlu0 %1546 }
 0x3a5   :  { %v1192_v50 = vmul.f32 %v1166_v27, %v1076_v62 }
 0x3a7   :  { %1237 = vrot.lane.b32.xlu1 %v1192_v50, %s2102_s9  ;;  %1239 = vrot.lane.b32.xlu0 %v1193_v42, %s2102_s9 }
 0x3a8   :  { %v1088_v11 = vpop.permute.xlu1 %1087  ;;  %v2619_v26 = vpop.permute.xlu0 %1554 }
 0x3a9   :  { %v1194_v49 = vmul.f32 %v1170_v6, %v1088_v11 }
 0x3ab   :  { %1241 = vrot.lane.b32.xlu1 %v1194_v49, %s2102_s9  ;;  %1586 = vbcast.lane.b32.xlu0 %v2328_v1, 336 }
 0x3ac   :  { %v2623_v31 = vpop.permute.xlu1 %1550  ;;  %v2625_v32 = vpop.permute.xlu0 %1562 }
 0x3af   :  { %1590 = vbcast.lane.b32.xlu1 %v2328_v1, 344  ;;  %1594 = vbcast.lane.b32.xlu0 %v2335_v4, 336  ;;  %v704_v1 = vrot.slane %v2449_v12, %v2288_v41 }
 0x3b0   :  { %v2629_v30 = vpop.permute.xlu1 %1558  ;;  %v2631_v52 = vpop.permute.xlu0 %1570 }
 0x3b3   :  { %1598 = vbcast.lane.b32.xlu1 %v2335_v4, 344  ;;  %1602 = vbcast.lane.b32.xlu0 %v2342_v7, 336  ;;  %v708_v4 = vrot.slane %v2458_v22, %v2288_v41  ;;  %v1754_v22 = vadd.f32 1.0, %v2094_v14 }
 0x3b4   :  { %v2635_v60 = vpop.permute.xlu1 %1566  ;;  %v2637_v0 = vpop.permute.xlu0 %1578 }
 0x3b5   :  { %2095 = vrcp.f32 %v1754_v22 }
 0x3b7   :  { %1606 = vbcast.lane.b32.xlu1 %v2342_v7, 344  ;;  %1378 = vbcast.lane.b32.xlu0 %v2364_v33, 336  ;;  %v697_v7 = vcombine.high %v2449_v12, %v2449_v12 }
 0x3b8   :  { %v2644_v63 = vpop.permute.xlu1 %1574  ;;  %v562_v5 = vpop.permute.xlu0 %561 }
 0x3b9   :  { %v741_v20 = vmul.f32 %v704_v1, %v562_v5 }
 0x3bb   :  { %757 = vst.msk [vmem:[#allocation3] sm:$0xff] %vm279_vm7, %v741_v20  ;;  %1382 = vbcast.lane.b32.xlu1 %v2364_v33, 344  ;;  %1386 = vbcast.lane.b32.xlu0 %v2380_v43, 336  ;;  %v712_v33 = vrot.slane %v697_v7, %v2288_v41  ;;  %v1773_v20 = vld [vmem:[%s2919_s11 + $0x8] sm:$0xff] }
 0x3bc   :  { %v2653_v8 = vpop.permute.xlu1 %1582  ;;  %v574_v39 = vpop.permute.xlu0 %573 }
 0x3bd   :  { %v743_v2 = vmul.f32 %v708_v4, %v574_v39  ;;  %v1775_v39 = vld [vmem:[%s2919_s11 + $0x18] sm:$0xff] }
 0x3bf   :  { %759 = vst.msk [vmem:[#allocation3 + $0x10] sm:$0xff] %vm279_vm7, %v743_v2  ;;  %1390 = vbcast.lane.b32.xlu1 %v2380_v43, 344  ;;  %1394 = vbcast.lane.b32.xlu0 %v2385_v44, 336  ;;  %v716_v43 = vrot.slane %v699_v54, %v2288_v41  ;;  %v2096_v50 = vpop.eup %2095  ;;  %v1777_v54 = vld [vmem:[%s2919_s11 + $0x28] sm:$0xff] }
 0x3c0   :  { %v566_v9 = vpop.permute.xlu1 %565  ;;  %v586_v10 = vpop.permute.xlu0 %585 }
 0x3c1   :  { %v742_v13 = vmul.f32 %v704_v1, %v566_v9  ;;  %v745_v36 = vmul.f32 %v712_v33, %v586_v10 }
 0x3c3   :  { %758 = vst.msk [vmem:[#allocation3 + $0x8] sm:$0xff] %vm279_vm7, %v742_v13  ;;  %761 = vst.msk [vmem:[#allocation3 + $0x20] sm:$0xff] %vm279_vm7, %v745_v36  ;;  %1398 = vbcast.lane.b32.xlu1 %v2385_v44, 344  ;;  %1402 = vbcast.lane.b32.xlu0 %v2399_v47, 336  ;;  %v720_v44 = vrot.slane %v2461_v23, %v2288_v41 }
 0x3c4   :  { %v578_v12 = vpop.permute.xlu1 %577  ;;  %v598_v56 = vpop.permute.xlu0 %597 }
 0x3c5   :  { %v744_v15 = vmul.f32 %v708_v4, %v578_v12  ;;  %v747_v46 = vmul.f32 %v716_v43, %v598_v56  ;;  %v1774_v4 = vld [vmem:[%s2919_s11 + $0x10] sm:$0xff] }
 0x3c6   :  { %v1995_v2 = vpack.c.bf16 %v1775_v39, %v1774_v4 }
 0x3c7   :  { %760 = vst.msk [vmem:[#allocation3 + $0x18] sm:$0xff] %vm279_vm7, %v744_v15  ;;  %763 = vst.msk [vmem:[#allocation3 + $0x30] sm:$0xff] %vm279_vm7, %v747_v46  ;;  %1406 = vbcast.lane.b32.xlu1 %v2399_v47, 344  ;;  %1410 = vbcast.lane.b32.xlu0 %v2417_v51, 336  ;;  %v724_v47 = vrot.slane %v2477_v35, %v2288_v41 }
 0x3c8   :  { %v590_v16 = vpop.permute.xlu1 %589  ;;  %v610_v17 = vpop.permute.xlu0 %609 }
 0x3c9   :  { %v746_v18 = vmul.f32 %v712_v33, %v590_v16  ;;  %v749_v61 = vmul.f32 %v720_v44, %v610_v17  ;;  %v1776_v33 = vld [vmem:[%s2919_s11 + $0x20] sm:$0xff] }
 0x3ca   :  { %v1999_v13 = vpack.c.bf16 %v1777_v54, %v1776_v33 }
 0x3cb   :  { %762 = vst.msk [vmem:[#allocation3 + $0x28] sm:$0xff] %vm279_vm7, %v746_v18  ;;  %765 = vst.msk [vmem:[#allocation3 + $0x40] sm:$0xff] %vm279_vm7, %v749_v61  ;;  %1414 = vbcast.lane.b32.xlu1 %v2417_v51, 344  ;;  %1418 = vbcast.lane.b32.xlu0 %v2422_v57, 336  ;;  %v728_v51 = vrot.slane %v698_v19, %v2288_v41 }
 0x3cc   :  { %v602_v21 = vpop.permute.xlu1 %601  ;;  %v622_v24 = vpop.permute.xlu0 %621 }
 0x3cd   :  { %v748_v25 = vmul.f32 %v716_v43, %v602_v21  ;;  %v751_v27 = vmul.f32 %v724_v47, %v622_v24 }
 0x3cf   :  { %764 = vst.msk [vmem:[#allocation3 + $0x38] sm:$0xff] %vm279_vm7, %v748_v25  ;;  %767 = vst.msk [vmem:[#allocation3 + $0x50] sm:$0xff] %vm279_vm7, %v751_v27  ;;  %1422 = vbcast.lane.b32.xlu1 %v2422_v57, 344  ;;  %1426 = vbcast.lane.b32.xlu0 %v2427_v59, 336  ;;  %v732_v57 = vrot.slane %v700_v29, %v2288_v41 }
 0x3d0   :  { %v614_v34 = vpop.permute.xlu1 %613  ;;  %v634_v23 = vpop.permute.xlu0 %633 }
 0x3d1   :  { %v750_v53 = vmul.f32 %v720_v44, %v614_v34  ;;  %v753_v48 = vmul.f32 %v728_v51, %v634_v23 }
 0x3d3   :  { %766 = vst.msk [vmem:[#allocation3 + $0x48] sm:$0xff] %vm279_vm7, %v750_v53  ;;  %769 = vst.msk [vmem:[#allocation3 + $0x60] sm:$0xff] %vm279_vm7, %v753_v48  ;;  %1430 = vbcast.lane.b32.xlu1 %v2427_v59, 344  ;;  %1434 = vbcast.lane.b32.xlu0 %v2469_v28, 336  ;;  %v1760_v59 = vmul.f32 %v2096_v50, %v2250_v58  ;;  %v1772_v58 = vld [vmem:[%s2919_s11] sm:$0xff] }
 0x3d4   :  { %v626_v37 = vpop.permute.xlu1 %625  ;;  %v646_v6 = vpop.permute.xlu0 %645  ;;  %v1991_v7 = vpack.c.bf16 %v1773_v20, %v1772_v58 }
 0x3d5   :  { %v752_v62 = vmul.f32 %v724_v47, %v626_v37  ;;  %v755_v42 = vmul.f32 %v732_v57, %v646_v6 }
 0x3d6   :  { %1992 = vmatprep.subr.bf16.mxu0 %v1991_v7 }
 0x3d7   :  { %768 = vst.msk [vmem:[#allocation3 + $0x58] sm:$0xff] %vm279_vm7, %v752_v62  ;;  %771 = vst.msk [vmem:[#allocation3 + $0x70] sm:$0xff] %vm279_vm7, %v755_v42  ;;  %1438 = vbcast.lane.b32.xlu1 %v2469_v28, 344  ;;  %1994 = vmatpush3.bf16.msra.mxu0 %v1991_v7 }
 0x3d8   :  { %v638_v35 = vpop.permute.xlu1 %637  ;;  %v928_v11 = vpop.permute.xlu0 %927  ;;  %1996 = vmatprep.subr.bf16.mxu0 %v1995_v2 }
 0x3d9   :  { %v754_v49 = vmul.f32 %v728_v51, %v638_v35  ;;  %976 = vst.msk [vmem:[#allocation2] sm:$0xff] %vm975_vm12, %v928_v11 }
 0x3db   :  { %770 = vst.msk [vmem:[#allocation3 + $0x68] sm:$0xff] %vm279_vm7, %v754_v49  ;;  %1764 = vrot.lane.b32.xlu1 %v1760_v59, %s2102_s9  ;;  %1998 = vmatpush3.bf16.msra.mxu0 %v1995_v2 }
 0x3dc   :  { %v650_v41 = vpop.permute.xlu1 %649  ;;  %v932_v3 = vpop.permute.xlu0 %931  ;;  %2000 = vmatprep.subr.bf16.mxu0 %v1999_v13 }
 0x3dd   :  { %v756_v1 = vmul.f32 %v732_v57, %v650_v41  ;;  %978 = vst.msk [vmem:[#allocation2 + $0x10] sm:$0xff] %vm975_vm12, %v932_v3 }
 0x3df   :  { %772 = vst.msk [vmem:[#allocation3 + $0x78] sm:$0xff] %vm279_vm7, %v756_v1  ;;  %2002 = vmatpush3.bf16.msra.mxu0 %v1999_v13 }
 0x3e0   :  { %v930_v5 = vpop.permute.xlu1 %929  ;;  %v936_v28 = vpop.permute.xlu0 %935  ;;  %v1275_v61 = vld [vmem:[#allocation2] sm:$0xff] }
 0x3e1   :  { %977 = vst.msk [vmem:[#allocation2 + $0x8] sm:$0xff] %vm975_vm12, %v930_v5  ;;  %980 = vst.msk [vmem:[#allocation2 + $0x20] sm:$0xff] %vm975_vm12, %v936_v28  ;;  %v1277_v19 = vmul.f32 0.0, %v1275_v61 }
 0x3e4   :  { %v934_v9 = vpop.permute.xlu1 %933  ;;  %v944_v10 = vpop.permute.xlu0 %943  ;;  %v1286_v29 = vld [vmem:[#allocation2 + $0x10] sm:$0xff] }
 0x3e5   :  { %979 = vst.msk [vmem:[#allocation2 + $0x18] sm:$0xff] %vm975_vm12, %v934_v9  ;;  %984 = vst.msk [vmem:[#allocation2 + $0x40] sm:$0xff] %vm975_vm12, %v944_v10 }
 0x3e8   :  { %v938_v36 = vpop.permute.xlu1 %937  ;;  %v940_v43 = vpop.permute.xlu0 %939  ;;  %v1276_v21 = vld [vmem:[#allocation2 + $0x8] sm:$0xff]  ;;  %v1299_v50 = vld [vmem:[#allocation2 + $0x20] sm:$0xff] }
 0x3e9   :  { %981 = vst.msk [vmem:[#allocation2 + $0x28] sm:$0xff] %vm975_vm12, %v938_v36  ;;  %982 = vst.msk [vmem:[#allocation2 + $0x30] sm:$0xff] %vm975_vm12, %v940_v43  ;;  %v1278_v34 = vmul.f32 0.0, %v1276_v21 }
 0x3ec   :  { %v946_v12 = vpop.permute.xlu1 %945  ;;  %v948_v56 = vpop.permute.xlu0 %947  ;;  %v1287_v62 = vld [vmem:[#allocation2 + $0x18] sm:$0xff]  ;;  %v1325_v43 = vld [vmem:[#allocation2 + $0x40] sm:$0xff] }
 0x3ed   :  { %985 = vst.msk [vmem:[#allocation2 + $0x48] sm:$0xff] %vm975_vm12, %v946_v12  ;;  %986 = vst.msk [vmem:[#allocation2 + $0x50] sm:$0xff] %vm975_vm12, %v948_v56 }
 0x3f0   :  { %v942_v14 = vpop.permute.xlu1 %941  ;;  %v952_v15 = vpop.permute.xlu0 %951  ;;  %v1312_v58 = vld [vmem:[#allocation2 + $0x30] sm:$0xff]  ;;  %v1300_v20 = vld [vmem:[#allocation2 + $0x28] sm:$0xff] }
 0x3f1   :  { %983 = vst.msk [vmem:[#allocation2 + $0x38] sm:$0xff] %vm975_vm12, %v942_v14  ;;  %988 = vst.msk [vmem:[#allocation2 + $0x60] sm:$0xff] %vm975_vm12, %v952_v15 }
 0x3f4   :  { %v950_v46 = vpop.permute.xlu1 %949  ;;  %v956_v44 = vpop.permute.xlu0 %955 }
 0x3f5   :  { %987 = vst.msk [vmem:[#allocation2 + $0x58] sm:$0xff] %vm975_vm12, %v950_v46  ;;  %990 = vst.msk [vmem:[#allocation2 + $0x70] sm:$0xff] %vm975_vm12, %v956_v44 }
 0x3f8   :  { %v954_v22 = vpop.permute.xlu1 %953  ;;  %v1313_v12 = vld [vmem:[#allocation2 + $0x38] sm:$0xff] }
 0x3f9   :  { %989 = vst.msk [vmem:[#allocation2 + $0x68] sm:$0xff] %vm975_vm12, %v954_v22 }
 0x3fc   :  { %v958_v16 = vpop.permute.xlu1 %957 }
 0x3fd   :  { %991 = vst.msk [vmem:[#allocation2 + $0x78] sm:$0xff] %vm975_vm12, %v958_v16  ;;  %v1212_v17 = vpop.permute.xlu0 %1211 }
 0x3fe   :  { %1259 = vst.msk [vmem:[#allocation3] sm:$0xff] %vm975_vm12, %v1212_v17 }
 0x400   :  { %v1214_v18 = vpop.permute.xlu1 %1213 }
 0x401   :  { %1260 = vst.msk [vmem:[#allocation3 + $0x8] sm:$0xff] %vm975_vm12, %v1214_v18  ;;  %v1216_v47 = vpop.permute.xlu0 %1215 }
 0x402   :  { %1261 = vst.msk [vmem:[#allocation3 + $0x10] sm:$0xff] %vm975_vm12, %v1216_v47 }
 0x405   :  { %v1279_v24 = vld [vmem:[#allocation3] sm:$0xff]  ;;  %v1218_v25 = vpop.permute.xlu1 %1217  ;;  %v1220_v27 = vpop.permute.xlu0 %1219 }
 0x406   :  { %v2736_v51 = vadd.f32 %v1279_v24, %v1277_v19  ;;  %1262 = vst.msk [vmem:[#allocation3 + $0x18] sm:$0xff] %vm975_vm12, %v1218_v25  ;;  %1263 = vst.msk [vmem:[#allocation3 + $0x20] sm:$0xff] %vm975_vm12, %v1220_v27  ;;  %v1338_v24 = vld [vmem:[#allocation2 + $0x50] sm:$0xff]  ;;  %v1326_v25 = vld [vmem:[#allocation2 + $0x48] sm:$0xff] }
 0x408   :  { %v1280_v23 = vld [vmem:[#allocation3 + $0x8] sm:$0xff]  ;;  %v1288_v53 = vmul.f32 %v1286_v29, %v2736_v51  ;;  %v1608_v4 = vmul.f32 %v2615_v45, %v2736_v51 }
 0x409   :  { %v2741_v48 = vadd.f32 %v1280_v23, %v1278_v34  ;;  %v1222_v57 = vpop.permute.xlu1 %1221  ;;  %v1224_v37 = vpop.permute.xlu0 %1223  ;;  %v1291_v6 = vld [vmem:[#allocation3 + $0x10] sm:$0xff] }
 0x40a   :  { %1264 = vst.msk [vmem:[#allocation3 + $0x28] sm:$0xff] %vm975_vm12, %v1222_v57  ;;  %1265 = vst.msk [vmem:[#allocation3 + $0x30] sm:$0xff] %vm975_vm12, %v1224_v37  ;;  %v2745_v42 = vadd.f32 %v1291_v6, %v1288_v53  ;;  %v1624_v56 = vsel %vm975_vm12, %v1608_v4, 0.0  ;;  %v1889_v53 = vmul.f32 -1.442695, %v2246_v55 }
 0x40b   :  { %v1289_v35 = vmul.f32 %v1287_v62, %v2741_v48  ;;  %v1609_v28 = vmul.f32 %v2623_v31, %v2741_v48 }
 0x40c   :  { %v1301_v11 = vmul.f32 %v1299_v50, %v2745_v42  ;;  %v1610_v13 = vmul.f32 %v2619_v26, %v2745_v42  ;;  %2097 = vpow2.f32 %v1889_v53 }
 0x40d   :  { %v1226_v49 = vpop.permute.xlu1 %1225  ;;  %v1228_v59 = vpop.permute.xlu0 %1227  ;;  %v1304_v41 = vld [vmem:[#allocation3 + $0x20] sm:$0xff]  ;;  %v1292_v3 = vld [vmem:[#allocation3 + $0x18] sm:$0xff] }
 0x40e   :  { %1266 = vst.msk [vmem:[#allocation3 + $0x38] sm:$0xff] %vm975_vm12, %v1226_v49  ;;  %1267 = vst.msk [vmem:[#allocation3 + $0x40] sm:$0xff] %vm975_vm12, %v1228_v59  ;;  %v2751_v1 = vadd.f32 %v1304_v41, %v1301_v11  ;;  %v2753_v5 = vadd.f32 %v1292_v3, %v1289_v35  ;;  %v1633_v61 = vsel %vm975_vm12, %v1610_v13, 0.0  ;;  %v1339_v41 = vld [vmem:[#allocation2 + $0x58] sm:$0xff]  ;;  %v1351_v3 = vld [vmem:[#allocation2 + $0x60] sm:$0xff] }
 0x410   :  { %v1314_v7 = vmul.f32 %v1312_v58, %v2751_v1  ;;  %v1302_v39 = vmul.f32 %v1300_v20, %v2753_v5  ;;  %v1611_v2 = vmul.f32 %v2629_v30, %v2753_v5  ;;  %v1612_v36 = vmul.f32 %v2625_v32, %v2751_v1 }
 0x411   :  { %v1230_v33 = vpop.permute.xlu1 %1229  ;;  %v1232_v54 = vpop.permute.xlu0 %1231  ;;  %v1317_v9 = vld [vmem:[#allocation3 + $0x30] sm:$0xff]  ;;  %v1305_v10 = vld [vmem:[#allocation3 + $0x28] sm:$0xff]  ;;  %v1625_v30 = vsel %vm975_vm12, %v1609_v28, 0.0 }
 0x412   :  { %1268 = vst.msk [vmem:[#allocation3 + $0x48] sm:$0xff] %vm975_vm12, %v1230_v33  ;;  %1269 = vst.msk [vmem:[#allocation3 + $0x50] sm:$0xff] %vm975_vm12, %v1232_v54  ;;  %v2767_v31 = vadd.f32 %v1317_v9, %v1314_v7  ;;  %v2769_v45 = vadd.f32 %v1305_v10, %v1302_v39  ;;  %v1634_v46 = vsel %vm975_vm12, %v1611_v2, 0.0  ;;  %v1626_v18 = vadd.f32 %v1625_v30, %v1624_v56 }
 0x413   :  { %v1635_v27 = vadd.f32 %v1634_v46, %v1633_v61 }
 0x414   :  { %v1327_v14 = vmul.f32 %v1325_v43, %v2767_v31  ;;  %v1315_v26 = vmul.f32 %v1313_v12, %v2769_v45  ;;  %v1613_v15 = vmul.f32 %v2635_v60, %v2769_v45  ;;  %v1614_v32 = vmul.f32 %v2631_v52, %v2767_v31  ;;  %v1352_v12 = vld [vmem:[#allocation2 + $0x68] sm:$0xff] }
 0x415   :  { %v1234_v44 = vpop.permute.xlu1 %1233  ;;  %v1236_v22 = vpop.permute.xlu0 %1235  ;;  %v1330_v16 = vld [vmem:[#allocation3 + $0x40] sm:$0xff]  ;;  %v1318_v17 = vld [vmem:[#allocation3 + $0x38] sm:$0xff]  ;;  %v1642_v60 = vsel %vm975_vm12, %v1612_v36, 0.0  ;;  %v1627_v50 = vrot.slane %v1626_v18, 4  ;;  %v1636_v28 = vrot.slane %v1635_v27, 4 }
 0x416   :  { %1270 = vst.msk [vmem:[#allocation3 + $0x58] sm:$0xff] %vm975_vm12, %v1234_v44  ;;  %1271 = vst.msk [vmem:[#allocation3 + $0x60] sm:$0xff] %vm975_vm12, %v1236_v22  ;;  %v2785_v47 = vadd.f32 %v1330_v16, %v1327_v14  ;;  %v2787_v19 = vadd.f32 %v1318_v17, %v1315_v26  ;;  %v1643_v21 = vsel %vm975_vm12, %v1613_v15, 0.0  ;;  %v1651_v35 = vsel %vm975_vm12, %v1614_v32, 0.0  ;;  %v1364_v16 = vld [vmem:[#allocation2 + $0x70] sm:$0xff] }
 0x417   :  { %v1644_v52 = vadd.f32 %v1643_v21, %v1642_v60  ;;  %v1628_v9 = vadd.f32 %v1627_v50, %v1626_v18  ;;  %v1637_v56 = vadd.f32 %v1636_v28, %v1635_v27 }
 0x418   :  { %v1340_v29 = vmul.f32 %v1338_v24, %v2785_v47  ;;  %v1328_v34 = vmul.f32 %v1326_v25, %v2787_v19  ;;  %v1615_v23 = vmul.f32 %v2644_v63, %v2787_v19  ;;  %v1616_v49 = vmul.f32 %v2637_v0, %v2785_v47  ;;  %v1365_v25 = vld [vmem:[#allocation2 + $0x78] sm:$0xff] }
 0x419   :  { %v1238_v57 = vpop.permute.xlu1 %1237  ;;  %v1240_v37 = vpop.permute.xlu0 %1239  ;;  %v1343_v6 = vld [vmem:[#allocation3 + $0x50] sm:$0xff]  ;;  %v1331_v62 = vld [vmem:[#allocation3 + $0x48] sm:$0xff]  ;;  %v1645_v58 = vrot.slane %v1644_v52, 4  ;;  %v1629_v21 = vrot.slane %v1628_v9, 2  ;;  %v1638_v27 = vrot.slane %v1637_v56, 2 }
 0x41a   :  { %1272 = vst.msk [vmem:[#allocation3 + $0x68] sm:$0xff] %vm975_vm12, %v1238_v57  ;;  %1273 = vst.msk [vmem:[#allocation3 + $0x70] sm:$0xff] %vm975_vm12, %v1240_v37  ;;  %v2799_v11 = vadd.f32 %v1343_v6, %v1340_v29  ;;  %v2803_v59 = vadd.f32 %v1331_v62, %v1328_v34  ;;  %v1652_v63 = vsel %vm975_vm12, %v1615_v23, 0.0  ;;  %v1660_v13 = vsel %vm975_vm12, %v1616_v49, 0.0 }
 0x41b   :  { %v1653_v20 = vadd.f32 %v1652_v63, %v1651_v35  ;;  %v1646_v14 = vadd.f32 %v1645_v58, %v1644_v52  ;;  %v1639_v58 = vadd.f32 %v1638_v27, %v1637_v56 }
 0x41c   :  { %v1341_v4 = vmul.f32 %v1339_v41, %v2803_v59  ;;  %v1617_v7 = vmul.f32 %v2653_v8, %v2803_v59  ;;  %v1353_v39 = vmul.f32 %v1351_v3, %v2799_v11  ;;  %v1630_v41 = vadd.f32 %v1629_v21, %v1628_v9  ;;  %v2098_v3 = vpop.eup %2097 }
 0x41d   :  { %v1242_v2 = vpop.permute.xlu1 %1241  ;;  %v1587_v33 = vpop.permute.xlu0 %1586  ;;  %v1344_v0 = vld [vmem:[#allocation3 + $0x58] sm:$0xff]  ;;  %v1356_v54 = vld [vmem:[#allocation3 + $0x60] sm:$0xff]  ;;  %v1654_v10 = vrot.slane %v1653_v20, 4  ;;  %v1647_v52 = vrot.slane %v1646_v14, 2 }
 0x41e   :  { %1274 = vst.msk [vmem:[#allocation3 + $0x78] sm:$0xff] %vm975_vm12, %v1242_v2  ;;  %v2812_v36 = vadd.f32 %v1344_v0, %v1341_v4  ;;  %v1661_v30 = vsel %vm975_vm12, %v1617_v7, 0.0  ;;  %v2815_v43 = vadd.f32 %v1356_v54, %v1353_v39  ;;  %v1618_v26 = vmul.f32 %v1587_v33, %v2799_v11 }
 0x41f   :  { %v1662_v8 = vadd.f32 %v1661_v30, %v1660_v13  ;;  %v1655_v32 = vadd.f32 %v1654_v10, %v1653_v20  ;;  %v1648_v20 = vadd.f32 %v1647_v52, %v1646_v14  ;;  %v1640_v14 = vrot.slane %v1639_v58, 1 }
 0x420   :  { %v1354_v15 = vmul.f32 %v1352_v12, %v2812_v36  ;;  %v1366_v60 = vmul.f32 %v1364_v16, %v2815_v43  ;;  %v1669_v34 = vsel %vm975_vm12, %v1618_v26, 0.0 }
 0x421   :  { %v1591_v46 = vpop.permute.xlu1 %1590  ;;  %v1595_v44 = vpop.permute.xlu0 %1594  ;;  %v1357_v22 = vld [vmem:[#allocation3 + $0x68] sm:$0xff]  ;;  %v1663_v17 = vrot.slane %v1662_v8, 4  ;;  %v1369_v24 = vld [vmem:[#allocation3 + $0x70] sm:$0xff]  ;;  %v1656_v35 = vrot.slane %v1655_v32, 2  ;;  %v1641_v27 = vadd.f32 %v1640_v14, %v1639_v58 }
 0x422   :  { %v1619_v18 = vmul.f32 %v1591_v46, %v2812_v36  ;;  %v2820_v61 = vadd.f32 %v1357_v22, %v1354_v15  ;;  %v1620_v53 = vmul.f32 %v1595_v44, %v2815_v43  ;;  %v2828_v63 = vadd.f32 %v1369_v24, %v1366_v60 }
 0x423   :  { %v1664_v29 = vadd.f32 %v1663_v17, %v1662_v8  ;;  %v1657_v30 = vadd.f32 %v1656_v35, %v1655_v32  ;;  %v1755_v8 = vadd.f32 1.0, %v2098_v3  ;;  %v1631_v44 = vrot.slane %v1630_v41, 1 }
 0x424   :  { %v1670_v23 = vsel %vm975_vm12, %v1619_v18, 0.0  ;;  %v1367_v57 = vmul.f32 %v1365_v25, %v2820_v61  ;;  %v1678_v7 = vsel %vm975_vm12, %v1620_v53, 0.0  ;;  %v1649_v22 = vrot.slane %v1648_v20, 1 }
 0x425   :  { %v1671_v37 = vadd.f32 %v1670_v23, %v1669_v34  ;;  %v1599_v6 = vpop.permute.xlu1 %1598  ;;  %v1603_v62 = vpop.permute.xlu0 %1602  ;;  %v1370_v50 = vld [vmem:[#allocation3 + $0x78] sm:$0xff]  ;;  %v1665_v4 = vrot.slane %v1664_v29, 2  ;;  %v1658_v24 = vrot.slane %v1657_v30, 1  ;;  %2099 = vrcp.f32 %v1755_v8 }
 0x426   :  { %v1621_v49 = vmul.f32 %v1599_v6, %v2820_v61  ;;  %v1622_v2 = vmul.f32 %v1603_v62, %v2828_v63  ;;  %v2833_v33 = vadd.f32 %v1370_v50, %v1367_v57  ;;  %v1779_v34 = vld [vmem:[%s2919_s11 + $0x38] sm:$0xff]  ;;  %v1632_v23 = vadd.f32 %v1631_v44, %v1630_v41 }
 0x427   :  { %v1672_v28 = vrot.slane %v1671_v37, 4  ;;  %v1666_v26 = vadd.f32 %v1665_v4, %v1664_v29  ;;  %v1778_v29 = vld [vmem:[%s2919_s11 + $0x30] sm:$0xff]  ;;  %v1650_v53 = vadd.f32 %v1649_v22, %v1648_v20 }
 0x428   :  { %v1679_v39 = vsel %vm975_vm12, %v1621_v49, 0.0  ;;  %v1687_v15 = vsel %vm975_vm12, %v1622_v2, 0.0  ;;  %v2003_v57 = vpack.c.bf16 %v1779_v34, %v1778_v29  ;;  %v1659_v49 = vadd.f32 %v1658_v24, %v1657_v30 }
 0x429   :  { %v1673_v0 = vadd.f32 %v1672_v28, %v1671_v37  ;;  %v1680_v54 = vadd.f32 %v1679_v39, %v1678_v7  ;;  %v1607_v10 = vpop.permute.xlu1 %1606  ;;  %v1379_v13 = vpop.permute.xlu0 %1378  ;;  %v1667_v52 = vrot.slane %v1666_v26, 1  ;;  %v1727_v7 = vsel %vm1704_vm13, %v1641_v27, %v1632_v23 }
 0x42a   :  { %v1623_v9 = vmul.f32 %v1607_v10, %v2833_v33  ;;  %2004 = vmatprep.subr.bf16.mxu0 %v2003_v57  ;;  %v1728_v39 = vsel %vm1706_vm14, %v1650_v53, %v1727_v7 }
 0x42b   :  { %v1674_v12 = vrot.slane %v1673_v0, 2  ;;  %v1681_v56 = vrot.slane %v1680_v54, 4  ;;  %v1668_v4 = vadd.f32 %v1667_v52, %v1666_v26  ;;  %2006 = vmatpush3.bf16.msra.mxu0 %v2003_v57  ;;  %v1729_v30 = vsel %vm1708_vm15, %v1659_v49, %v1728_v39 }
 0x42c   :  { %v1688_v46 = vsel %vm975_vm12, %v1623_v9, 0.0  ;;  %v1456_v9 = vmul.f32 %v1379_v13, %v2736_v51 }
 0x42d   :  { %v1675_v16 = vadd.f32 %v1674_v12, %v1673_v0  ;;  %v1682_v17 = vadd.f32 %v1681_v56, %v1680_v54  ;;  %v1689_v18 = vadd.f32 %v1688_v46, %v1687_v15  ;;  %v1383_v60 = vpop.permute.xlu1 %1382  ;;  %v1387_v21 = vpop.permute.xlu0 %1386 }
 0x42e   :  { %v1457_v41 = vmul.f32 %v1383_v60, %v2741_v48  ;;  %v1458_v20 = vmul.f32 %v1387_v21, %v2745_v42  ;;  %v1730_v42 = vsel %vm1710_vm1, %v1668_v4, %v1729_v30 }
 0x42f   :  { %v1683_v32 = vrot.slane %v1682_v17, 2  ;;  %v1690_v25 = vrot.slane %v1689_v18, 4  ;;  %v1676_v37 = vrot.slane %v1675_v16, 1  ;;  %v2100_v14 = vpop.eup %2099 }
 0x430   :  { %v1473_v26 = vsel %vm279_vm7, %v1457_v41, 0.0  ;;  %v1761_v57 = vmul.f32 %v2100_v14, %v2246_v55 }
 0x431   :  { %v1684_v6 = vadd.f32 %v1683_v32, %v1682_v17  ;;  %v1691_v62 = vadd.f32 %v1690_v25, %v1689_v18  ;;  %v1391_v50 = vpop.permute.xlu1 %1390  ;;  %v1395_v35 = vpop.permute.xlu0 %1394  ;;  %v1677_v2 = vadd.f32 %v1676_v37, %v1675_v16  ;;  %v1472_v17 = vsel %vm279_vm7, %v1456_v9, 0.0 }
 0x432   :  { %v1459_v3 = vmul.f32 %v1391_v50, %v2753_v5  ;;  %v1460_v5 = vmul.f32 %v1395_v35, %v2751_v1  ;;  %v1481_v1 = vsel %vm279_vm7, %v1458_v20, 0.0  ;;  %v1474_v24 = vadd.f32 %v1473_v26, %v1472_v17 }
 0x433   :  { %v1685_v28 = vrot.slane %v1684_v6, 1  ;;  %v1692_v58 = vrot.slane %v1691_v62, 2  ;;  %v1731_v16 = vsel %vm1712_vm2, %v1677_v2, %v1730_v42 }
 0x434   :  { %v1482_v12 = vsel %vm279_vm7, %v1459_v3, 0.0  ;;  %v1490_v51 = vsel %vm279_vm7, %v1460_v5, 0.0  ;;  %v1475_v37 = vrot.slane %v1474_v24, 4 }
 0x435   :  { %v1693_v0 = vadd.f32 %v1692_v58, %v1691_v62  ;;  %v1399_v54 = vpop.permute.xlu1 %1398  ;;  %v1403_v10 = vpop.permute.xlu0 %1402  ;;  %v1686_v8 = vadd.f32 %v1685_v28, %v1684_v6  ;;  %v1483_v44 = vadd.f32 %v1482_v12, %v1481_v1 }
 0x436   :  { %v1461_v48 = vmul.f32 %v1399_v54, %v2769_v45  ;;  %v1462_v46 = vmul.f32 %v1403_v10, %v2767_v31 }
 0x437   :  { %v1694_v56 = vrot.slane %v1693_v0, 1  ;;  %v1732_v21 = vsel %vm1714_vm3, %v1686_v8, %v1731_v16  ;;  %v1484_v52 = vrot.slane %v1483_v44, 4 }
 0x438   :  { %v1491_v15 = vsel %vm279_vm7, %v1461_v48, 0.0  ;;  %v1499_v31 = vsel %vm279_vm7, %v1462_v46, 0.0 }
 0x439   :  { %v1407_v13 = vpop.permute.xlu1 %1406  ;;  %v1411_v22 = vpop.permute.xlu0 %1410  ;;  %v1695_v45 = vadd.f32 %v1694_v56, %v1693_v0  ;;  %v1492_v18 = vadd.f32 %v1491_v15, %v1490_v51 }
 0x43a   :  { %v1463_v60 = vmul.f32 %v1407_v13, %v2787_v19  ;;  %v1464_v27 = vmul.f32 %v1411_v22, %v2785_v47  ;;  %v1485_v47 = vadd.f32 %v1484_v52, %v1483_v44 }
 0x43b   :  { %v1733_v32 = vsel %vm1716_vm4, %v1695_v45, %v1732_v21  ;;  %v1493_v53 = vrot.slane %v1492_v18, 4 }
 0x43c   :  { %v1500_v25 = vsel %vm279_vm7, %v1463_v60, 0.0  ;;  %1734 = vrot.lane.b32.xlu0 %v1733_v32, %s2102_s9  ;;  %v1508_v62 = vsel %vm279_vm7, %v1464_v27, 0.0  ;;  %v1486_v2 = vrot.slane %v1485_v47, 2 }
 0x43d   :  { %v1501_v29 = vadd.f32 %v1500_v25, %v1499_v31  ;;  %v1415_v34 = vpop.permute.xlu1 %1414  ;;  %v1419_v23 = vpop.permute.xlu0 %1418  ;;  %v1494_v58 = vadd.f32 %v1493_v53, %v1492_v18 }
 0x43e   :  { %v1465_v19 = vmul.f32 %v1415_v34, %v2803_v59  ;;  %v1466_v35 = vmul.f32 %v1419_v23, %v2799_v11  ;;  %v1476_v59 = vadd.f32 %v1475_v37, %v1474_v24  ;;  %v1487_v14 = vadd.f32 %v1486_v2, %v1485_v47 }
 0x43f   :  { %v1502_v6 = vrot.slane %v1501_v29, 4  ;;  %v1495_v10 = vrot.slane %v1494_v58, 2 }
 0x440   :  { %v1509_v50 = vsel %vm279_vm7, %v1465_v19, 0.0  ;;  %1766 = vrot.lane.b32.xlu0 %v1761_v57, %s2102_s9  ;;  %v1517_v41 = vsel %vm279_vm7, %v1466_v35, 0.0  ;;  %v1477_v8 = vrot.slane %v1476_v59, 2  ;;  %v1488_v17 = vrot.slane %v1487_v14, 1 }
 0x441   :  { %v1510_v49 = vadd.f32 %v1509_v50, %v1508_v62  ;;  %v1423_v3 = vpop.permute.xlu1 %1422  ;;  %v1427_v28 = vpop.permute.xlu0 %1426  ;;  %v1503_v7 = vadd.f32 %v1502_v6, %v1501_v29  ;;  %v1496_v15 = vadd.f32 %v1495_v10, %v1494_v58 }
 0x442   :  { %v1467_v4 = vmul.f32 %v1423_v3, %v2812_v36  ;;  %v1468_v39 = vmul.f32 %v1427_v28, %v2815_v43  ;;  %v1478_v44 = vadd.f32 %v1477_v8, %v1476_v59  ;;  %v1887_v28 = vld [vmem:[%s2920_s10] ss:$0 sm:$0xff] }
 0x443   :  { %v1511_v55 = vrot.slane %v1510_v49, 4  ;;  %v1504_v9 = vrot.slane %v1503_v7, 2  ;;  %v1497_v21 = vrot.slane %v1496_v15, 1 }
 0x444   :  { %v1518_v20 = vsel %vm279_vm7, %v1467_v4, 0.0  ;;  %v1526_v48 = vsel %vm279_vm7, %v1468_v39, 0.0  ;;  %v1479_v24 = vrot.slane %v1478_v44, 1 }
 0x445   :  { %v1512_v11 = vadd.f32 %v1511_v55, %v1510_v49  ;;  %v1519_v0 = vadd.f32 %v1518_v20, %v1517_v41  ;;  %v1431_v5 = vpop.permute.xlu1 %1430  ;;  %v1435_v54 = vpop.permute.xlu0 %1434  ;;  %v1505_v51 = vadd.f32 %v1504_v9, %v1503_v7  ;;  %v1498_v23 = vadd.f32 %v1497_v21, %v1496_v15 }
 0x446   :  { %v1469_v30 = vmul.f32 %v1431_v5, %v2820_v61  ;;  %v1470_v42 = vmul.f32 %v1435_v54, %v2828_v63  ;;  %v1480_v53 = vadd.f32 %v1479_v24, %v1478_v44  ;;  %v1744_v55 = vmul.f32 %v1887_v28, %v2279_v38 }
 0x447   :  { %v1520_v36 = vrot.slane %v1519_v0, 4  ;;  %v1513_v12 = vrot.slane %v1512_v11, 2  ;;  %v1506_v32 = vrot.slane %v1505_v51, 1  ;;  %v1745_v5 = vmul.f32 %v1887_v28, %v2283_v40 }
 0x448   :  { %v1527_v56 = vsel %vm279_vm7, %v1469_v30, 0.0  ;;  %v1535_v45 = vsel %vm279_vm7, %v1470_v42, 0.0 }
 0x449   :  { %v1521_v43 = vadd.f32 %v1520_v36, %v1519_v0  ;;  %v1528_v26 = vadd.f32 %v1527_v56, %v1526_v48  ;;  %v1439_v1 = vpop.permute.xlu1 %1438  ;;  %v1514_v22 = vadd.f32 %v1513_v12, %v1512_v11  ;;  %v1507_v19 = vadd.f32 %v1506_v32, %v1505_v51 }
 0x44a   :  { %v1471_v46 = vmul.f32 %v1439_v1, %v2833_v33  ;;  %v1489_v33 = vadd.f32 %v1488_v17, %v1487_v14 }
 0x44b   :  { %v1522_v61 = vrot.slane %v1521_v43, 2  ;;  %v1529_v13 = vrot.slane %v1528_v26, 4  ;;  %v1515_v27 = vrot.slane %v1514_v22, 1 }
 0x44c   :  { %v1536_v16 = vsel %vm279_vm7, %v1471_v46, 0.0  ;;  %v1705_v62 = vsel %vm1704_vm13, %v1489_v33, %v1480_v53 }
 0x44d   :  { %v1523_v18 = vadd.f32 %v1522_v61, %v1521_v43  ;;  %v1530_v60 = vadd.f32 %v1529_v13, %v1528_v26  ;;  %v1537_v63 = vadd.f32 %v1536_v16, %v1535_v45  ;;  %v1516_v6 = vadd.f32 %v1515_v27, %v1514_v22  ;;  %v1765_v2 = vpop.permute.xlu1 %1764 }
 0x44e   :  { %v1707_v47 = vsel %vm1706_vm14, %v1498_v23, %v1705_v62 }
 0x44f   :  { %v1531_v31 = vrot.slane %v1530_v60, 2  ;;  %v1538_v25 = vrot.slane %v1537_v63, 4  ;;  %v1524_v52 = vrot.slane %v1523_v18, 1  ;;  %v1709_v58 = vsel %vm1708_vm15, %v1507_v19, %v1707_v47 }
 0x450   :  { %v1711_v4 = vsel %vm1710_vm1, %v1516_v6, %v1709_v58 }
 0x451   :  { %v1532_v29 = vadd.f32 %v1531_v31, %v1530_v60  ;;  %v1539_v34 = vadd.f32 %v1538_v25, %v1537_v63  ;;  %v1525_v50 = vadd.f32 %v1524_v52, %v1523_v18 }
 0x453   :  { %v1533_v57 = vrot.slane %v1532_v29, 1  ;;  %v1540_v37 = vrot.slane %v1539_v34, 2  ;;  %v1713_v7 = vsel %vm1712_vm2, %v1525_v50, %v1711_v4 }
 0x455   :  { %v1541_v35 = vadd.f32 %v1540_v37, %v1539_v34  ;;  %v1534_v49 = vadd.f32 %v1533_v57, %v1532_v29 }
 0x457   :  { %v1542_v3 = vrot.slane %v1541_v35, 1  ;;  %v1715_v41 = vsel %vm1714_vm3, %v1534_v49, %v1713_v7 }
 0x459   :  { %v1543_v59 = vadd.f32 %v1542_v3, %v1541_v35 }
 0x45b   :  { %v1717_v20 = vsel %vm1716_vm4, %v1543_v59, %v1715_v41 }
 0x45c   :  { %v1746_v39 = vadd.f32 %v1744_v55, %v1717_v20 }
 0x45e   :  { %v1770_v11 = vmul.f32 %v1765_v2, %v1746_v39 }
 0x460   :  { %1964 = vmatprep.mubr.msk.f32.mxu0 %vm279_vm7, %v1770_v11 }
 0x4ae   :  { %v1735_v0 = vpop.permute.xlu0 %1734 }
 0x4af   :  { %v1747_v54 = vadd.f32 %v1745_v5, %v1735_v0 }
 0x4b2   :  { %v1767_v10 = vpop.permute.xlu0 %1766 }
 0x4b3   :  { %v1771_v30 = vmul.f32 %v1767_v10, %v1747_v54 }
 0x4b5   :  { %1965 = vmatmul.mubr.msk.f32.vlgmr.msra.gmra.mrb[2].mxu0 %vm279_vm7, %v1771_v30 }
 0x588   :  { %v1966_v8 = vpop.f32.mrb[2].mxu0 }
 0x589   :  { %1862 = vst.msk [vmem:[%s2921_s12 + $0x8] sm:$0xff] %vm51_vm0, %v1966_v8  ;;  %v1852_v38 = vpop.f32.mrb[3].mxu0 }
 0x58a   :  { %1861 = vst.msk [vmem:[%s2921_s12] sm:$0xff] %vm51_vm0, %v1852_v38 }

// kernel: mixer_model_forward.3
= control target key start
LH: loop header
LB: loop body
LE: loop exit
PB: predicated region body
PF: predicated region fallthrough
CT: control target
= control target key end

     0   :  { %vm55_vm0 = vcmask 261120   ;;  %v184_v52 = vlaneseq  ;;  %vm204_vm1 = vcmask 1042432   ;;  %vm223_vm2 = vcmask 1041408   ;;  %s2973_s0 = inlined_call_operand.vmem [shape: f32[16,32], index: 0, kind: input, shape index: {}, may-alias: {0,14}]   ;;  %s2974_s1 = inlined_call_operand.vmem [shape: f32[16,32], index: 1, kind: input, shape index: {}]   ;;  %s2975_s4 = inlined_call_operand.vmem [shape: f32[32,128], index: 4, kind: input, shape index: {}]   ;;  %s2976_s2 = inlined_call_operand.vmem [shape: f32[1,32], index: 2, kind: input, shape index: {}]   ;;  %s2977_s3 = inlined_call_operand.vmem [shape: f32[1,32], index: 3, kind: input, shape index: {}]   ;;  %s2978_s7 = inlined_call_operand.vmem [shape: f32[64,128], index: 7, kind: input, shape index: {}]   ;;  %s2979_s5 = inlined_call_operand.vmem [shape: f32[4,64], index: 5, kind: input, shape index: {}]   ;;  %s2980_s6 = inlined_call_operand.vmem [shape: f32[1,64], index: 6, kind: input, shape index: {}]   ;;  %s2981_s8 = inlined_call_operand.vmem [shape: f32[1,64], index: 8, kind: input, shape index: {}]   ;;  %s2982_s9 = inlined_call_operand.vmem [shape: f32[16,64], index: 9, kind: input, shape index: {}]   ;;  %s2983_s11 = inlined_call_operand.vmem [shape: f32[64,32], index: 11, kind: input, shape index: {}]   ;;  %s2984_s10 = inlined_call_operand.vmem [shape: f32[1,64], index: 10, kind: input, shape index: {}]   ;;  %s2985_s12 = inlined_call_operand.vmem [shape: f32[1,32], index: 12, kind: input, shape index: {}]   ;;  %s2986_s13 = inlined_call_operand.vmem [shape: f32[1,32], index: 13, kind: input, shape index: {}]   ;;  %s2987_s14 = inlined_call_operand.vmem [shape: f32[16,32], index: 14, kind: output, shape index: {}, may-alias: {0,14}]  }
   0x1   :  { %v47_v0 = vld [vmem:[%s2973_s0] sm:$0xff]  ;;  %v48_v2 = vld [vmem:[%s2973_s0 + $0x8] sm:$0xff]  ;;  %v101_v20 = vld [vmem:[%s2975_s4 + $0x10] sm:$0xff]  ;;  %vm242_vm5 = vcmask 1040384   ;;  %vm283_vm7 = vcmask 523264   ;;  %vm979_vm12 = vcmask 1048064  }
   0x2   :  { %v49_v1 = vld [vmem:[%s2974_s1] sm:$0xff]  ;;  %v50_v4 = vld [vmem:[%s2974_s1 + $0x8] sm:$0xff]  ;;  %v102_v22 = vld [vmem:[%s2975_s4 + $0x18] sm:$0xff]  ;;  %v2294_v53 = vshrl.u32 %v184_v52, 7  ;;  %vm1708_vm13 = vcmask 1041409   ;;  %vm1710_vm14 = vcmask 1042434  }
   0x3   :  { %v2235_v3 = vadd.f32 %v49_v1, %v47_v0  ;;  %v2240_v5 = vadd.f32 %v50_v4, %v48_v2  ;;  %v99_v18 = vld [vmem:[%s2975_s4] sm:$0xff]  ;;  %v100_v19 = vld [vmem:[%s2975_s4 + $0x8] sm:$0xff]  ;;  %v2015_v23 = vpack.c.bf16 %v102_v22, %v101_v20  ;;  %v277_v42 = vld [vmem:[%s2978_s7 + $0x10] sm:$0xff]  ;;  %vm1712_vm15 = vcmask 1043459  }
   0x4   :  { %v2011_v21 = vpack.c.bf16 %v100_v19, %v99_v18  ;;  %v1915_v31 = vld [vmem:[%s2976_s2] ss:$0 sm:$0xff]  ;;  %v276_v41 = vld [vmem:[%s2978_s7 + $0x8] sm:$0xff]  ;;  %v278_v44 = vld [vmem:[%s2978_s7 + $0x18] sm:$0xff]  ;;  %vm211_vm3 = vcmp.ge.s32.totalorder %v2294_v53, 3  ;;  %vm230_vm4 = vcmp.ge.s32.totalorder %v2294_v53, 2 }
   0x5   :  { %v56_v6 = vsel %vm55_vm0, %v2235_v3, 0.0  ;;  %v59_v7 = vsel %vm55_vm0, %v2240_v5, 0.0  ;;  %v1916_v33 = vld [vmem:[%s2977_s3] ss:$0 sm:$0xff]  ;;  %v2023_v45 = vpack.c.bf16 %v278_v44, %v277_v42  ;;  %v280_v47 = vld [vmem:[%s2978_s7 + $0x28] sm:$0xff]  ;;  %v281_v49 = vld [vmem:[%s2978_s7 + $0x30] sm:$0xff] }
   0x6   :  { %57 = vadd.xlane.f32.xlu0 %v56_v6  ;;  %2012 = vmatprep.subr.bf16.mxu0 %v2011_v21  ;;  %v275_v40 = vld [vmem:[%s2978_s7] sm:$0xff]  ;;  %v282_v50 = vld [vmem:[%s2978_s7 + $0x38] sm:$0xff]  ;;  %vm249_vm6 = vcmp.ge.s32.totalorder %v2294_v53, 1 }
   0x7   :  { %2014 = vmatpush3.bf16.msra.mxu0 %v2011_v21  ;;  %v2019_v43 = vpack.c.bf16 %v276_v41, %v275_v40  ;;  %v279_v46 = vld [vmem:[%s2978_s7 + $0x20] sm:$0xff]  ;;  %v2031_v51 = vpack.c.bf16 %v282_v50, %v281_v49  ;;  %v573_v49 = vsub.s32 1, %v2294_v53  ;;  %v585_v50 = vsub.s32 2, %v2294_v53 }
   0x8   :  { %2016 = vmatprep.subr.bf16.mxu0 %v2015_v23  ;;  %v2027_v48 = vpack.c.bf16 %v280_v47, %v279_v46  ;;  %v1919_v54 = vld [vmem:[%s2979_s5 + $0x3] ss:$0 sm:$0xff]  ;;  %v1920_v62 = vld [vmem:[%s2980_s6] ss:$0 sm:$0xff]  ;;  %v1923_v20 = vld [vmem:[%s2979_s5 + $0x2] ss:$0 sm:$0xff] }
   0x9   :  { %2020 = vmatprep.subr.bf16.mxu1 %v2019_v43  ;;  %v1921_v2 = vld [vmem:[%s2979_s5] ss:$0 sm:$0xff] }
   0xa   :  { %60 = vadd.xlane.f32.xlu0 %v59_v7  ;;  %2022 = vmatpush3.bf16.msra.mxu1 %v2019_v43  ;;  %v2341_v43 = vsub.s32 0, %v2294_v53  ;;  %v1928_v44 = vld [vmem:[%s2981_s8] ss:$0 sm:$0xff] }
   0xb   :  { %2018 = vmatpush3.bf16.msra.mxu0 %v2015_v23  ;;  %2024 = vmatprep.subr.bf16.mxu1 %v2023_v45 }
   0xe   :  { %2026 = vmatpush3.bf16.msra.mxu1 %v2023_v45 }
   0xf   :  { %2028 = vmatprep.subr.bf16.mxu1 %v2027_v48 }
  0x12   :  { %2030 = vmatpush3.bf16.msra.mxu1 %v2027_v48 }
  0x13   :  { %2032 = vmatprep.subr.bf16.mxu1 %v2031_v51 }
  0x16   :  { %2034 = vmatpush3.bf16.msra.mxu1 %v2031_v51 }
  0x93   :  { %v58_v8 = vpop.xlane.xlu0 %57 }
  0x94   :  { %v63_v9 = vmul.f32 0.03125, %v58_v8 }
  0x96   :  { %v65_v10 = vsub.f32 %v2235_v3, %v63_v9 }
  0x97   :  { %v61_v11 = vpop.xlane.xlu0 %60 }
  0x98   :  { %v64_v12 = vmul.f32 0.03125, %v61_v11  ;;  %v67_v13 = vmul.f32 %v65_v10, %v65_v10  ;;  %v1922_v11 = vld [vmem:[%s2979_s5 + $0x1] ss:$0 sm:$0xff] }
  0x9a   :  { %v66_v14 = vsub.f32 %v2240_v5, %v64_v12  ;;  %v69_v15 = vsel %vm55_vm0, %v67_v13, 0.0 }
  0x9b   :  { %70 = vadd.xlane.f32.xlu1 %v69_v15 }
  0x9c   :  { %v68_v16 = vmul.f32 %v66_v14, %v66_v14 }
  0x9e   :  { %v72_v17 = vsel %vm55_vm0, %v68_v16, 0.0 }
  0x9f   :  { %73 = vadd.xlane.f32.xlu1 %v72_v17 }
 0x128   :  { %v71_v24 = vpop.xlane.xlu1 %70 }
 0x129   :  { %v75_v25 = vmul.f32 0.03125, %v71_v24 }
 0x12b   :  { %v77_v26 = vadd.f32 1e-05, %v75_v25 }
 0x12c   :  { %v74_v27 = vpop.xlane.xlu1 %73 }
 0x12d   :  { %2053 = vrsqrt.f32 %v77_v26  ;;  %v76_v28 = vmul.f32 0.03125, %v74_v27 }
 0x12f   :  { %v78_v29 = vadd.f32 1e-05, %v76_v28 }
 0x131   :  { %2055 = vrsqrt.f32 %v78_v29 }
 0x137   :  { %v2054_v30 = vpop.eup %2053 }
 0x138   :  { %v81_v32 = vmul.f32 %v2054_v30, %v65_v10 }
 0x13a   :  { %v89_v34 = vmul.f32 %v1915_v31, %v81_v32 }
 0x13b   :  { %v2056_v35 = vpop.eup %2055 }
 0x13c   :  { %v82_v36 = vmul.f32 %v2056_v35, %v66_v14  ;;  %v97_v37 = vadd.f32 %v1916_v33, %v89_v34 }
 0x13e   :  { %v90_v38 = vmul.f32 %v1915_v31, %v82_v36  ;;  %1970 = vmatprep.mubr.msk.f32.mxu0 %vm55_vm0, %v97_v37 }
 0x140   :  { %v98_v39 = vadd.f32 %v1916_v33, %v90_v38 }
 0x142   :  { %1971 = vmatmul.mubr.msk.f32.vlgmr.msra.gmra.mrb[0].mxu0 %vm55_vm0, %v98_v39 }
 0x215   :  { %v2299_v55 = vpop.f32.mrb[0].mxu0 }
 0x216   :  { %v206_v56 = vrot.slane %v2299_v55, 5  ;;  %v225_v57 = vrot.slane %v2299_v55, 6  ;;  %v2303_v58 = vpop.f32.mrb[1].mxu0  ;;  %v193_v63 = vmul.f32 %v2299_v55, %v1919_v54  ;;  %v244_v0 = vrot.slane %v2299_v55, 7 }
 0x217   :  { %v192_v59 = vmul.f32 %v1919_v54, %v2303_v58  ;;  %v205_v60 = vrot.slane %v2303_v58, 5  ;;  %v224_v61 = vrot.slane %v2303_v58, 6  ;;  %v243_v1 = vrot.slane %v2303_v58, 7 }
 0x218   :  { %v201_v16 = vadd.f32 %v1920_v62, %v193_v63  ;;  %v597_v54 = vsub.s32 3, %v2294_v53  ;;  %v609_v63 = vsub.s32 4, %v2294_v53 }
 0x219   :  { %v210_v4 = vsel %vm204_vm1, 0.0, %v205_v60  ;;  %v207_v6 = vsel %vm204_vm1, %v205_v60, %v206_v56  ;;  %v200_v7 = vadd.f32 %v1920_v62, %v192_v59  ;;  %v226_v10 = vsel %vm223_vm2, %v224_v61, %v225_v57 }
 0x21a   :  { %v212_v8 = vsel %vm211_vm3, %v210_v4, 0.0  ;;  %v213_v9 = vsel %vm211_vm3, %v207_v6, 0.0  ;;  %v229_v14 = vsel %vm223_vm2, 0.0, %v224_v61  ;;  %v232_v15 = vsel %vm230_vm4, %v226_v10, 0.0 }
 0x21b   :  { %v219_v12 = vmul.f32 %v1921_v2, %v212_v8  ;;  %v220_v13 = vmul.f32 %v1921_v2, %v213_v9  ;;  %v231_v17 = vsel %vm230_vm4, %v229_v14, 0.0  ;;  %v245_v18 = vsel %vm242_vm5, %v243_v1, %v244_v0 }
 0x21c   :  { %v248_v19 = vsel %vm242_vm5, 0.0, %v243_v1  ;;  %v238_v22 = vmul.f32 %v1922_v11, %v231_v17  ;;  %v251_v24 = vsel %vm249_vm6, %v245_v18, 0.0  ;;  %v239_v25 = vmul.f32 %v1922_v11, %v232_v15 }
 0x21d   :  { %v221_v21 = vadd.f32 %v219_v12, %v200_v7  ;;  %v250_v23 = vsel %vm249_vm6, %v248_v19, 0.0  ;;  %v222_v26 = vadd.f32 %v220_v13, %v201_v16  ;;  %v258_v29 = vmul.f32 %v1923_v20, %v251_v24 }
 0x21e   :  { %v257_v28 = vmul.f32 %v1923_v20, %v250_v23  ;;  %v621_v1 = vsub.s32 5, %v2294_v53  ;;  %v633_v6 = vsub.s32 6, %v2294_v53  ;;  %v645_v9 = vsub.s32 7, %v2294_v53 }
 0x21f   :  { %v240_v27 = vadd.f32 %v238_v22, %v221_v21  ;;  %v241_v30 = vadd.f32 %v239_v25, %v222_v26  ;;  %v2149_v15 = vmov 1966171168   ;;  %vm1714_vm1 = vcmask 1044484  }
 0x220   :  { %v407_v16 = vunpack.c.l.s4 %v2149_v15  ;;  %vm1716_vm2 = vcmask 1045509   ;;  %vm1718_vm3 = vcmask 1046534   ;;  %vm1720_vm4 = vcmask 1047559  }
 0x221   :  { %v259_v31 = vadd.f32 %v257_v28, %v240_v27  ;;  %v260_v32 = vadd.f32 %v258_v29, %v241_v30 }
 0x222   :  { %v408_v20 = vunpack.c.0.s8 %v407_v16 }
 0x223   :  { %v1924_v33 = vmul.f32 -1.442695, %v259_v31  ;;  %v1925_v34 = vmul.f32 -1.442695, %v260_v32 }
 0x224   :  { %v2402_v24 = vsub.s32 %v408_v20, %v2294_v53 }
 0x225   :  { %2057 = vpow2.f32 %v1924_v33 }
 0x226   :  { %2059 = vpow2.f32 %v1925_v34 }
 0x22f   :  { %v2058_v35 = vpop.eup %2057 }
 0x230   :  { %v267_v36 = vadd.f32 1.0, %v2058_v35  ;;  %v2060_v37 = vpop.eup %2059 }
 0x231   :  { %v268_v38 = vadd.f32 1.0, %v2060_v37 }
 0x232   :  { %2061 = vrcp.f32 %v267_v36 }
 0x233   :  { %2063 = vrcp.f32 %v268_v38 }
 0x23c   :  { %v2062_v39 = vpop.eup %2061 }
 0x23d   :  { %v2332_v40 = vmul.f32 %v2062_v39, %v259_v31  ;;  %v2064_v41 = vpop.eup %2063 }
 0x23e   :  { %v2336_v42 = vmul.f32 %v2064_v41, %v260_v32 }
 0x23f   :  { %1989 = vmatprep.mubr.msk.f32.mxu1 %vm283_vm7, %v2332_v40 }
 0x240   :  { %1990 = vmatmul.mubr.msk.f32.vlgmr.msra.gmra.mrb[0].mxu1 %vm283_vm7, %v2336_v42 }
 0x313   :  { %v1991_v45 = vpop.f32.mrb[0].mxu1 }
 0x314   :  { %v2346_v46 = vadd.f32 %v1991_v45, %v1928_v44  ;;  %v2348_v47 = vpop.f32.mrb[1].mxu1  ;;  %v1000_v48 = vrot.slane %v1991_v45, %v2341_v43  ;;  %v1012_v59 = vrot.slane %v1991_v45, %v573_v49  ;;  %v2363_v60 = vrot.slane %v1991_v45, %v585_v50 }
 0x315   :  { %v2354_v51 = vadd.f32 %v1928_v44, %v2348_v47  ;;  %v2368_v62 = vrot.slane %v1991_v45, %v597_v54  ;;  %v2374_v0 = vrot.slane %v1991_v45, %v609_v63  ;;  %v2381_v4 = vrot.slane %v1991_v45, %v621_v1 }
 0x316   :  { %v377_v52 = vmin.f32 %v2346_v46, 20.0  ;;  %1007 = vbcast.lane.b32.xlu1 %v1000_v48, 328  ;;  %1003 = vbcast.lane.b32.xlu0 %v1000_v48, 320  ;;  %v2388_v8 = vrot.slane %v1991_v45, %v633_v6  ;;  %v2395_v11 = vrot.slane %v1991_v45, %v645_v9  ;;  %vm375_vm9 = vcmp.gt.f32.partialorder %v2346_v46, 20.0 }
 0x317   :  { %v376_v57 = vmin.f32 %v2354_v51, 20.0  ;;  %v2417_v37 = vrot.slane %v2348_v47, %v2341_v43  ;;  %vm374_vm11 = vcmp.gt.f32.partialorder %v2354_v51, 20.0 }
 0x318   :  { %v380_v56 = vmul.f32 1.442695, %v377_v52  ;;  %v2438_v52 = vrot.slane %v2348_v47, %v585_v50  ;;  %v2459_v50 = vld [vmem:[%s2982_s9 + $0x8] sm:$0xff] }
 0x319   :  { %v378_v61 = vmul.f32 1.442695, %v376_v57 }
 0x31a   :  { %2065 = vpow2.f32 %v380_v56  ;;  %1015 = vbcast.lane.b32.xlu1 %v1012_v59, 320  ;;  %1027 = vbcast.lane.b32.xlu0 %v2363_v60, 320 }
 0x31b   :  { %2067 = vpow2.f32 %v378_v61 }
 0x31e   :  { %1019 = vbcast.lane.b32.xlu1 %v1012_v59, 328  ;;  %1039 = vbcast.lane.b32.xlu0 %v2368_v62, 320 }
 0x322   :  { %1031 = vbcast.lane.b32.xlu1 %v2363_v60, 328  ;;  %1051 = vbcast.lane.b32.xlu0 %v2374_v0, 320 }
 0x324   :  { %v2066_v2 = vpop.eup %2065 }
 0x325   :  { %v391_v7 = vadd.f32 1.0, %v2066_v2  ;;  %v2068_v10 = vpop.eup %2067  ;;  %v394_v12 = vmul.f32 -0.5, %v2066_v2  ;;  %v397_v18 = vand.u32 2147483647, %v2066_v2 }
 0x326   :  { %1043 = vbcast.lane.b32.xlu1 %v2368_v62, 328  ;;  %1063 = vbcast.lane.b32.xlu0 %v2381_v4, 320  ;;  %v382_v13 = vadd.f32 1.0, %v2068_v10  ;;  %v385_v23 = vmul.f32 -0.5, %v2068_v10  ;;  %v388_v29 = vand.u32 2147483647, %v2068_v10 }
 0x327   :  { %2069 = vlog2.f32 %v391_v7  ;;  %v395_v17 = vadd.f32 1.0, %v394_v12  ;;  %vm398_vm8 = vcmp.lt.f32.partialorder %v397_v18, 0.0004427343 }
 0x328   :  { %2071 = vlog2.f32 %v382_v13  ;;  %v386_v27 = vadd.f32 1.0, %v385_v23  ;;  %vm389_vm10 = vcmp.lt.f32.partialorder %v388_v29, 0.0004427343 }
 0x329   :  { %v396_v21 = vmul.f32 %v2066_v2, %v395_v17  ;;  %v2480_v2 = vrot.slane %v2348_v47, %v633_v6 }
 0x32a   :  { %1055 = vbcast.lane.b32.xlu1 %v2374_v0, 328  ;;  %1075 = vbcast.lane.b32.xlu0 %v2388_v8, 320  ;;  %v387_v32 = vmul.f32 %v2068_v10, %v386_v27 }
 0x32e   :  { %1067 = vbcast.lane.b32.xlu1 %v2381_v4, 328  ;;  %1087 = vbcast.lane.b32.xlu0 %v2395_v11, 320 }
 0x331   :  { %v2070_v14 = vpop.eup %2069 }
 0x332   :  { %1079 = vbcast.lane.b32.xlu1 %v2388_v8, 328  ;;  %1550 = vbcast.lane.b32.xlu0 %v1000_v48, 336  ;;  %v393_v19 = vmul.f32 0.6931472, %v2070_v14  ;;  %v2072_v26 = vpop.eup %2071 }
 0x333   :  { %v384_v30 = vmul.f32 0.6931472, %v2072_v26 }
 0x334   :  { %v399_v22 = vsel %vm398_vm8, %v396_v21, %v393_v19 }
 0x335   :  { %v401_v25 = vsel %vm375_vm9, %v2346_v46, %v399_v22  ;;  %v390_v36 = vsel %vm389_vm10, %v387_v32, %v384_v30 }
 0x336   :  { %1091 = vbcast.lane.b32.xlu1 %v2395_v11, 328  ;;  %1558 = vbcast.lane.b32.xlu0 %v1012_v59, 336  ;;  %v785_v28 = vrot.slane %v401_v25, %v2402_v24  ;;  %v778_v31 = vcombine.high %v401_v25, %v401_v25  ;;  %v2411_v35 = vmul.f32 %v401_v25, %v2336_v42 }
 0x337   :  { %v400_v45 = vsel %vm374_vm11, %v2354_v51, %v390_v36  ;;  %v2443_v51 = vld [vmem:[%s2982_s9] sm:$0xff]  ;;  %s2150_s9 = smov 64  }
 0x338   :  { %v801_v33 = vrot.slane %v785_v28, %v2402_v24  ;;  %v793_v34 = vcombine.high %v785_v28, %v785_v28  ;;  %v792_v38 = vrot.slane %v778_v31, %v2402_v24  ;;  %v1094_v44 = vcombine.high %v2411_v35, %v2411_v35 }
 0x339   :  { %v558_v57 = vmul.f32 %v400_v45, %v2332_v40  ;;  %v412_v12 = vrot.slane %v400_v45, %v2402_v24  ;;  %v405_v25 = vcombine.high %v400_v45, %v400_v45 }
 0x33a   :  { %1554 = vbcast.lane.b32.xlu1 %v1000_v48, 344  ;;  %1566 = vbcast.lane.b32.xlu0 %v2363_v60, 336  ;;  %v2422_v39 = vrot.slane %v793_v34, %v2402_v24  ;;  %v823_v41 = vcombine.high %v801_v33, %v801_v33  ;;  %v830_v46 = vrot.slane %v801_v33, %v2341_v43 }
 0x33b   :  { %v2433_v48 = vrot.slane %v2348_v47, %v573_v49  ;;  %v2446_v56 = vrot.slane %v792_v38, %v2402_v24  ;;  %v2452_v49 = vrot.slane %v2348_v47, %v597_v54  ;;  %v1108_v61 = vrot.slane %v1094_v44, %v2402_v24 }
 0x33c   :  { %v2470_v54 = vrot.slane %v2348_v47, %v609_v63  ;;  %v867_v7 = vmul.f32 %v830_v46, %v2443_v51  ;;  %v868_v63 = vmul.f32 %v830_v46, %v2459_v50  ;;  %v656_v14 = vcombine.high %v558_v57, %v558_v57 }
 0x33d   :  { %v1110_v10 = vcombine.high %v1108_v61, %v1108_v61  ;;  %v2490_v13 = vrot.slane %v2446_v56, %v2341_v43  ;;  %v794_v16 = vcombine.high %v792_v38, %v792_v38  ;;  %v825_v23 = vcombine.high %v2422_v39, %v2422_v39 }
 0x33e   :  { %1562 = vbcast.lane.b32.xlu1 %v1012_v59, 344  ;;  %1574 = vbcast.lane.b32.xlu0 %v2368_v62, 336  ;;  %v834_v59 = vrot.slane %v2422_v39, %v2341_v43  ;;  %v670_v20 = vrot.slane %v656_v14, %v2402_v24  ;;  %v883_v21 = vmul.f32 1.442695, %v867_v7  ;;  %v885_v26 = vmul.f32 1.442695, %v868_v63 }
 0x33f   :  { %v2497_v17 = vrot.slane %v1110_v10, %v2402_v24  ;;  %v875_v27 = vmul.f32 %v2490_v13, %v2443_v51  ;;  %v428_v32 = vrot.slane %v412_v12, %v2402_v24  ;;  %v420_v33 = vcombine.high %v412_v12, %v412_v12 }
 0x340   :  { %v869_v6 = vmul.f32 %v834_v59, %v2443_v51  ;;  %v870_v22 = vmul.f32 %v834_v59, %v2459_v50  ;;  %v2514_v29 = vrot.slane %v670_v20, %v2402_v24  ;;  %v672_v31 = vcombine.high %v670_v20, %v670_v20 }
 0x341   :  { %v2522_v34 = vrot.slane %v2348_v47, %v645_v9  ;;  %v2525_v38 = vrot.slane %v794_v16, %v2402_v24  ;;  %v824_v39 = vcombine.high %v2446_v56, %v2446_v56  ;;  %2073 = vpow2.f32 %v883_v21 }
 0x342   :  { %1570 = vbcast.lane.b32.xlu1 %v2363_v60, 344  ;;  %1582 = vbcast.lane.b32.xlu0 %v2374_v0, 336  ;;  %v2462_v60 = vrot.slane %v823_v41, %v2341_v43  ;;  %v887_v30 = vmul.f32 1.442695, %v869_v6  ;;  %v889_v41 = vmul.f32 1.442695, %v870_v22  ;;  %v2530_v44 = vrot.slane %v672_v31, %v2402_v24 }
 0x343   :  { %v457_v45 = vrot.slane %v428_v32, %v2341_v43  ;;  %2075 = vpow2.f32 %v885_v26  ;;  %v442_v53 = vrot.slane %v420_v33, %v2402_v24  ;;  %v450_v46 = vcombine.high %v428_v32, %v428_v32 }
 0x344   :  { %v871_v15 = vmul.f32 %v2462_v60, %v2443_v51  ;;  %2077 = vpow2.f32 %v887_v30  ;;  %v899_v9 = vmul.f32 1.442695, %v875_v27 }
 0x345   :  { %v494_v59 = vmul.f32 %v457_v45, %v2443_v51  ;;  %v495_v7 = vmul.f32 %v457_v45, %v2459_v50  ;;  %v465_v10 = vrot.slane %v450_v46, %v2341_v43 }
 0x346   :  { %1578 = vbcast.lane.b32.xlu1 %v2368_v62, 344  ;;  %565 = vbcast.lane.b32.xlu0 %v2417_v37, 320  ;;  %v2475_v62 = vrot.slane %v2348_v47, %v621_v1  ;;  %v663_v1 = vrot.slane %v558_v57, %v2402_v24  ;;  %v891_v36 = vmul.f32 1.442695, %v871_v15  ;;  %v419_v47 = vrot.slane %v405_v25, %v2402_v24 }
 0x347   :  { %v2536_v57 = vrot.slane %v825_v23, %v2341_v43  ;;  %v510_v12 = vmul.f32 1.442695, %v494_v59  ;;  %v512_v6 = vmul.f32 1.442695, %v495_v7  ;;  %v498_v15 = vmul.f32 %v465_v10, %v2443_v51 }
 0x348   :  { %v2502_v18 = vrot.slane %v663_v1, %v2402_v24  ;;  %v671_v19 = vcombine.high %v663_v1, %v663_v1  ;;  %2079 = vpow2.f32 %v891_v36  ;;  %v435_v63 = vrot.slane %v419_v47, %v2402_v24 }
 0x349   :  { %2081 = vpow2.f32 %v889_v41  ;;  %v452_v1 = vcombine.high %v442_v53, %v442_v53  ;;  %v499_v20 = vmul.f32 %v465_v10, %v2459_v50  ;;  %v518_v23 = vmul.f32 1.442695, %v498_v15 }
 0x34a   :  { %1586 = vbcast.lane.b32.xlu1 %v2374_v0, 344  ;;  %577 = vbcast.lane.b32.xlu0 %v2433_v48, 320  ;;  %v2484_v0 = vrot.slane %v1108_v61, %v2402_v24  ;;  %v2511_v28 = vrot.slane %v671_v19, %v2402_v24  ;;  %v461_v61 = vrot.slane %v442_v53, %v2341_v43  ;;  %2083 = vpow2.f32 %v510_v12 }
 0x34b   :  { %v473_v19 = vrot.slane %v435_v63, %v2341_v43  ;;  %v469_v21 = vrot.slane %v452_v1, %v2341_v43  ;;  %2085 = vpow2.f32 %v512_v6  ;;  %v421_v25 = vcombine.high %v419_v47, %v419_v47  ;;  %v2074_v36 = vpop.eup %2073 }
 0x34c   :  { %v496_v14 = vmul.f32 %v461_v61, %v2443_v51  ;;  %v497_v16 = vmul.f32 %v461_v61, %v2459_v50  ;;  %2087 = vpow2.f32 %v899_v9  ;;  %v520_v30 = vmul.f32 1.442695, %v499_v20 }
 0x34d   :  { %v502_v27 = vmul.f32 %v473_v19, %v2443_v51  ;;  %v500_v31 = vmul.f32 %v469_v21, %v2443_v51  ;;  %v503_v32 = vmul.f32 %v473_v19, %v2459_v50  ;;  %v449_v33 = vrot.slane %v421_v25, %v2402_v24  ;;  %v2558_v46 = vpop.eup %2075 }
 0x34e   :  { %569 = vbcast.lane.b32.xlu1 %v2417_v37, 328  ;;  %589 = vbcast.lane.b32.xlu0 %v2438_v52, 320  ;;  %v514_v22 = vmul.f32 1.442695, %v496_v14  ;;  %v516_v26 = vmul.f32 1.442695, %v497_v16  ;;  %v501_v45 = vmul.f32 %v469_v21, %v2459_v50  ;;  %v451_v53 = vcombine.high %v435_v63, %v435_v63  ;;  %v2078_v61 = vpop.eup %2077 }
 0x34f   :  { %v526_v41 = vmul.f32 1.442695, %v502_v27  ;;  %v522_v47 = vmul.f32 1.442695, %v500_v31  ;;  %v528_v9 = vmul.f32 1.442695, %v503_v32  ;;  %v477_v59 = vrot.slane %v449_v33, %v2341_v43 }
 0x350   :  { %2089 = vpow2.f32 %v514_v22  ;;  %v524_v7 = vmul.f32 1.442695, %v501_v45  ;;  %v481_v10 = vrot.slane %v451_v53, %v2341_v43  ;;  %v453_v12 = vcombine.high %v449_v33, %v449_v33 }
 0x351   :  { %2091 = vpow2.f32 %v518_v23  ;;  %v872_v63 = vmul.f32 %v2462_v60, %v2459_v50  ;;  %v504_v14 = vmul.f32 %v477_v59, %v2443_v51  ;;  %v505_v6 = vmul.f32 %v477_v59, %v2459_v50 }
 0x352   :  { %581 = vbcast.lane.b32.xlu1 %v2433_v48, 328  ;;  %601 = vbcast.lane.b32.xlu0 %v2452_v49, 320  ;;  %2093 = vpow2.f32 %v516_v26  ;;  %v2564_v1 = vpop.eup %2079  ;;  %v506_v16 = vmul.f32 %v481_v10, %v2443_v51  ;;  %v485_v19 = vrot.slane %v453_v12, %v2341_v43  ;;  %v507_v20 = vmul.f32 %v481_v10, %v2459_v50 }
 0x353   :  { %2095 = vpow2.f32 %v526_v41  ;;  %v2570_v15 = vpop.eup %2081  ;;  %v873_v60 = vmul.f32 %v2536_v57, %v2443_v51  ;;  %v530_v21 = vmul.f32 1.442695, %v504_v14  ;;  %v532_v22 = vmul.f32 1.442695, %v505_v6 }
 0x354   :  { %2097 = vpow2.f32 %v520_v30  ;;  %v2084_v23 = vpop.eup %2083  ;;  %v850_v25 = vrot.slane %v2525_v38, %v2341_v43  ;;  %v534_v26 = vmul.f32 1.442695, %v506_v16  ;;  %v508_v27 = vmul.f32 %v485_v19, %v2443_v51 }
 0x355   :  { %2099 = vpow2.f32 %v522_v47  ;;  %v2086_v30 = vpop.eup %2085  ;;  %542 = vst.msk [vmem:[#allocation2] sm:$0xff] %vm283_vm7, %v2084_v23  ;;  %v536_v31 = vmul.f32 1.442695, %v507_v20  ;;  %v509_v32 = vmul.f32 %v485_v19, %v2459_v50  ;;  %v876_v41 = vmul.f32 %v2490_v13, %v2459_v50 }
 0x356   :  { %593 = vbcast.lane.b32.xlu1 %v2438_v52, 328  ;;  %613 = vbcast.lane.b32.xlu0 %v2470_v54, 320  ;;  %2101 = vpow2.f32 %v528_v9  ;;  %v2088_v33 = vpop.eup %2087  ;;  %543 = vst.msk [vmem:[#allocation2 + $0x8] sm:$0xff] %vm283_vm7, %v2086_v30  ;;  %v538_v45 = vmul.f32 1.442695, %v508_v27  ;;  %v854_v9 = vrot.slane %v824_v39, %v2341_v43  ;;  %v877_v10 = vmul.f32 %v850_v25, %v2443_v51 }
 0x357   :  { %2103 = vpow2.f32 %v524_v7  ;;  %v893_v47 = vmul.f32 1.442695, %v872_v63  ;;  %v540_v59 = vmul.f32 1.442695, %v509_v32  ;;  %v895_v13 = vmul.f32 1.442695, %v873_v60 }
 0x358   :  { %2105 = vpow2.f32 %v530_v21  ;;  %v826_v12 = vcombine.high %v2525_v38, %v2525_v38  ;;  %v901_v39 = vmul.f32 1.442695, %v876_v41  ;;  %v874_v38 = vmul.f32 %v2536_v57, %v2459_v50 }
 0x359   :  { %2107 = vpow2.f32 %v534_v26  ;;  %v903_v6 = vmul.f32 1.442695, %v877_v10  ;;  %v879_v16 = vmul.f32 %v854_v9, %v2443_v51  ;;  %v878_v21 = vmul.f32 %v850_v25, %v2459_v50 }
 0x35a   :  { %605 = vbcast.lane.b32.xlu1 %v2452_v49, 328  ;;  %625 = vbcast.lane.b32.xlu0 %v2475_v62, 320  ;;  %v2090_v53 = vpop.eup %2089  ;;  %2109 = vpow2.f32 %v532_v22  ;;  %v858_v19 = vrot.slane %v826_v12, %v2341_v43  ;;  %v897_v57 = vmul.f32 1.442695, %v874_v38 }
 0x35b   :  { %v2092_v7 = vpop.eup %2091  ;;  %544 = vst.msk [vmem:[#allocation2 + $0x10] sm:$0xff] %vm283_vm7, %v2090_v53  ;;  %2111 = vpow2.f32 %v538_v45  ;;  %v907_v23 = vmul.f32 1.442695, %v879_v16  ;;  %v905_v25 = vmul.f32 1.442695, %v878_v21 }
 0x35c   :  { %v2094_v14 = vpop.eup %2093  ;;  %546 = vst.msk [vmem:[#allocation2 + $0x20] sm:$0xff] %vm283_vm7, %v2092_v7  ;;  %2113 = vpow2.f32 %v536_v31  ;;  %v881_v26 = vmul.f32 %v858_v19, %v2443_v51  ;;  %v880_v31 = vmul.f32 %v854_v9, %v2459_v50  ;;  %v1101_v7 = vrot.slane %v2411_v35, %v2402_v24 }
 0x35d   :  { %545 = vst.msk [vmem:[#allocation2 + $0x18] sm:$0xff] %vm283_vm7, %v2094_v14  ;;  %2115 = vpow2.f32 %v540_v59 }
 0x35e   :  { %617 = vbcast.lane.b32.xlu1 %v2470_v54, 328  ;;  %637 = vbcast.lane.b32.xlu0 %v2480_v2, 320  ;;  %2117 = vpow2.f32 %v893_v47  ;;  %v911_v51 = vmul.f32 1.442695, %v881_v26  ;;  %v1117_v10 = vrot.slane %v1101_v7, %v2402_v24  ;;  %v1109_v12 = vcombine.high %v1101_v7, %v1101_v7 }
 0x35f   :  { %2119 = vpow2.f32 %v895_v13 }
 0x360   :  { %2121 = vpow2.f32 %v901_v39  ;;  %v1139_v16 = vcombine.high %v1117_v10, %v1117_v10 }
 0x361   :  { %2123 = vpow2.f32 %v903_v6 }
 0x362   :  { %629 = vbcast.lane.b32.xlu1 %v2475_v62, 328  ;;  %649 = vbcast.lane.b32.xlu0 %v2522_v34, 320  ;;  %2125 = vpow2.f32 %v897_v57  ;;  %v1154_v57 = vrot.slane %v1139_v16, %v2341_v43 }
 0x366   :  { %641 = vbcast.lane.b32.xlu1 %v2480_v2, 328  ;;  %931 = vrot.lane.b32.xlu0 %v2074_v36, %s2150_s9  ;;  %v2096_v36 = vpop.eup %2095  ;;  %2127 = vpow2.f32 %v907_v23 }
 0x367   :  { %v2098_v56 = vpop.eup %2097  ;;  %550 = vst.msk [vmem:[#allocation2 + $0x40] sm:$0xff] %vm283_vm7, %v2096_v36  ;;  %2129 = vpow2.f32 %v905_v25  ;;  %v1146_v36 = vrot.slane %v1117_v10, %v2341_v43 }
 0x368   :  { %v2100_v63 = vpop.eup %2099  ;;  %547 = vst.msk [vmem:[#allocation2 + $0x28] sm:$0xff] %vm283_vm7, %v2098_v56  ;;  %2131 = vpow2.f32 %v911_v51  ;;  %v1131_v56 = vrot.slane %v1109_v12, %v2402_v24  ;;  %v1162_v51 = vrot.slane %v2484_v0, %v2341_v43 }
 0x369   :  { %v2102_v20 = vpop.eup %2101  ;;  %548 = vst.msk [vmem:[#allocation2 + $0x30] sm:$0xff] %vm283_vm7, %v2100_v63 }
 0x36a   :  { %653 = vbcast.lane.b32.xlu1 %v2522_v34, 328  ;;  %935 = vrot.lane.b32.xlu0 %v2078_v61, %s2150_s9  ;;  %v2104_v61 = vpop.eup %2103  ;;  %551 = vst.msk [vmem:[#allocation2 + $0x48] sm:$0xff] %vm283_vm7, %v2102_v20  ;;  %v1150_v6 = vrot.slane %v1131_v56, %v2341_v43  ;;  %v1141_v24 = vcombine.high %v1131_v56, %v1131_v56 }
 0x36b   :  { %v2106_v60 = vpop.eup %2105  ;;  %549 = vst.msk [vmem:[#allocation2 + $0x38] sm:$0xff] %vm283_vm7, %v2104_v61 }
 0x36c   :  { %v2108_v22 = vpop.eup %2107  ;;  %552 = vst.msk [vmem:[#allocation2 + $0x50] sm:$0xff] %vm283_vm7, %v2106_v60 }
 0x36d   :  { %v2110_v27 = vpop.eup %2109  ;;  %554 = vst.msk [vmem:[#allocation2 + $0x60] sm:$0xff] %vm283_vm7, %v2108_v22 }
 0x36e   :  { %933 = vrot.lane.b32.xlu1 %v2558_v46, %s2150_s9  ;;  %939 = vrot.lane.b32.xlu0 %v2564_v1, %s2150_s9  ;;  %v2112_v46 = vpop.eup %2111  ;;  %553 = vst.msk [vmem:[#allocation2 + $0x58] sm:$0xff] %vm283_vm7, %v2110_v27  ;;  %v1158_v27 = vrot.slane %v1141_v24, %v2341_v43 }
 0x36f   :  { %v2114_v1 = vpop.eup %2113  ;;  %556 = vst.msk [vmem:[#allocation2 + $0x70] sm:$0xff] %vm283_vm7, %v2112_v46 }
 0x370   :  { %v2116_v30 = vpop.eup %2115  ;;  %555 = vst.msk [vmem:[#allocation2 + $0x68] sm:$0xff] %vm283_vm7, %v2114_v1 }
 0x371   :  { %v2118_v32 = vpop.eup %2117  ;;  %557 = vst.msk [vmem:[#allocation2 + $0x78] sm:$0xff] %vm283_vm7, %v2116_v30 }
 0x372   :  { %937 = vrot.lane.b32.xlu1 %v2570_v15, %s2150_s9  ;;  %947 = vrot.lane.b32.xlu0 %v2088_v33, %s2150_s9  ;;  %v2120_v41 = vpop.eup %2119  ;;  %v909_v15 = vmul.f32 1.442695, %v880_v31  ;;  %v882_v33 = vmul.f32 %v858_v19, %v2459_v50 }
 0x373   :  { %v2122_v45 = vpop.eup %2121 }
 0x374   :  { %v2124_v53 = vpop.eup %2123  ;;  %2133 = vpow2.f32 %v909_v15  ;;  %v913_v47 = vmul.f32 1.442695, %v882_v33  ;;  %v1166_v33 = vrot.slane %v2497_v17, %v2341_v43 }
 0x375   :  { %v2126_v9 = vpop.eup %2125 }
 0x376   :  { %941 = vrot.lane.b32.xlu1 %v2118_v32, %s2150_s9  ;;  %943 = vrot.lane.b32.xlu0 %v2120_v41, %s2150_s9  ;;  %v2128_v59 = vpop.eup %2127  ;;  %2135 = vpow2.f32 %v913_v47 }
 0x377   :  { %v2130_v13 = vpop.eup %2129 }
 0x378   :  { %v2132_v50 = vpop.eup %2131 }
 0x37a   :  { %949 = vrot.lane.b32.xlu1 %v2122_v45, %s2150_s9  ;;  %951 = vrot.lane.b32.xlu0 %v2124_v53, %s2150_s9  ;;  %v1140_v45 = vcombine.high %v2484_v0, %v2484_v0 }
 0x37c   :  { %v1170_v7 = vrot.slane %v1140_v45, %v2341_v43 }
 0x37e   :  { %945 = vrot.lane.b32.xlu1 %v2126_v9, %s2150_s9  ;;  %955 = vrot.lane.b32.xlu0 %v2128_v59, %s2150_s9  ;;  %v2134_v14 = vpop.eup %2133 }
 0x380   :  { %v2136_v35 = vpop.eup %2135 }
 0x382   :  { %953 = vrot.lane.b32.xlu1 %v2130_v13, %s2150_s9  ;;  %959 = vrot.lane.b32.xlu0 %v2132_v50, %s2150_s9  ;;  %v1142_v13 = vcombine.high %v2497_v17, %v2497_v17 }
 0x386   :  { %957 = vrot.lane.b32.xlu1 %v2134_v14, %s2150_s9 }
 0x388   :  { %v1008_v39 = vpop.permute.xlu1 %1007  ;;  %v1004_v38 = vpop.permute.xlu0 %1003 }
 0x389   :  { %v1183_v63 = vmul.f32 %v1146_v36, %v1004_v38  ;;  %v1184_v19 = vmul.f32 %v1146_v36, %v1008_v39  ;;  %v1174_v36 = vrot.slane %v1142_v13, %v2341_v43 }
 0x38a   :  { %961 = vrot.lane.b32.xlu1 %v2136_v35, %s2150_s9 }
 0x38b   :  { %1215 = vrot.lane.b32.xlu0 %v1183_v63, %s2150_s9 }
 0x38c   :  { %v1016_v20 = vpop.permute.xlu1 %1015  ;;  %v1028_v61 = vpop.permute.xlu0 %1027 }
 0x38d   :  { %v1185_v60 = vmul.f32 %v1150_v6, %v1016_v20  ;;  %v1187_v23 = vmul.f32 %v1154_v57, %v1028_v61 }
 0x38e   :  { %1217 = vrot.lane.b32.xlu1 %v1184_v19, %s2150_s9 }
 0x38f   :  { %1219 = vrot.lane.b32.xlu0 %v1185_v60, %s2150_s9 }
 0x390   :  { %v1020_v21 = vpop.permute.xlu1 %1019  ;;  %v1040_v22 = vpop.permute.xlu0 %1039 }
 0x391   :  { %v1186_v26 = vmul.f32 %v1150_v6, %v1020_v21  ;;  %v1189_v25 = vmul.f32 %v1158_v27, %v1040_v22 }
 0x393   :  { %1221 = vrot.lane.b32.xlu1 %v1186_v26, %s2150_s9  ;;  %1223 = vrot.lane.b32.xlu0 %v1187_v23, %s2150_s9 }
 0x394   :  { %v1032_v46 = vpop.permute.xlu1 %1031  ;;  %v1052_v1 = vpop.permute.xlu0 %1051 }
 0x395   :  { %v1188_v30 = vmul.f32 %v1154_v57, %v1032_v46  ;;  %v1191_v41 = vmul.f32 %v1162_v51, %v1052_v1  ;;  %v1930_v57 = vmul.f32 -1.442695, %v2303_v58  ;;  %v703_v46 = vcombine.high %v2511_v28, %v2511_v28 }
 0x397   :  { %1225 = vrot.lane.b32.xlu1 %v1188_v30, %s2150_s9  ;;  %1227 = vrot.lane.b32.xlu0 %v1189_v25, %s2150_s9  ;;  %2137 = vpow2.f32 %v1930_v57 }
 0x398   :  { %v1044_v31 = vpop.permute.xlu1 %1043  ;;  %v1064_v32 = vpop.permute.xlu0 %1063 }
 0x399   :  { %v1190_v15 = vmul.f32 %v1158_v27, %v1044_v31  ;;  %v1193_v9 = vmul.f32 %v1166_v33, %v1064_v32 }
 0x39b   :  { %1229 = vrot.lane.b32.xlu1 %v1190_v15, %s2150_s9  ;;  %1231 = vrot.lane.b32.xlu0 %v1191_v41, %s2150_s9 }
 0x39c   :  { %v1056_v53 = vpop.permute.xlu1 %1055  ;;  %v1076_v47 = vpop.permute.xlu0 %1075 }
 0x39d   :  { %v1192_v59 = vmul.f32 %v1162_v51, %v1056_v53  ;;  %v1195_v12 = vmul.f32 %v1170_v7, %v1076_v47 }
 0x39f   :  { %1233 = vrot.lane.b32.xlu1 %v1192_v59, %s2150_s9  ;;  %1235 = vrot.lane.b32.xlu0 %v1193_v9, %s2150_s9  ;;  %v702_v9 = vcombine.high %v2514_v29, %v2514_v29 }
 0x3a0   :  { %v1068_v50 = vpop.permute.xlu1 %1067  ;;  %v1088_v10 = vpop.permute.xlu0 %1087 }
 0x3a1   :  { %v1194_v14 = vmul.f32 %v1166_v33, %v1068_v50  ;;  %v1197_v39 = vmul.f32 %v1174_v36, %v1088_v10  ;;  %v2138_v32 = vpop.eup %2137  ;;  %v704_v10 = vcombine.high %v2530_v44, %v2530_v44 }
 0x3a3   :  { %1237 = vrot.lane.b32.xlu1 %v1194_v14, %s2150_s9  ;;  %1239 = vrot.lane.b32.xlu0 %v1195_v12, %s2150_s9 }
 0x3a4   :  { %v1080_v0 = vpop.permute.xlu1 %1079  ;;  %v2668_v56 = vpop.permute.xlu0 %1550 }
 0x3a5   :  { %v1196_v38 = vmul.f32 %v1170_v7, %v1080_v0 }
 0x3a7   :  { %1241 = vrot.lane.b32.xlu1 %v1196_v38, %s2150_s9  ;;  %1243 = vrot.lane.b32.xlu0 %v1197_v39, %s2150_s9 }
 0x3a8   :  { %v1092_v17 = vpop.permute.xlu1 %1091  ;;  %v2672_v35 = vpop.permute.xlu0 %1558 }
 0x3a9   :  { %v1198_v63 = vmul.f32 %v1174_v36, %v1092_v17 }
 0x3ab   :  { %1245 = vrot.lane.b32.xlu1 %v1198_v63, %s2150_s9  ;;  %1590 = vbcast.lane.b32.xlu0 %v2381_v4, 336 }
 0x3ac   :  { %v2676_v6 = vpop.permute.xlu1 %1554  ;;  %v2678_v16 = vpop.permute.xlu0 %1566 }
 0x3af   :  { %1594 = vbcast.lane.b32.xlu1 %v2381_v4, 344  ;;  %1598 = vbcast.lane.b32.xlu0 %v2388_v8, 336  ;;  %v708_v4 = vrot.slane %v2502_v18, %v2341_v43 }
 0x3b0   :  { %v2682_v19 = vpop.permute.xlu1 %1562  ;;  %v2684_v20 = vpop.permute.xlu0 %1574 }
 0x3b3   :  { %1602 = vbcast.lane.b32.xlu1 %v2388_v8, 344  ;;  %1606 = vbcast.lane.b32.xlu0 %v2395_v11, 336  ;;  %v712_v8 = vrot.slane %v2511_v28, %v2341_v43  ;;  %v1758_v28 = vadd.f32 1.0, %v2138_v32 }
 0x3b4   :  { %v2688_v61 = vpop.permute.xlu1 %1570  ;;  %v2690_v60 = vpop.permute.xlu0 %1582 }
 0x3b5   :  { %2139 = vrcp.f32 %v1758_v28 }
 0x3b7   :  { %1610 = vbcast.lane.b32.xlu1 %v2395_v11, 344  ;;  %1382 = vbcast.lane.b32.xlu0 %v2417_v37, 336  ;;  %v701_v11 = vcombine.high %v2502_v18, %v2502_v18 }
 0x3b8   :  { %v2697_v24 = vpop.permute.xlu1 %1578  ;;  %v566_v21 = vpop.permute.xlu0 %565 }
 0x3b9   :  { %v745_v22 = vmul.f32 %v708_v4, %v566_v21 }
 0x3bb   :  { %761 = vst.msk [vmem:[#allocation3] sm:$0xff] %vm283_vm7, %v745_v22  ;;  %1386 = vbcast.lane.b32.xlu1 %v2417_v37, 344  ;;  %1390 = vbcast.lane.b32.xlu0 %v2433_v48, 336  ;;  %v716_v37 = vrot.slane %v701_v11, %v2341_v43  ;;  %v1777_v11 = vld [vmem:[%s2983_s11 + $0x8] sm:$0xff] }
 0x3bc   :  { %v2706_v23 = vpop.permute.xlu1 %1586  ;;  %v578_v26 = vpop.permute.xlu0 %577 }
 0x3bd   :  { %v747_v27 = vmul.f32 %v712_v8, %v578_v26  ;;  %v1778_v26 = vld [vmem:[%s2983_s11 + $0x10] sm:$0xff] }
 0x3bf   :  { %763 = vst.msk [vmem:[#allocation3 + $0x10] sm:$0xff] %vm283_vm7, %v747_v27  ;;  %1394 = vbcast.lane.b32.xlu1 %v2433_v48, 344  ;;  %1398 = vbcast.lane.b32.xlu0 %v2438_v52, 336  ;;  %v720_v48 = vrot.slane %v703_v46, %v2341_v43  ;;  %v2140_v63 = vpop.eup %2139 }
 0x3c0   :  { %v570_v1 = vpop.permute.xlu1 %569  ;;  %v590_v25 = vpop.permute.xlu0 %589 }
 0x3c1   :  { %v746_v30 = vmul.f32 %v708_v4, %v570_v1  ;;  %v749_v51 = vmul.f32 %v716_v37, %v590_v25  ;;  %v1780_v1 = vld [vmem:[%s2983_s11 + $0x20] sm:$0xff]  ;;  %v1781_v25 = vld [vmem:[%s2983_s11 + $0x28] sm:$0xff] }
 0x3c3   :  { %762 = vst.msk [vmem:[#allocation3 + $0x8] sm:$0xff] %vm283_vm7, %v746_v30  ;;  %765 = vst.msk [vmem:[#allocation3 + $0x20] sm:$0xff] %vm283_vm7, %v749_v51  ;;  %1402 = vbcast.lane.b32.xlu1 %v2438_v52, 344  ;;  %1406 = vbcast.lane.b32.xlu0 %v2452_v49, 336  ;;  %v724_v52 = vrot.slane %v2514_v29, %v2341_v43 }
 0x3c4   :  { %v582_v18 = vpop.permute.xlu1 %581  ;;  %v602_v31 = vpop.permute.xlu0 %601 }
 0x3c5   :  { %v748_v41 = vmul.f32 %v712_v8, %v582_v18  ;;  %v751_v15 = vmul.f32 %v720_v48, %v602_v31 }
 0x3c7   :  { %764 = vst.msk [vmem:[#allocation3 + $0x18] sm:$0xff] %vm283_vm7, %v748_v41  ;;  %767 = vst.msk [vmem:[#allocation3 + $0x30] sm:$0xff] %vm283_vm7, %v751_v15  ;;  %1410 = vbcast.lane.b32.xlu1 %v2452_v49, 344  ;;  %1414 = vbcast.lane.b32.xlu0 %v2470_v54, 336  ;;  %v728_v49 = vrot.slane %v2530_v44, %v2341_v43 }
 0x3c8   :  { %v594_v33 = vpop.permute.xlu1 %593  ;;  %v614_v45 = vpop.permute.xlu0 %613 }
 0x3c9   :  { %v750_v53 = vmul.f32 %v716_v37, %v594_v33  ;;  %v753_v47 = vmul.f32 %v724_v52, %v614_v45  ;;  %v1779_v37 = vld [vmem:[%s2983_s11 + $0x18] sm:$0xff] }
 0x3ca   :  { %v2039_v46 = vpack.c.bf16 %v1779_v37, %v1778_v26 }
 0x3cb   :  { %766 = vst.msk [vmem:[#allocation3 + $0x28] sm:$0xff] %vm283_vm7, %v750_v53  ;;  %769 = vst.msk [vmem:[#allocation3 + $0x40] sm:$0xff] %vm283_vm7, %v753_v47  ;;  %1418 = vbcast.lane.b32.xlu1 %v2470_v54, 344  ;;  %1422 = vbcast.lane.b32.xlu0 %v2475_v62, 336  ;;  %v732_v54 = vrot.slane %v702_v9, %v2341_v43 }
 0x3cc   :  { %v606_v59 = vpop.permute.xlu1 %605  ;;  %v626_v7 = vpop.permute.xlu0 %625 }
 0x3cd   :  { %v752_v13 = vmul.f32 %v720_v48, %v606_v59  ;;  %v755_v50 = vmul.f32 %v728_v49, %v626_v7  ;;  %v2043_v48 = vpack.c.bf16 %v1781_v25, %v1780_v1 }
 0x3cf   :  { %768 = vst.msk [vmem:[#allocation3 + $0x38] sm:$0xff] %vm283_vm7, %v752_v13  ;;  %771 = vst.msk [vmem:[#allocation3 + $0x50] sm:$0xff] %vm283_vm7, %v755_v50  ;;  %1426 = vbcast.lane.b32.xlu1 %v2475_v62, 344  ;;  %1430 = vbcast.lane.b32.xlu0 %v2480_v2, 336  ;;  %v736_v62 = vrot.slane %v704_v10, %v2341_v43 }
 0x3d0   :  { %v618_v12 = vpop.permute.xlu1 %617  ;;  %v638_v29 = vpop.permute.xlu0 %637 }
 0x3d1   :  { %v754_v14 = vmul.f32 %v724_v52, %v618_v12  ;;  %v757_v36 = vmul.f32 %v732_v54, %v638_v29 }
 0x3d3   :  { %770 = vst.msk [vmem:[#allocation3 + $0x48] sm:$0xff] %vm283_vm7, %v754_v14  ;;  %773 = vst.msk [vmem:[#allocation3 + $0x60] sm:$0xff] %vm283_vm7, %v757_v36  ;;  %1434 = vbcast.lane.b32.xlu1 %v2480_v2, 344  ;;  %1438 = vbcast.lane.b32.xlu0 %v2522_v34, 336  ;;  %v1764_v2 = vmul.f32 %v2140_v63, %v2303_v58  ;;  %v1776_v58 = vld [vmem:[%s2983_s11] sm:$0xff] }
 0x3d4   :  { %v630_v0 = vpop.permute.xlu1 %629  ;;  %v650_v39 = vpop.permute.xlu0 %649  ;;  %v2035_v27 = vpack.c.bf16 %v1777_v11, %v1776_v58 }
 0x3d5   :  { %v756_v38 = vmul.f32 %v728_v49, %v630_v0  ;;  %v759_v17 = vmul.f32 %v736_v62, %v650_v39 }
 0x3d6   :  { %2036 = vmatprep.subr.bf16.mxu0 %v2035_v27 }
 0x3d7   :  { %772 = vst.msk [vmem:[#allocation3 + $0x58] sm:$0xff] %vm283_vm7, %v756_v38  ;;  %775 = vst.msk [vmem:[#allocation3 + $0x70] sm:$0xff] %vm283_vm7, %v759_v17  ;;  %1442 = vbcast.lane.b32.xlu1 %v2522_v34, 344  ;;  %2038 = vmatpush3.bf16.msra.mxu0 %v2035_v27 }
 0x3d8   :  { %v642_v44 = vpop.permute.xlu1 %641  ;;  %v932_v57 = vpop.permute.xlu0 %931  ;;  %2040 = vmatprep.subr.bf16.mxu0 %v2039_v46 }
 0x3d9   :  { %v758_v4 = vmul.f32 %v732_v54, %v642_v44  ;;  %980 = vst.msk [vmem:[#allocation2] sm:$0xff] %vm979_vm12, %v932_v57 }
 0x3db   :  { %774 = vst.msk [vmem:[#allocation3 + $0x68] sm:$0xff] %vm283_vm7, %v758_v4  ;;  %1768 = vrot.lane.b32.xlu1 %v1764_v2, %s2150_s9  ;;  %2042 = vmatpush3.bf16.msra.mxu0 %v2039_v46 }
 0x3dc   :  { %v654_v43 = vpop.permute.xlu1 %653  ;;  %v936_v21 = vpop.permute.xlu0 %935  ;;  %2044 = vmatprep.subr.bf16.mxu0 %v2043_v48 }
 0x3dd   :  { %v760_v22 = vmul.f32 %v736_v62, %v654_v43  ;;  %982 = vst.msk [vmem:[#allocation2 + $0x10] sm:$0xff] %vm979_vm12, %v936_v21 }
 0x3df   :  { %776 = vst.msk [vmem:[#allocation3 + $0x78] sm:$0xff] %vm283_vm7, %v760_v22  ;;  %2046 = vmatpush3.bf16.msra.mxu0 %v2043_v48 }
 0x3e0   :  { %v934_v8 = vpop.permute.xlu1 %933  ;;  %v940_v34 = vpop.permute.xlu0 %939  ;;  %v1279_v9 = vld [vmem:[#allocation2] sm:$0xff] }
 0x3e1   :  { %981 = vst.msk [vmem:[#allocation2 + $0x8] sm:$0xff] %vm979_vm12, %v934_v8  ;;  %984 = vst.msk [vmem:[#allocation2 + $0x20] sm:$0xff] %vm979_vm12, %v940_v34  ;;  %v1281_v7 = vmul.f32 0.0, %v1279_v9 }
 0x3e4   :  { %v938_v30 = vpop.permute.xlu1 %937  ;;  %v948_v51 = vpop.permute.xlu0 %947  ;;  %v1290_v29 = vld [vmem:[#allocation2 + $0x10] sm:$0xff] }
 0x3e5   :  { %983 = vst.msk [vmem:[#allocation2 + $0x18] sm:$0xff] %vm979_vm12, %v938_v30  ;;  %988 = vst.msk [vmem:[#allocation2 + $0x40] sm:$0xff] %vm979_vm12, %v948_v51 }
 0x3e8   :  { %v942_v18 = vpop.permute.xlu1 %941  ;;  %v944_v31 = vpop.permute.xlu0 %943  ;;  %v1280_v13 = vld [vmem:[#allocation2 + $0x8] sm:$0xff]  ;;  %v1303_v57 = vld [vmem:[#allocation2 + $0x20] sm:$0xff] }
 0x3e9   :  { %985 = vst.msk [vmem:[#allocation2 + $0x28] sm:$0xff] %vm979_vm12, %v942_v18  ;;  %986 = vst.msk [vmem:[#allocation2 + $0x30] sm:$0xff] %vm979_vm12, %v944_v31  ;;  %v1282_v14 = vmul.f32 0.0, %v1280_v13 }
 0x3ec   :  { %v950_v32 = vpop.permute.xlu1 %949  ;;  %v952_v41 = vpop.permute.xlu0 %951  ;;  %v1291_v63 = vld [vmem:[#allocation2 + $0x18] sm:$0xff] }
 0x3ed   :  { %989 = vst.msk [vmem:[#allocation2 + $0x48] sm:$0xff] %vm979_vm12, %v950_v32  ;;  %990 = vst.msk [vmem:[#allocation2 + $0x50] sm:$0xff] %vm979_vm12, %v952_v41  ;;  %v1329_v41 = vld [vmem:[#allocation2 + $0x40] sm:$0xff] }
 0x3f0   :  { %v946_v15 = vpop.permute.xlu1 %945  ;;  %v956_v52 = vpop.permute.xlu0 %955  ;;  %v1316_v26 = vld [vmem:[#allocation2 + $0x30] sm:$0xff]  ;;  %v1304_v27 = vld [vmem:[#allocation2 + $0x28] sm:$0xff] }
 0x3f1   :  { %987 = vst.msk [vmem:[#allocation2 + $0x38] sm:$0xff] %vm979_vm12, %v946_v15  ;;  %992 = vst.msk [vmem:[#allocation2 + $0x60] sm:$0xff] %vm979_vm12, %v956_v52 }
 0x3f4   :  { %v954_v28 = vpop.permute.xlu1 %953  ;;  %v960_v33 = vpop.permute.xlu0 %959 }
 0x3f5   :  { %991 = vst.msk [vmem:[#allocation2 + $0x58] sm:$0xff] %vm979_vm12, %v954_v28  ;;  %994 = vst.msk [vmem:[#allocation2 + $0x70] sm:$0xff] %vm979_vm12, %v960_v33 }
 0x3f8   :  { %v958_v45 = vpop.permute.xlu1 %957  ;;  %v1317_v15 = vld [vmem:[#allocation2 + $0x38] sm:$0xff] }
 0x3f9   :  { %993 = vst.msk [vmem:[#allocation2 + $0x68] sm:$0xff] %vm979_vm12, %v958_v45 }
 0x3fc   :  { %v962_v53 = vpop.permute.xlu1 %961 }
 0x3fd   :  { %995 = vst.msk [vmem:[#allocation2 + $0x78] sm:$0xff] %vm979_vm12, %v962_v53  ;;  %v1216_v47 = vpop.permute.xlu0 %1215 }
 0x3fe   :  { %1263 = vst.msk [vmem:[#allocation3] sm:$0xff] %vm979_vm12, %v1216_v47 }
 0x400   :  { %v1218_v49 = vpop.permute.xlu1 %1217 }
 0x401   :  { %1264 = vst.msk [vmem:[#allocation3 + $0x8] sm:$0xff] %vm979_vm12, %v1218_v49  ;;  %v1220_v59 = vpop.permute.xlu0 %1219 }
 0x402   :  { %1265 = vst.msk [vmem:[#allocation3 + $0x10] sm:$0xff] %vm979_vm12, %v1220_v59 }
 0x405   :  { %v1283_v50 = vld [vmem:[#allocation3] sm:$0xff]  ;;  %v1222_v54 = vpop.permute.xlu1 %1221  ;;  %v1224_v10 = vpop.permute.xlu0 %1223 }
 0x406   :  { %v2789_v12 = vadd.f32 %v1283_v50, %v1281_v7  ;;  %1266 = vst.msk [vmem:[#allocation3 + $0x18] sm:$0xff] %vm979_vm12, %v1222_v54  ;;  %1267 = vst.msk [vmem:[#allocation3 + $0x20] sm:$0xff] %vm979_vm12, %v1224_v10  ;;  %v1342_v10 = vld [vmem:[#allocation2 + $0x50] sm:$0xff] }
 0x408   :  { %v1284_v36 = vld [vmem:[#allocation3 + $0x8] sm:$0xff]  ;;  %v1292_v62 = vmul.f32 %v1290_v29, %v2789_v12  ;;  %v1612_v37 = vmul.f32 %v2668_v56, %v2789_v12 }
 0x409   :  { %v2794_v0 = vadd.f32 %v1284_v36, %v1282_v14  ;;  %v1226_v39 = vpop.permute.xlu1 %1225  ;;  %v1228_v38 = vpop.permute.xlu0 %1227  ;;  %v1295_v17 = vld [vmem:[#allocation3 + $0x10] sm:$0xff]  ;;  %v1330_v29 = vld [vmem:[#allocation2 + $0x48] sm:$0xff] }
 0x40a   :  { %1268 = vst.msk [vmem:[#allocation3 + $0x28] sm:$0xff] %vm979_vm12, %v1226_v39  ;;  %1269 = vst.msk [vmem:[#allocation3 + $0x30] sm:$0xff] %vm979_vm12, %v1228_v38  ;;  %v2798_v44 = vadd.f32 %v1295_v17, %v1292_v62  ;;  %v1628_v52 = vsel %vm979_vm12, %v1612_v37, 0.0  ;;  %v1931_v38 = vmul.f32 -1.442695, %v2299_v55 }
 0x40b   :  { %v1293_v4 = vmul.f32 %v1291_v63, %v2794_v0  ;;  %v1613_v11 = vmul.f32 %v2676_v6, %v2794_v0 }
 0x40c   :  { %v1305_v2 = vmul.f32 %v1303_v57, %v2798_v44  ;;  %v1614_v31 = vmul.f32 %v2672_v35, %v2798_v44  ;;  %2141 = vpow2.f32 %v1931_v38 }
 0x40d   :  { %v1230_v43 = vpop.permute.xlu1 %1229  ;;  %v1232_v21 = vpop.permute.xlu0 %1231  ;;  %v1308_v22 = vld [vmem:[#allocation3 + $0x20] sm:$0xff]  ;;  %v1296_v8 = vld [vmem:[#allocation3 + $0x18] sm:$0xff] }
 0x40e   :  { %1270 = vst.msk [vmem:[#allocation3 + $0x38] sm:$0xff] %vm979_vm12, %v1230_v43  ;;  %1271 = vst.msk [vmem:[#allocation3 + $0x40] sm:$0xff] %vm979_vm12, %v1232_v21  ;;  %v2804_v34 = vadd.f32 %v1308_v22, %v1305_v2  ;;  %v2806_v58 = vadd.f32 %v1296_v8, %v1293_v4  ;;  %v1637_v7 = vsel %vm979_vm12, %v1614_v31, 0.0 }
 0x410   :  { %v1318_v46 = vmul.f32 %v1316_v26, %v2804_v34  ;;  %v1306_v1 = vmul.f32 %v1304_v27, %v2806_v58  ;;  %v1615_v25 = vmul.f32 %v2682_v19, %v2806_v58  ;;  %v1616_v32 = vmul.f32 %v2678_v16, %v2804_v34  ;;  %v1355_v26 = vld [vmem:[#allocation2 + $0x60] sm:$0xff] }
 0x411   :  { %v1234_v30 = vpop.permute.xlu1 %1233  ;;  %v1236_v51 = vpop.permute.xlu0 %1235  ;;  %v1321_v48 = vld [vmem:[#allocation3 + $0x30] sm:$0xff]  ;;  %v1309_v18 = vld [vmem:[#allocation3 + $0x28] sm:$0xff]  ;;  %v1629_v19 = vsel %vm979_vm12, %v1613_v11, 0.0  ;;  %v1343_v11 = vld [vmem:[#allocation2 + $0x58] sm:$0xff] }
 0x412   :  { %1272 = vst.msk [vmem:[#allocation3 + $0x48] sm:$0xff] %vm979_vm12, %v1234_v30  ;;  %1273 = vst.msk [vmem:[#allocation3 + $0x50] sm:$0xff] %vm979_vm12, %v1236_v51  ;;  %v2820_v6 = vadd.f32 %v1321_v48, %v1318_v46  ;;  %v2822_v56 = vadd.f32 %v1309_v18, %v1306_v1  ;;  %v1638_v45 = vsel %vm979_vm12, %v1615_v25, 0.0  ;;  %v1630_v59 = vadd.f32 %v1629_v19, %v1628_v52 }
 0x413   :  { %v1639_v14 = vadd.f32 %v1638_v45, %v1637_v7 }
 0x414   :  { %v1331_v28 = vmul.f32 %v1329_v41, %v2820_v6  ;;  %v1319_v35 = vmul.f32 %v1317_v15, %v2822_v56  ;;  %v1617_v33 = vmul.f32 %v2688_v61, %v2822_v56  ;;  %v1618_v16 = vmul.f32 %v2684_v20, %v2820_v6 }
 0x415   :  { %v1238_v53 = vpop.permute.xlu1 %1237  ;;  %v1240_v47 = vpop.permute.xlu0 %1239  ;;  %v1334_v49 = vld [vmem:[#allocation3 + $0x40] sm:$0xff]  ;;  %v1322_v9 = vld [vmem:[#allocation3 + $0x38] sm:$0xff]  ;;  %v1646_v61 = vsel %vm979_vm12, %v1616_v32, 0.0  ;;  %v1631_v2 = vrot.slane %v1630_v59, 4  ;;  %v1640_v27 = vrot.slane %v1639_v14, 4 }
 0x416   :  { %1274 = vst.msk [vmem:[#allocation3 + $0x58] sm:$0xff] %vm979_vm12, %v1238_v53  ;;  %1275 = vst.msk [vmem:[#allocation3 + $0x60] sm:$0xff] %vm979_vm12, %v1240_v47  ;;  %v2838_v13 = vadd.f32 %v1334_v49, %v1331_v28  ;;  %v2840_v50 = vadd.f32 %v1322_v9, %v1319_v35  ;;  %v1647_v54 = vsel %vm979_vm12, %v1617_v33, 0.0  ;;  %v1655_v43 = vsel %vm979_vm12, %v1618_v16, 0.0  ;;  %v1356_v28 = vld [vmem:[#allocation2 + $0x68] sm:$0xff]  ;;  %v1368_v9 = vld [vmem:[#allocation2 + $0x70] sm:$0xff] }
 0x417   :  { %v1648_v20 = vadd.f32 %v1647_v54, %v1646_v61  ;;  %v1632_v31 = vadd.f32 %v1631_v2, %v1630_v59  ;;  %v1641_v35 = vadd.f32 %v1640_v27, %v1639_v14  ;;  %v1369_v14 = vld [vmem:[#allocation2 + $0x78] sm:$0xff] }
 0x418   :  { %v1344_v36 = vmul.f32 %v1342_v10, %v2838_v13  ;;  %v1332_v62 = vmul.f32 %v1330_v29, %v2840_v50  ;;  %v1619_v39 = vmul.f32 %v2697_v24, %v2840_v50  ;;  %v1620_v22 = vmul.f32 %v2690_v60, %v2838_v13 }
 0x419   :  { %v1242_v17 = vpop.permute.xlu1 %1241  ;;  %v1244_v63 = vpop.permute.xlu0 %1243  ;;  %v1347_v57 = vld [vmem:[#allocation3 + $0x50] sm:$0xff]  ;;  %v1335_v4 = vld [vmem:[#allocation3 + $0x48] sm:$0xff]  ;;  %v1649_v37 = vrot.slane %v1648_v20, 4  ;;  %v1633_v29 = vrot.slane %v1632_v31, 2 }
 0x41a   :  { %1276 = vst.msk [vmem:[#allocation3 + $0x68] sm:$0xff] %vm979_vm12, %v1242_v17  ;;  %1277 = vst.msk [vmem:[#allocation3 + $0x70] sm:$0xff] %vm979_vm12, %v1244_v63  ;;  %v2852_v21 = vadd.f32 %v1347_v57, %v1344_v36  ;;  %v2856_v8 = vadd.f32 %v1335_v4, %v1332_v62  ;;  %v1656_v24 = vsel %vm979_vm12, %v1619_v39, 0.0  ;;  %v1664_v19 = vsel %vm979_vm12, %v1620_v22, 0.0 }
 0x41b   :  { %v1657_v46 = vadd.f32 %v1656_v24, %v1655_v43  ;;  %v1650_v33 = vadd.f32 %v1649_v37, %v1648_v20  ;;  %v1642_v20 = vrot.slane %v1641_v35, 2  ;;  %v1634_v27 = vadd.f32 %v1633_v29, %v1632_v31  ;;  %v2142_v37 = vpop.eup %2141 }
 0x41c   :  { %v1345_v1 = vmul.f32 %v1343_v11, %v2856_v8  ;;  %v1621_v25 = vmul.f32 %v2706_v23, %v2856_v8  ;;  %v1357_v30 = vmul.f32 %v1355_v26, %v2852_v21 }
 0x41d   :  { %v1246_v51 = vpop.permute.xlu1 %1245  ;;  %v1591_v48 = vpop.permute.xlu0 %1590  ;;  %v1348_v60 = vld [vmem:[#allocation3 + $0x58] sm:$0xff]  ;;  %v1360_v18 = vld [vmem:[#allocation3 + $0x60] sm:$0xff]  ;;  %v1658_v32 = vrot.slane %v1657_v46, 4  ;;  %v1651_v62 = vrot.slane %v1650_v33, 2 }
 0x41e   :  { %1278 = vst.msk [vmem:[#allocation3 + $0x78] sm:$0xff] %vm979_vm12, %v1246_v51  ;;  %v2865_v41 = vadd.f32 %v1348_v60, %v1345_v1  ;;  %v1665_v15 = vsel %vm979_vm12, %v1621_v25, 0.0  ;;  %v2868_v52 = vadd.f32 %v1360_v18, %v1357_v30  ;;  %v1622_v45 = vmul.f32 %v1591_v48, %v2852_v21 }
 0x41f   :  { %v1666_v23 = vadd.f32 %v1665_v15, %v1664_v19  ;;  %v1659_v59 = vadd.f32 %v1658_v32, %v1657_v46  ;;  %v1643_v1 = vadd.f32 %v1642_v20, %v1641_v35  ;;  %v1652_v25 = vadd.f32 %v1651_v62, %v1650_v33 }
 0x420   :  { %v1358_v53 = vmul.f32 %v1356_v28, %v2865_v41  ;;  %v1370_v10 = vmul.f32 %v1368_v9, %v2868_v52  ;;  %v1673_v38 = vsel %vm979_vm12, %v1622_v45, 0.0  ;;  %v1759_v45 = vadd.f32 1.0, %v2142_v37 }
 0x421   :  { %v1595_v47 = vpop.permute.xlu1 %1594  ;;  %v1599_v49 = vpop.permute.xlu0 %1598  ;;  %v1361_v16 = vld [vmem:[#allocation3 + $0x68] sm:$0xff]  ;;  %v1667_v7 = vrot.slane %v1666_v23, 4  ;;  %v1373_v36 = vld [vmem:[#allocation3 + $0x70] sm:$0xff]  ;;  %v1660_v24 = vrot.slane %v1659_v59, 2  ;;  %v1644_v33 = vrot.slane %v1643_v1, 1  ;;  %v1635_v9 = vrot.slane %v1634_v27, 1 }
 0x422   :  { %v1623_v61 = vmul.f32 %v1595_v47, %v2865_v41  ;;  %v2873_v54 = vadd.f32 %v1361_v16, %v1358_v53  ;;  %v1624_v63 = vmul.f32 %v1599_v49, %v2868_v52  ;;  %v2881_v26 = vadd.f32 %v1373_v36, %v1370_v10 }
 0x423   :  { %v1668_v39 = vadd.f32 %v1667_v7, %v1666_v23  ;;  %v1661_v28 = vadd.f32 %v1660_v24, %v1659_v59  ;;  %v1653_v7 = vrot.slane %v1652_v25, 1  ;;  %2143 = vrcp.f32 %v1759_v45 }
 0x424   :  { %v1674_v17 = vsel %vm979_vm12, %v1623_v61, 0.0  ;;  %v1371_v57 = vmul.f32 %v1369_v14, %v2873_v54  ;;  %v1682_v51 = vsel %vm979_vm12, %v1624_v63, 0.0  ;;  %v1783_v63 = vld [vmem:[%s2983_s11 + $0x38] sm:$0xff] }
 0x425   :  { %v1675_v4 = vadd.f32 %v1674_v17, %v1673_v38  ;;  %v1603_v2 = vpop.permute.xlu1 %1602  ;;  %v1607_v43 = vpop.permute.xlu0 %1606  ;;  %v1374_v22 = vld [vmem:[#allocation3 + $0x78] sm:$0xff]  ;;  %v1669_v30 = vrot.slane %v1668_v39, 2  ;;  %v1662_v20 = vrot.slane %v1661_v28, 1  ;;  %v1645_v38 = vadd.f32 %v1644_v33, %v1643_v1 }
 0x426   :  { %v1625_v11 = vmul.f32 %v1603_v2, %v2873_v54  ;;  %v1626_v60 = vmul.f32 %v1607_v43, %v2881_v26  ;;  %v2886_v18 = vadd.f32 %v1374_v22, %v1371_v57  ;;  %v1636_v57 = vadd.f32 %v1635_v9, %v1634_v27 }
 0x427   :  { %v1676_v46 = vrot.slane %v1675_v4, 4  ;;  %v1670_v47 = vadd.f32 %v1669_v30, %v1668_v39  ;;  %v1782_v39 = vld [vmem:[%s2983_s11 + $0x30] sm:$0xff] }
 0x428   :  { %v1683_v48 = vsel %vm979_vm12, %v1625_v11, 0.0  ;;  %v1691_v49 = vsel %vm979_vm12, %v1626_v60, 0.0  ;;  %v2047_v2 = vpack.c.bf16 %v1783_v63, %v1782_v39  ;;  %v1731_v60 = vsel %vm1708_vm13, %v1645_v38, %v1636_v57 }
 0x429   :  { %v1677_v32 = vadd.f32 %v1676_v46, %v1675_v4  ;;  %v1684_v19 = vadd.f32 %v1683_v48, %v1682_v51  ;;  %v1611_v15 = vpop.permute.xlu1 %1610  ;;  %v1383_v23 = vpop.permute.xlu0 %1382  ;;  %v1671_v17 = vrot.slane %v1670_v47, 1  ;;  %v1654_v4 = vadd.f32 %v1653_v7, %v1652_v25 }
 0x42a   :  { %v1627_v31 = vmul.f32 %v1611_v15, %v2886_v18  ;;  %v1663_v46 = vadd.f32 %v1662_v20, %v1661_v28  ;;  %2048 = vmatprep.subr.bf16.mxu0 %v2047_v2 }
 0x42b   :  { %v1678_v53 = vrot.slane %v1677_v32, 2  ;;  %v1685_v35 = vrot.slane %v1684_v19, 4  ;;  %v1672_v48 = vadd.f32 %v1671_v17, %v1670_v47  ;;  %2050 = vmatpush3.bf16.msra.mxu0 %v2047_v2 }
 0x42c   :  { %v1692_v16 = vsel %vm979_vm12, %v1627_v31, 0.0 }
 0x42d   :  { %v1679_v61 = vadd.f32 %v1678_v53, %v1677_v32  ;;  %v1686_v10 = vadd.f32 %v1685_v35, %v1684_v19  ;;  %v1693_v29 = vadd.f32 %v1692_v16, %v1691_v49  ;;  %v1387_v36 = vpop.permute.xlu1 %1386  ;;  %v1391_v14 = vpop.permute.xlu0 %1390  ;;  %v1732_v32 = vsel %vm1710_vm14, %v1654_v4, %v1731_v60 }
 0x42e   :  { %v1461_v27 = vmul.f32 %v1387_v36, %v2794_v0  ;;  %v1462_v25 = vmul.f32 %v1391_v14, %v2798_v44  ;;  %v1733_v31 = vsel %vm1712_vm15, %v1663_v46, %v1732_v32  ;;  %v1460_v35 = vmul.f32 %v1383_v23, %v2789_v12  ;;  %v2144_v49 = vpop.eup %2143 }
 0x42f   :  { %v1687_v59 = vrot.slane %v1686_v10, 2  ;;  %v1694_v62 = vrot.slane %v1693_v29, 4  ;;  %v1680_v43 = vrot.slane %v1679_v61, 1  ;;  %v1734_v44 = vsel %vm1714_vm1, %v1672_v48, %v1733_v31 }
 0x430   :  { %v1477_v16 = vsel %vm283_vm7, %v1461_v27, 0.0  ;;  %v1476_v36 = vsel %vm283_vm7, %v1460_v35, 0.0 }
 0x431   :  { %v1688_v22 = vadd.f32 %v1687_v59, %v1686_v10  ;;  %v1695_v24 = vadd.f32 %v1694_v62, %v1693_v29  ;;  %v1395_v11 = vpop.permute.xlu1 %1394  ;;  %v1399_v37 = vpop.permute.xlu0 %1398  ;;  %v1681_v19 = vadd.f32 %v1680_v43, %v1679_v61  ;;  %v1478_v62 = vadd.f32 %v1477_v16, %v1476_v36 }
 0x432   :  { %v1463_v1 = vmul.f32 %v1395_v11, %v2806_v58  ;;  %v1464_v58 = vmul.f32 %v1399_v37, %v2804_v34  ;;  %v1485_v34 = vsel %vm283_vm7, %v1462_v25, 0.0 }
 0x433   :  { %v1689_v30 = vrot.slane %v1688_v22, 1  ;;  %v1696_v51 = vrot.slane %v1695_v24, 2  ;;  %v1735_v29 = vsel %vm1716_vm2, %v1681_v19, %v1734_v44 }
 0x434   :  { %v1486_v33 = vsel %vm283_vm7, %v1463_v1, 0.0  ;;  %v1494_v12 = vsel %vm283_vm7, %v1464_v58, 0.0 }
 0x435   :  { %v1697_v15 = vadd.f32 %v1696_v51, %v1695_v24  ;;  %v1403_v28 = vpop.permute.xlu1 %1402  ;;  %v1407_v45 = vpop.permute.xlu0 %1406  ;;  %v1690_v53 = vadd.f32 %v1689_v30, %v1688_v22  ;;  %v1487_v61 = vadd.f32 %v1486_v33, %v1485_v34  ;;  %v1765_v22 = vmul.f32 %v2144_v49, %v2299_v55 }
 0x436   :  { %v1465_v0 = vmul.f32 %v1403_v28, %v2822_v56  ;;  %v1466_v7 = vmul.f32 %v1407_v45, %v2820_v6  ;;  %v1479_v24 = vrot.slane %v1478_v62, 4 }
 0x437   :  { %v1698_v47 = vrot.slane %v1697_v15, 1  ;;  %v1736_v59 = vsel %vm1718_vm3, %v1690_v53, %v1735_v29  ;;  %v1488_v63 = vrot.slane %v1487_v61, 4 }
 0x438   :  { %v1495_v9 = vsel %vm283_vm7, %v1465_v0, 0.0  ;;  %v1503_v6 = vsel %vm283_vm7, %v1466_v7, 0.0 }
 0x439   :  { %v1411_v23 = vpop.permute.xlu1 %1410  ;;  %v1415_v10 = vpop.permute.xlu0 %1414  ;;  %v1699_v56 = vadd.f32 %v1698_v47, %v1697_v15  ;;  %v1496_v14 = vadd.f32 %v1495_v9, %v1494_v12 }
 0x43a   :  { %v1467_v20 = vmul.f32 %v1411_v23, %v2840_v50  ;;  %v1468_v39 = vmul.f32 %v1415_v10, %v2838_v13  ;;  %v1489_v13 = vadd.f32 %v1488_v63, %v1487_v61 }
 0x43b   :  { %v1737_v38 = vsel %vm1720_vm4, %v1699_v56, %v1736_v59  ;;  %v1497_v43 = vrot.slane %v1496_v14, 4 }
 0x43c   :  { %v1504_v17 = vsel %vm283_vm7, %v1467_v20, 0.0  ;;  %1738 = vrot.lane.b32.xlu0 %v1737_v38, %s2150_s9  ;;  %v1512_v37 = vsel %vm283_vm7, %v1468_v39, 0.0  ;;  %v1490_v58 = vrot.slane %v1489_v13, 2 }
 0x43d   :  { %v1505_v57 = vadd.f32 %v1504_v17, %v1503_v6  ;;  %v1419_v4 = vpop.permute.xlu1 %1418  ;;  %v1423_v2 = vpop.permute.xlu0 %1422  ;;  %v1498_v60 = vadd.f32 %v1497_v43, %v1496_v14 }
 0x43e   :  { %v1469_v50 = vmul.f32 %v1419_v4, %v2856_v8  ;;  %v1470_v1 = vmul.f32 %v1423_v2, %v2852_v21  ;;  %v1480_v8 = vadd.f32 %v1479_v24, %v1478_v62  ;;  %v1491_v34 = vadd.f32 %v1490_v58, %v1489_v13 }
 0x43f   :  { %v1506_v11 = vrot.slane %v1505_v57, 4  ;;  %v1499_v53 = vrot.slane %v1498_v60, 2 }
 0x440   :  { %v1513_v46 = vsel %vm283_vm7, %v1469_v50, 0.0  ;;  %1770 = vrot.lane.b32.xlu0 %v1765_v22, %s2150_s9  ;;  %v1521_v32 = vsel %vm283_vm7, %v1470_v1, 0.0  ;;  %v1481_v33 = vrot.slane %v1480_v8, 2  ;;  %v1492_v20 = vrot.slane %v1491_v34, 1 }
 0x441   :  { %v1514_v30 = vadd.f32 %v1513_v46, %v1512_v37  ;;  %v1427_v51 = vpop.permute.xlu1 %1426  ;;  %v1431_v48 = vpop.permute.xlu0 %1430  ;;  %v1507_v25 = vadd.f32 %v1506_v11, %v1505_v57  ;;  %v1500_v61 = vadd.f32 %v1499_v53, %v1498_v60 }
 0x442   :  { %v1471_v27 = vmul.f32 %v1427_v51, %v2865_v41  ;;  %v1472_v15 = vmul.f32 %v1431_v48, %v2868_v52  ;;  %v1482_v23 = vadd.f32 %v1481_v33, %v1480_v8 }
 0x443   :  { %v1515_v55 = vrot.slane %v1514_v30, 4  ;;  %v1508_v0 = vrot.slane %v1507_v25, 2  ;;  %v1501_v38 = vrot.slane %v1500_v61, 1 }
 0x444   :  { %v1522_v19 = vsel %vm283_vm7, %v1471_v27, 0.0  ;;  %v1530_v44 = vsel %vm283_vm7, %v1472_v15, 0.0  ;;  %v1483_v6 = vrot.slane %v1482_v23, 1  ;;  %v1929_v27 = vld [vmem:[%s2984_s10] ss:$0 sm:$0xff] }
 0x445   :  { %v1516_v21 = vadd.f32 %v1515_v55, %v1514_v30  ;;  %v1523_v28 = vadd.f32 %v1522_v19, %v1521_v32  ;;  %v1435_v45 = vpop.permute.xlu1 %1434  ;;  %v1439_v31 = vpop.permute.xlu0 %1438  ;;  %v1509_v10 = vadd.f32 %v1508_v0, %v1507_v25  ;;  %v1502_v50 = vadd.f32 %v1501_v38, %v1500_v61 }
 0x446   :  { %v1473_v35 = vmul.f32 %v1435_v45, %v2873_v54  ;;  %v1474_v16 = vmul.f32 %v1439_v31, %v2881_v26  ;;  %v1484_v22 = vadd.f32 %v1483_v6, %v1482_v23  ;;  %v1748_v19 = vmul.f32 %v1929_v27, %v2332_v40 }
 0x447   :  { %v1524_v41 = vrot.slane %v1523_v28, 4  ;;  %v1517_v47 = vrot.slane %v1516_v21, 2  ;;  %v1510_v17 = vrot.slane %v1509_v10, 1  ;;  %v1749_v53 = vmul.f32 %v1929_v27, %v2336_v42 }
 0x448   :  { %v1531_v49 = vsel %vm283_vm7, %v1473_v35, 0.0  ;;  %v1539_v36 = vsel %vm283_vm7, %v1474_v16, 0.0 }
 0x449   :  { %v1525_v52 = vadd.f32 %v1524_v41, %v1523_v28  ;;  %v1532_v9 = vadd.f32 %v1531_v49, %v1530_v44  ;;  %v1443_v7 = vpop.permute.xlu1 %1442  ;;  %v1518_v29 = vadd.f32 %v1517_v47, %v1516_v21  ;;  %v1511_v24 = vadd.f32 %v1510_v17, %v1509_v10 }
 0x44a   :  { %v1475_v12 = vmul.f32 %v1443_v7, %v2886_v18  ;;  %v1493_v18 = vadd.f32 %v1492_v20, %v1491_v34 }
 0x44b   :  { %v1526_v54 = vrot.slane %v1525_v52, 2  ;;  %v1533_v56 = vrot.slane %v1532_v9, 4  ;;  %v1519_v57 = vrot.slane %v1518_v29, 1 }
 0x44c   :  { %v1540_v14 = vsel %vm283_vm7, %v1475_v12, 0.0  ;;  %v1709_v1 = vsel %vm1708_vm13, %v1493_v18, %v1484_v22 }
 0x44d   :  { %v1527_v59 = vadd.f32 %v1526_v54, %v1525_v52  ;;  %v1534_v62 = vadd.f32 %v1533_v56, %v1532_v9  ;;  %v1541_v26 = vadd.f32 %v1540_v14, %v1539_v36  ;;  %v1520_v46 = vadd.f32 %v1519_v57, %v1518_v29  ;;  %v1769_v28 = vpop.permute.xlu1 %1768 }
 0x44e   :  { %v1711_v51 = vsel %vm1710_vm14, %v1502_v50, %v1709_v1 }
 0x44f   :  { %v1535_v39 = vrot.slane %v1534_v62, 2  ;;  %v1542_v63 = vrot.slane %v1541_v26, 4  ;;  %v1528_v4 = vrot.slane %v1527_v59, 1  ;;  %v1713_v8 = vsel %vm1712_vm15, %v1511_v24, %v1711_v51 }
 0x450   :  { %v1715_v25 = vsel %vm1714_vm1, %v1520_v46, %v1713_v8 }
 0x451   :  { %v1536_v2 = vadd.f32 %v1535_v39, %v1534_v62  ;;  %v1543_v43 = vadd.f32 %v1542_v63, %v1541_v26  ;;  %v1529_v13 = vadd.f32 %v1528_v4, %v1527_v59  ;;  %v1934_v59 = vld [vmem:[%s2985_s12] ss:$0 sm:$0xff] }
 0x452   :  { %v1935_v26 = vld [vmem:[%s2986_s13] ss:$0 sm:$0xff] }
 0x453   :  { %v1537_v11 = vrot.slane %v1536_v2, 1  ;;  %v1544_v37 = vrot.slane %v1543_v43, 2  ;;  %v1717_v32 = vsel %vm1716_vm2, %v1529_v13, %v1715_v25 }
 0x455   :  { %v1545_v30 = vadd.f32 %v1544_v37, %v1543_v43  ;;  %v1538_v48 = vadd.f32 %v1537_v11, %v1536_v2 }
 0x457   :  { %v1546_v60 = vrot.slane %v1545_v30, 1  ;;  %v1719_v15 = vsel %vm1718_vm3, %v1538_v48, %v1717_v32 }
 0x459   :  { %v1547_v55 = vadd.f32 %v1546_v60, %v1545_v30 }
 0x45b   :  { %v1721_v58 = vsel %vm1720_vm4, %v1547_v55, %v1719_v15 }
 0x45c   :  { %v1750_v21 = vadd.f32 %v1748_v19, %v1721_v58 }
 0x45e   :  { %v1774_v45 = vmul.f32 %v1769_v28, %v1750_v21 }
 0x460   :  { %2008 = vmatprep.mubr.msk.f32.mxu0 %vm283_vm7, %v1774_v45 }
 0x4ae   :  { %v1739_v31 = vpop.permute.xlu0 %1738 }
 0x4af   :  { %v1751_v35 = vadd.f32 %v1749_v53, %v1739_v31 }
 0x4b2   :  { %v1771_v33 = vpop.permute.xlu0 %1770 }
 0x4b3   :  { %v1775_v0 = vmul.f32 %v1771_v33, %v1751_v35 }
 0x4b5   :  { %2009 = vmatmul.mubr.msk.f32.vlgmr.msra.gmra.mrb[2].mxu0 %vm283_vm7, %v1775_v0 }
 0x588   :  { %v2010_v41 = vpop.f32.mrb[2].mxu0 }
 0x589   :  { %v1862_v40 = vadd.f32 %v2010_v41, %v2240_v5  ;;  %v1856_v47 = vpop.f32.mrb[3].mxu0 }
 0x58a   :  { %v1857_v44 = vadd.f32 %v1856_v47, %v2235_v3 }
 0x58b   :  { %v1870_v49 = vsel %vm55_vm0, %v1862_v40, 0.0 }
 0x58c   :  { %1871 = vadd.xlane.f32.xlu0 %v1870_v49  ;;  %v1867_v16 = vsel %vm55_vm0, %v1857_v44, 0.0 }
 0x58d   :  { %1868 = vadd.xlane.f32.xlu1 %v1867_v16 }
 0x619   :  { %v1872_v34 = vpop.xlane.xlu0 %1871 }
 0x61a   :  { %v1874_v52 = vmul.f32 0.03125, %v1872_v34  ;;  %v1869_v42 = vpop.xlane.xlu1 %1868 }
 0x61b   :  { %v1873_v9 = vmul.f32 0.03125, %v1869_v42 }
 0x61c   :  { %v1876_v7 = vsub.f32 %v1862_v40, %v1874_v52 }
 0x61d   :  { %v1875_v61 = vsub.f32 %v1857_v44, %v1873_v9 }
 0x61e   :  { %v1878_v10 = vmul.f32 %v1876_v7, %v1876_v7 }
 0x61f   :  { %v1877_v12 = vmul.f32 %v1875_v61, %v1875_v61 }
 0x620   :  { %v1882_v5 = vsel %vm55_vm0, %v1878_v10, 0.0 }
 0x621   :  { %v1879_v23 = vsel %vm55_vm0, %v1877_v12, 0.0 }
 0x622   :  { %1880 = vadd.xlane.f32.xlu0 %v1879_v23 }
 0x626   :  { %1883 = vadd.xlane.f32.xlu0 %v1882_v5 }
 0x6af   :  { %v1881_v3 = vpop.xlane.xlu0 %1880 }
 0x6b0   :  { %v1885_v54 = vmul.f32 0.03125, %v1881_v3 }
 0x6b2   :  { %v1887_v56 = vadd.f32 1e-05, %v1885_v54 }
 0x6b3   :  { %v1884_v29 = vpop.xlane.xlu0 %1883 }
 0x6b4   :  { %2145 = vrsqrt.f32 %v1887_v56  ;;  %v1886_v36 = vmul.f32 0.03125, %v1884_v29 }
 0x6b6   :  { %v1888_v14 = vadd.f32 1e-05, %v1886_v36 }
 0x6b8   :  { %2147 = vrsqrt.f32 %v1888_v14 }
 0x6be   :  { %v2146_v20 = vpop.eup %2145 }
 0x6bf   :  { %v1891_v62 = vmul.f32 %v2146_v20, %v1875_v61 }
 0x6c1   :  { %v1899_v38 = vmul.f32 %v1934_v59, %v1891_v62 }
 0x6c2   :  { %v2148_v6 = vpop.eup %2147 }
 0x6c3   :  { %v1907_v17 = vadd.f32 %v1935_v26, %v1899_v38  ;;  %v1892_v39 = vmul.f32 %v2148_v6, %v1876_v7 }
 0x6c5   :  { %1909 = vst.msk [vmem:[%s2987_s14] sm:$0xff] %vm55_vm0, %v1907_v17  ;;  %v1900_v63 = vmul.f32 %v1934_v59, %v1892_v39 }
 0x6c7   :  { %v1908_v57 = vadd.f32 %v1935_v26, %v1900_v63 }
 0x6c9   :  { %1910 = vst.msk [vmem:[%s2987_s14 + $0x8] sm:$0xff] %vm55_vm0, %v1908_v57 }

</bundles_post_ra>
